<compile_context>
chip_gen: v7x
topology: tpu7x:2x2x1
jax: 0.10.0
libtpu: 0.0.40
codegen_flags: <defaults>
</compile_context>

<pallas_src>
import functools
import math

import jax
import jax.numpy as jnp
from jax.experimental import pallas as pl
from jax.experimental.pallas import tpu as pltpu


# ----------------------------------------------------------------------------
# Fully fused decoder kernel: grid = (B, L), activation carried in VMEM scratch
# ----------------------------------------------------------------------------

def _decoder_kernel(
    # per-batch activations
    q_ref, qp_ref, mem_ref, ref0_ref,
    # per-layer weights (leading L axis selected by the index_map)
    w_qk_s_ref, b_qk_s_ref, w_v_s_ref, b_v_s_ref, w_o_s_ref, b_o_s_ref,
    w_q_c_ref, b_q_c_ref, w_kv_c_ref, b_kv_c_ref, w_o_c_ref, b_o_c_ref,
    ln_g_ref, ln_b_ref,
    ffn_w1_ref, ffn_b1_ref, ffn_w2_ref, ffn_b2_ref,
    # shared detection-head weights (constant block index)
    box_w1_ref, box_b1_ref, box_w2_ref, box_b2_ref, box_w3_ref, box_b3_ref,
    *rest, num_heads, eps, has_mask,
):
    if has_mask:
        (mask_ref, inter_ref, refw_ref, x_scr, ref_scr, attn_scr) = rest
        mask = mask_ref[...].astype(jnp.float32)
    else:
        (inter_ref, refw_ref, x_scr, ref_scr, attn_scr) = rest
        mask = None

    layer = pl.program_id(1)

    # First layer of each batch element: seed the carried activation / boxes.
    @pl.when(layer == 0)
    def _():
        x_scr[...] = q_ref[...].astype(jnp.float32)
        ref_scr[...] = ref0_ref[...].astype(jnp.float32)

    x = x_scr[...]                          # [Nq, D] f32 (output of layer l-1)
    qp = qp_ref[...].astype(jnp.float32)    # [Nq, D] f32
    mem = mem_ref[...]                      # [S, D]  bf16
    Nq, D = x.shape
    H = num_heads
    Dh = D // H
    scale = 1.0 / math.sqrt(Dh)

    lng = ln_g_ref[...].astype(jnp.float32)     # [3, D]
    lnb = ln_b_ref[...].astype(jnp.float32)     # [3, D]

    def layernorm(y, idx):
        mean = jnp.mean(y, axis=-1, keepdims=True)
        var = jnp.mean(y * y, axis=-1, keepdims=True) - mean * mean
        return (y - mean) * jax.lax.rsqrt(var + eps) * lng[idx:idx + 1, :] + lnb[idx:idx + 1, :]

    def attention(q, k, v, w_o_ref, b_o_ref, msk):
        # Per-head scores / PV; head outputs are written into attn_scr so the output
        # projection is a single K=D matmul instead of H matmuls with K=Dh.
        for h in range(H):
            sl = slice(h * Dh, (h + 1) * Dh)
            qh = q[:, sl].astype(jnp.bfloat16)
            kh = k[:, sl].astype(jnp.bfloat16)
            vh = v[:, sl].astype(jnp.bfloat16)
            s = jax.lax.dot_general(
                qh, kh, (((1,), (1,)), ((), ())),
                preferred_element_type=jnp.float32) * scale
            if msk is not None:
                s = s + msk
            s = s - jnp.max(s, axis=-1, keepdims=True)
            p = jnp.exp(s)
            p = p * pl.reciprocal(jnp.sum(p, axis=-1, keepdims=True), approx=True)
            attn_scr[:, sl] = jnp.dot(p.astype(jnp.bfloat16), vh,
                                      preferred_element_type=jnp.float32)
        merged = attn_scr[...].astype(jnp.bfloat16)
        return (jnp.dot(merged, w_o_ref[...], preferred_element_type=jnp.float32)
                + b_o_ref[...])

    # ---------------- self attention (q = k = x + qp, v = x) ----------------
    x_b = x.astype(jnp.bfloat16)
    qk_in = (x + qp).astype(jnp.bfloat16)
    qk = jnp.dot(qk_in, w_qk_s_ref[...], preferred_element_type=jnp.float32) + b_qk_s_ref[...]
    v_s = jnp.dot(x_b, w_v_s_ref[...], preferred_element_type=jnp.float32) + b_v_s_ref[...]
    sa = attention(qk[:, :D], qk[:, D:], v_s, w_o_s_ref, b_o_s_ref, mask)
    x1 = layernorm(x + sa, 0)

    # ---------------- cross attention to memory ----------------
    q_in = (x1 + qp).astype(jnp.bfloat16)
    q_c = jnp.dot(q_in, w_q_c_ref[...], preferred_element_type=jnp.float32) + b_q_c_ref[...]
    kv = jnp.dot(mem, w_kv_c_ref[...], preferred_element_type=jnp.float32) + b_kv_c_ref[...]
    ca = attention(q_c, kv[:, :D], kv[:, D:], w_o_c_ref, b_o_c_ref, None)
    x2 = layernorm(x1 + ca, 1)

    # ---------------- feed forward ----------------
    h1 = jnp.maximum(
        jnp.dot(x2.astype(jnp.bfloat16), ffn_w1_ref[...],
                preferred_element_type=jnp.float32) + ffn_b1_ref[...], 0.0)
    f = jnp.dot(h1.astype(jnp.bfloat16), ffn_w2_ref[...],
                preferred_element_type=jnp.float32) + ffn_b2_ref[...]
    x3 = layernorm(x2 + f, 2)

    x_scr[...] = x3
    inter_ref[...] = x3.astype(inter_ref.dtype)

    # ---------------- detection head (3-layer box MLP + additive refinement) ----------
    # The classification branch (logits -> sigmoid) only feeds the detached ref_windows
    # concat in the reference, which is never read by the forward outputs, so it is skipped.
    r7 = ref_scr[...]
    hb = jnp.maximum(
        jnp.dot(x3.astype(jnp.bfloat16), box_w1_ref[...],
                preferred_element_type=jnp.float32) + box_b1_ref[...], 0.0)
    hb = jnp.maximum(
        jnp.dot(hb.astype(jnp.bfloat16), box_w2_ref[...],
                preferred_element_type=jnp.float32) + box_b2_ref[...], 0.0)
    delta = jnp.dot(hb.astype(jnp.bfloat16), box_w3_ref[...],
                    preferred_element_type=jnp.float32) + box_b3_ref[...]
    new_ref = r7 + delta
    ref_scr[...] = new_ref
    refw_ref[...] = new_ref.astype(refw_ref.dtype)


_LAYER_WEIGHT_NAMES = (
    "w_qk_s", "b_qk_s", "w_v_s", "b_v_s", "w_o_s", "b_o_s",
    "w_q_c", "b_q_c", "w_kv_c", "b_kv_c", "w_o_c", "b_o_c",
    "ln_g", "ln_b",
    "ffn_w1", "ffn_b1", "ffn_w2", "ffn_b2",
)
_HEAD_WEIGHT_NAMES = ("box_w1", "box_b1", "box_w2", "box_b2", "box_w3", "box_b3")


def transformer_decoder_forward(
    params, query, query_pos, memory, memory_shape, memory_start_idx,
    ref_windows, attn_mask=None, *, num_heads=4, eps=1e-5,
):
    # memory_shape / memory_start_idx are only needed by the deformable box-attention layer
    # variant; the dense cross-attention used here does not consume them (see header TODO).
    del memory_shape, memory_start_idx
    B, Nq, D = query.shape
    S = memory.shape[1]
    layer_w = [params["layers"][n] for n in _LAYER_WEIGHT_NAMES]
    head_w = [params["head"][n] for n in _HEAD_WEIGHT_NAMES]
    L = layer_w[0].shape[0]
    has_mask = attn_mask is not None

    kern = functools.partial(
        _decoder_kernel, num_heads=num_heads, eps=eps, has_mask=has_mask)

    in_arrays = [query, query_pos, memory.astype(jnp.bfloat16), ref_windows[..., :7]]
    in_specs = [
        pl.BlockSpec((None, Nq, D), lambda b, l: (b, 0, 0)),
        pl.BlockSpec((None, Nq, D), lambda b, l: (b, 0, 0)),
        pl.BlockSpec((None, S, D), lambda b, l: (b, 0, 0)),
        pl.BlockSpec((None, Nq, 7), lambda b, l: (b, 0, 0)),
    ]
    # Per-layer weights: block index follows the L grid axis -> pipelined weight prefetch.
    in_arrays += layer_w
    in_specs += [pl.BlockSpec((None,) + w.shape[1:], lambda b, l: (l, 0, 0))
                 for w in layer_w]
    # Shared detection-head weights: constant block index (VMEM resident).
    in_arrays += head_w
    in_specs += [pl.BlockSpec(w.shape, lambda b, l: (0, 0)) for w in head_w]
    if has_mask:
        # TODO(synk): assumes a rank-2 [Nq, Nq] mask shared across batch and heads.
        in_arrays.append(attn_mask.astype(jnp.float32))
        in_specs.append(pl.BlockSpec(attn_mask.shape, lambda b, l: (0, 0)))

    out_shape = (
        jax.ShapeDtypeStruct((L, B, Nq, D), query.dtype),
        jax.ShapeDtypeStruct((L, B, Nq, 7), ref_windows.dtype),
    )
    out_specs = (
        pl.BlockSpec((None, None, Nq, D), lambda b, l: (l, b, 0, 0)),
        pl.BlockSpec((None, None, Nq, 7), lambda b, l: (l, b, 0, 0)),
    )

    return pl.pallas_call(
        kern,
        grid=(B, L),
        in_specs=in_specs,
        out_specs=out_specs,
        out_shape=out_shape,
        scratch_shapes=[
            pltpu.VMEM((Nq, D), jnp.float32),   # activation carried across the L axis
            pltpu.VMEM((Nq, 7), jnp.float32),   # ref_windows[..., :7] carried across L
            pltpu.VMEM((Nq, D), jnp.float32),   # per-head attention output assembly buffer
        ],
        compiler_params=pltpu.CompilerParams(
            dimension_semantics=("parallel", "arbitrary"),
            vmem_limit_bytes=64 * 1024 * 1024,
        ),
    )(*in_arrays)


# ----------------------------------------------------------------------------
# Deterministic parameter construction (weights stacked along L, stored bf16)
# ----------------------------------------------------------------------------

def init_params(key, d_model, num_layers, num_heads, dim_ff, num_classes,
                w_dtype=jnp.bfloat16):
    D, L, F = d_model, num_layers, dim_ff
    keys = iter(jax.random.split(key, 32))

    def dense(shape, scale=0.02):
        return (scale * jax.random.normal(next(keys), shape, jnp.float32)).astype(w_dtype)

    layers = {
        # self-attention: fused QK projection + separate V projection + out-proj
        "w_qk_s": dense((L, D, 2 * D)), "b_qk_s": jnp.zeros((L, 1, 2 * D), jnp.float32),
        "w_v_s": dense((L, D, D)), "b_v_s": jnp.zeros((L, 1, D), jnp.float32),
        "w_o_s": dense((L, D, D)), "b_o_s": jnp.zeros((L, 1, D), jnp.float32),
        # cross-attention: Q projection + fused KV projection + out-proj
        "w_q_c": dense((L, D, D)), "b_q_c": jnp.zeros((L, 1, D), jnp.float32),
        "w_kv_c": dense((L, D, 2 * D)), "b_kv_c": jnp.zeros((L, 1, 2 * D), jnp.float32),
        "w_o_c": dense((L, D, D)), "b_o_c": jnp.zeros((L, 1, D), jnp.float32),
        # the three post-norm LayerNorms packed as [3, D]
        "ln_g": jnp.ones((L, 3, D), jnp.float32), "ln_b": jnp.zeros((L, 3, D), jnp.float32),
        # FFN
        "ffn_w1": dense((L, D, F)), "ffn_b1": jnp.zeros((L, 1, F), jnp.float32),
        "ffn_w2": dense((L, F, D)), "ffn_b2": jnp.zeros((L, 1, D), jnp.float32),
    }
    head = {
        "box_w1": dense((D, D)), "box_b1": jnp.zeros((1, D), jnp.float32),
        "box_w2": dense((D, D)), "box_b2": jnp.zeros((1, D), jnp.float32),
        "box_w3": dense((D, 7)), "box_b3": jnp.zeros((1, 7), jnp.float32),
        # Classification weights kept for interface fidelity; the probs only feed the
        # detached ref_windows concat which never reaches the forward outputs, so the
        # kernel does not consume them.
        "cls_w": dense((D, num_classes)), "cls_b": jnp.zeros((1, num_classes), jnp.float32),
    }
    return {"layers": layers, "head": head}


# ----------------------------------------------------------------------------
# Main
# ----------------------------------------------------------------------------

if __name__ == "__main__":
    B, Nq, S = 2, 8, 16          # batch, num queries, memory length
    D, num_heads = 32, 4         # d_model, heads
    num_layers, dim_ff, num_classes = 3, 64, 3

    root = jax.random.PRNGKey(0)
    k_params, k_q, k_qp, k_mem, k_ref = jax.random.split(root, 5)

    params = init_params(k_params, D, num_layers, num_heads, dim_ff, num_classes)

    query = jax.random.normal(k_q, (B, Nq, D), dtype=jnp.float32)
    query_pos = jax.random.normal(k_qp, (B, Nq, D), dtype=jnp.float32)
    memory = jax.random.normal(k_mem, (B, S, D), dtype=jnp.float32)
    ref_windows = jax.random.normal(k_ref, (B, Nq, 7), dtype=jnp.float32)

    memory_shape = jnp.array([[4, 4]], dtype=jnp.int32)      # unused placeholder
    memory_start_idx = jnp.array([0], dtype=jnp.int32)       # unused placeholder

    fwd = jax.jit(
        functools.partial(transformer_decoder_forward, num_heads=num_heads)
    )
    inter, inter_refs = fwd(
        params, query, query_pos, memory, memory_shape, memory_start_idx,
        ref_windows, None,
    )
    jax.block_until_ready((inter, inter_refs))

    assert inter.shape == (num_layers, B, Nq, D)
    assert inter_refs.shape == (num_layers, B, Nq, 7)
    print("KERNEL_OK")
</pallas_src>

<mosaic_0001>
module attributes {stable_mosaic.version = 11 : i64} {
  func.func @_decoder_kernel(%arg0: i32, %arg1: i32, %arg2: memref<1x8x32xf32, #tpu.memory_space<vmem>>, %arg3: memref<1x8x32xf32, #tpu.memory_space<vmem>>, %arg4: memref<1x16x32xbf16, #tpu.memory_space<vmem>>, %arg5: memref<1x8x7xf32, #tpu.memory_space<vmem>>, %arg6: memref<1x32x64xbf16, #tpu.memory_space<vmem>>, %arg7: memref<1x1x64xf32, #tpu.memory_space<vmem>>, %arg8: memref<1x32x32xbf16, #tpu.memory_space<vmem>>, %arg9: memref<1x1x32xf32, #tpu.memory_space<vmem>>, %arg10: memref<1x32x32xbf16, #tpu.memory_space<vmem>>, %arg11: memref<1x1x32xf32, #tpu.memory_space<vmem>>, %arg12: memref<1x32x32xbf16, #tpu.memory_space<vmem>>, %arg13: memref<1x1x32xf32, #tpu.memory_space<vmem>>, %arg14: memref<1x32x64xbf16, #tpu.memory_space<vmem>>, %arg15: memref<1x1x64xf32, #tpu.memory_space<vmem>>, %arg16: memref<1x32x32xbf16, #tpu.memory_space<vmem>>, %arg17: memref<1x1x32xf32, #tpu.memory_space<vmem>>, %arg18: memref<1x3x32xf32, #tpu.memory_space<vmem>>, %arg19: memref<1x3x32xf32, #tpu.memory_space<vmem>>, %arg20: memref<1x32x64xbf16, #tpu.memory_space<vmem>>, %arg21: memref<1x1x64xf32, #tpu.memory_space<vmem>>, %arg22: memref<1x64x32xbf16, #tpu.memory_space<vmem>>, %arg23: memref<1x1x32xf32, #tpu.memory_space<vmem>>, %arg24: memref<32x32xbf16, #tpu.memory_space<vmem>>, %arg25: memref<1x32xf32, #tpu.memory_space<vmem>>, %arg26: memref<32x32xbf16, #tpu.memory_space<vmem>>, %arg27: memref<1x32xf32, #tpu.memory_space<vmem>>, %arg28: memref<32x7xbf16, #tpu.memory_space<vmem>>, %arg29: memref<1x7xf32, #tpu.memory_space<vmem>>, %arg30: memref<1x1x8x32xf32, #tpu.memory_space<vmem>>, %arg31: memref<1x1x8x7xf32, #tpu.memory_space<vmem>>, %arg32: memref<8x32xf32, #tpu.memory_space<vmem>>, %arg33: memref<8x7xf32, #tpu.memory_space<vmem>>, %arg34: memref<8x32xf32, #tpu.memory_space<vmem>>) attributes {dimension_semantics = [#tpu.dimension_semantics<parallel>, #tpu.dimension_semantics<arbitrary>], iteration_bounds = array<i64: 2, 3>, scalar_prefetch = 0 : i64, scratch_operands = 3 : i64, tpu.core_type = #tpu.core_type<tc>, window_params = [{transform_indices = @transform_0, window_bounds = array<i64: 1, 8, 32>}, {transform_indices = @transform_1, window_bounds = array<i64: 1, 8, 32>}, {transform_indices = @transform_2, window_bounds = array<i64: 1, 16, 32>}, {transform_indices = @transform_3, window_bounds = array<i64: 1, 8, 7>}, {transform_indices = @transform_4, window_bounds = array<i64: 1, 32, 64>}, {transform_indices = @transform_5, window_bounds = array<i64: 1, 1, 64>}, {transform_indices = @transform_6, window_bounds = array<i64: 1, 32, 32>}, {transform_indices = @transform_7, window_bounds = array<i64: 1, 1, 32>}, {transform_indices = @transform_8, window_bounds = array<i64: 1, 32, 32>}, {transform_indices = @transform_9, window_bounds = array<i64: 1, 1, 32>}, {transform_indices = @transform_10, window_bounds = array<i64: 1, 32, 32>}, {transform_indices = @transform_11, window_bounds = array<i64: 1, 1, 32>}, {transform_indices = @transform_12, window_bounds = array<i64: 1, 32, 64>}, {transform_indices = @transform_13, window_bounds = array<i64: 1, 1, 64>}, {transform_indices = @transform_14, window_bounds = array<i64: 1, 32, 32>}, {transform_indices = @transform_15, window_bounds = array<i64: 1, 1, 32>}, {transform_indices = @transform_16, window_bounds = array<i64: 1, 3, 32>}, {transform_indices = @transform_17, window_bounds = array<i64: 1, 3, 32>}, {transform_indices = @transform_18, window_bounds = array<i64: 1, 32, 64>}, {transform_indices = @transform_19, window_bounds = array<i64: 1, 1, 64>}, {transform_indices = @transform_20, window_bounds = array<i64: 1, 64, 32>}, {transform_indices = @transform_21, window_bounds = array<i64: 1, 1, 32>}, {pipeline_mode = #tpu.pipeline_mode<synchronous>, transform_indices = @transform_22, window_bounds = array<i64: 32, 32>}, {pipeline_mode = #tpu.pipeline_mode<synchronous>, transform_indices = @transform_23, window_bounds = array<i64: 1, 32>}, {pipeline_mode = #tpu.pipeline_mode<synchronous>, transform_indices = @transform_24, window_bounds = array<i64: 32, 32>}, {pipeline_mode = #tpu.pipeline_mode<synchronous>, transform_indices = @transform_25, window_bounds = array<i64: 1, 32>}, {pipeline_mode = #tpu.pipeline_mode<synchronous>, transform_indices = @transform_26, window_bounds = array<i64: 32, 7>}, {pipeline_mode = #tpu.pipeline_mode<synchronous>, transform_indices = @transform_27, window_bounds = array<i64: 1, 7>}, {transform_indices = @transform_28, window_bounds = array<i64: 1, 1, 8, 32>}, {transform_indices = @transform_29, window_bounds = array<i64: 1, 1, 8, 7>}]} {
    %c0_i32 = arith.constant 0 : i32
    %0 = arith.cmpi eq, %arg1, %c0_i32 : i32
    %1 = arith.extui %0 : i1 to i32
    %c0_i32_0 = arith.constant 0 : i32
    %2 = arith.cmpi ne, %1, %c0_i32_0 : i32
    scf.if %2 {
      %c0_173 = arith.constant 0 : index
      %c0_174 = arith.constant 0 : index
      %c0_175 = arith.constant 0 : index
      %368 = vector.load %arg2[%c0_173, %c0_174, %c0_175] : memref<1x8x32xf32, #tpu.memory_space<vmem>>, vector<1x8x32xf32>
      %369 = vector.shape_cast %368 : vector<1x8x32xf32> to vector<8x32xf32>
      %c0_176 = arith.constant 0 : index
      %c0_177 = arith.constant 0 : index
      %370 = vector.load %arg32[%c0_176, %c0_177] : memref<8x32xf32, #tpu.memory_space<vmem>>, vector<8x32xf32>
      tpu.vector_store %arg32[%c0_176, %c0_177], %369 {strides = array<i32>} : memref<8x32xf32, #tpu.memory_space<vmem>>, vector<8x32xf32>,
      %c0_178 = arith.constant 0 : index
      %c0_179 = arith.constant 0 : index
      %c0_180 = arith.constant 0 : index
      %371 = vector.load %arg5[%c0_178, %c0_179, %c0_180] : memref<1x8x7xf32, #tpu.memory_space<vmem>>, vector<1x8x7xf32>
      %372 = vector.shape_cast %371 : vector<1x8x7xf32> to vector<8x7xf32>
      %c0_181 = arith.constant 0 : index
      %c0_182 = arith.constant 0 : index
      %373 = vector.load %arg33[%c0_181, %c0_182] : memref<8x7xf32, #tpu.memory_space<vmem>>, vector<8x7xf32>
      tpu.vector_store %arg33[%c0_181, %c0_182], %372 {strides = array<i32>} : memref<8x7xf32, #tpu.memory_space<vmem>>, vector<8x7xf32>,
    } else {
    }
    %c0 = arith.constant 0 : index
    %c0_1 = arith.constant 0 : index
    %3 = vector.load %arg32[%c0, %c0_1] : memref<8x32xf32, #tpu.memory_space<vmem>>, vector<8x32xf32>
    %c0_2 = arith.constant 0 : index
    %c0_3 = arith.constant 0 : index
    %c0_4 = arith.constant 0 : index
    %4 = vector.load %arg3[%c0_2, %c0_3, %c0_4] : memref<1x8x32xf32, #tpu.memory_space<vmem>>, vector<1x8x32xf32>
    %5 = vector.shape_cast %4 : vector<1x8x32xf32> to vector<8x32xf32>
    %c0_5 = arith.constant 0 : index
    %c0_6 = arith.constant 0 : index
    %c0_7 = arith.constant 0 : index
    %6 = vector.load %arg4[%c0_5, %c0_6, %c0_7] : memref<1x16x32xbf16, #tpu.memory_space<vmem>>, vector<1x16x32xbf16>
    %7 = vector.shape_cast %6 : vector<1x16x32xbf16> to vector<16x32xbf16>
    %c0_8 = arith.constant 0 : index
    %c0_9 = arith.constant 0 : index
    %c0_10 = arith.constant 0 : index
    %8 = vector.load %arg18[%c0_8, %c0_9, %c0_10] : memref<1x3x32xf32, #tpu.memory_space<vmem>>, vector<1x3x32xf32>
    %9 = vector.shape_cast %8 : vector<1x3x32xf32> to vector<3x32xf32>
    %c0_11 = arith.constant 0 : index
    %c0_12 = arith.constant 0 : index
    %c0_13 = arith.constant 0 : index
    %10 = vector.load %arg19[%c0_11, %c0_12, %c0_13] : memref<1x3x32xf32, #tpu.memory_space<vmem>>, vector<1x3x32xf32>
    %11 = vector.shape_cast %10 : vector<1x3x32xf32> to vector<3x32xf32>
    %12 = arith.truncf %3 : vector<8x32xf32> to vector<8x32xbf16>
    %13 = arith.addf %3, %5 : vector<8x32xf32>
    %14 = arith.truncf %13 : vector<8x32xf32> to vector<8x32xbf16>
    %c0_14 = arith.constant 0 : index
    %c0_15 = arith.constant 0 : index
    %c0_16 = arith.constant 0 : index
    %15 = vector.load %arg6[%c0_14, %c0_15, %c0_16] : memref<1x32x64xbf16, #tpu.memory_space<vmem>>, vector<1x32x64xbf16>
    %16 = vector.shape_cast %15 : vector<1x32x64xbf16> to vector<32x64xbf16>
    %cst = arith.constant dense<0.000000e+00> : vector<8x64xf32>
    %17 = tpu.matmul %14, %16, %cst {dimension_numbers = #tpu.dot_dimension_numbers<[1], [0], [0], [1], [0, 0, 1, 1], [], []>} : vector<8x32xbf16>, vector<32x64xbf16>, vector<8x64xf32> -> vector<8x64xf32>
    %c0_17 = arith.constant 0 : index
    %c0_18 = arith.constant 0 : index
    %c0_19 = arith.constant 0 : index
    %18 = vector.load %arg7[%c0_17, %c0_18, %c0_19] : memref<1x1x64xf32, #tpu.memory_space<vmem>>, vector<1x1x64xf32>
    %19 = vector.shape_cast %18 : vector<1x1x64xf32> to vector<1x64xf32>
    %20 = vector.broadcast %19 : vector<1x64xf32> to vector<8x64xf32>
    %21 = arith.addf %17, %20 : vector<8x64xf32>
    %c0_20 = arith.constant 0 : index
    %c0_21 = arith.constant 0 : index
    %c0_22 = arith.constant 0 : index
    %22 = vector.load %arg8[%c0_20, %c0_21, %c0_22] : memref<1x32x32xbf16, #tpu.memory_space<vmem>>, vector<1x32x32xbf16>
    %23 = vector.shape_cast %22 : vector<1x32x32xbf16> to vector<32x32xbf16>
    %cst_23 = arith.constant dense<0.000000e+00> : vector<8x32xf32>
    %24 = tpu.matmul %12, %23, %cst_23 {dimension_numbers = #tpu.dot_dimension_numbers<[1], [0], [0], [1], [0, 0, 1, 1], [], []>} : vector<8x32xbf16>, vector<32x32xbf16>, vector<8x32xf32> -> vector<8x32xf32>
    %c0_24 = arith.constant 0 : index
    %c0_25 = arith.constant 0 : index
    %c0_26 = arith.constant 0 : index
    %25 = vector.load %arg9[%c0_24, %c0_25, %c0_26] : memref<1x1x32xf32, #tpu.memory_space<vmem>>, vector<1x1x32xf32>
    %26 = vector.shape_cast %25 : vector<1x1x32xf32> to vector<1x32xf32>
    %27 = vector.broadcast %26 : vector<1x32xf32> to vector<8x32xf32>
    %28 = arith.addf %24, %27 : vector<8x32xf32>
    %29 = vector.extract_strided_slice %21 {offsets = [0, 0], sizes = [8, 32], strides = [1, 1]} : vector<8x64xf32> to vector<8x32xf32>
    %30 = vector.extract_strided_slice %21 {offsets = [0, 32], sizes = [8, 32], strides = [1, 1]} : vector<8x64xf32> to vector<8x32xf32>
    %31 = vector.extract_strided_slice %29 {offsets = [0, 0], sizes = [8, 8], strides = [1, 1]} : vector<8x32xf32> to vector<8x8xf32>
    %32 = arith.truncf %31 : vector<8x8xf32> to vector<8x8xbf16>
    %33 = vector.extract_strided_slice %30 {offsets = [0, 0], sizes = [8, 8], strides = [1, 1]} : vector<8x32xf32> to vector<8x8xf32>
    %34 = arith.truncf %33 : vector<8x8xf32> to vector<8x8xbf16>
    %35 = vector.extract_strided_slice %28 {offsets = [0, 0], sizes = [8, 8], strides = [1, 1]} : vector<8x32xf32> to vector<8x8xf32>
    %36 = arith.truncf %35 : vector<8x8xf32> to vector<8x8xbf16>
    %cst_27 = arith.constant dense<0.000000e+00> : vector<8x8xf32>
    %37 = tpu.matmul %32, %34, %cst_27 {dimension_numbers = #tpu.dot_dimension_numbers<[1], [1], [0], [0], [0, 0, 1, 0], [], []>} : vector<8x8xbf16>, vector<8x8xbf16>, vector<8x8xf32> -> vector<8x8xf32>
    %cst_28 = arith.constant 0.353553385 : f32
    %38 = vector.broadcast %cst_28 : f32 to vector<8x8xf32>
    %39 = arith.mulf %37, %38 : vector<8x8xf32>
    %cst_29 = arith.constant dense<0xFF800000> : vector<8xf32>
    %40 = vector.multi_reduction <maximumf>, %39, %cst_29 [1] : vector<8x8xf32> to vector<8xf32>
    %41 = vector.shape_cast %40 : vector<8xf32> to vector<8x1xf32>
    %42 = vector.broadcast %41 : vector<8x1xf32> to vector<8x8xf32>
    %43 = arith.subf %39, %42 : vector<8x8xf32>
    %44 = math.exp %43 : vector<8x8xf32>
    %cst_30 = arith.constant dense<0.000000e+00> : vector<8xf32>
    %45 = vector.multi_reduction <add>, %44, %cst_30 [1] : vector<8x8xf32> to vector<8xf32>
    %46 = vector.shape_cast %45 : vector<8xf32> to vector<8x1xf32>
    %47 = tpu.reciprocal %46 {approx = true} : vector<8x1xf32> -> vector<8x1xf32>
    %48 = vector.broadcast %47 : vector<8x1xf32> to vector<8x8xf32>
    %49 = arith.mulf %44, %48 : vector<8x8xf32>
    %50 = arith.truncf %49 : vector<8x8xf32> to vector<8x8xbf16>
    %cst_31 = arith.constant dense<0.000000e+00> : vector<8x8xf32>
    %51 = tpu.matmul %50, %36, %cst_31 {dimension_numbers = #tpu.dot_dimension_numbers<[1], [0], [0], [1], [0, 0, 1, 1], [], []>} : vector<8x8xbf16>, vector<8x8xbf16>, vector<8x8xf32> -> vector<8x8xf32>
    %c0_32 = arith.constant 0 : index
    %c0_33 = arith.constant 0 : index
    %52 = vector.load %arg34[%c0_32, %c0_33] : memref<8x32xf32, #tpu.memory_space<vmem>>, vector<8x8xf32>
    tpu.vector_store %arg34[%c0_32, %c0_33], %51 {strides = array<i32>} : memref<8x32xf32, #tpu.memory_space<vmem>>, vector<8x8xf32>,
    %53 = vector.extract_strided_slice %29 {offsets = [0, 8], sizes = [8, 8], strides = [1, 1]} : vector<8x32xf32> to vector<8x8xf32>
    %54 = arith.truncf %53 : vector<8x8xf32> to vector<8x8xbf16>
    %55 = vector.extract_strided_slice %30 {offsets = [0, 8], sizes = [8, 8], strides = [1, 1]} : vector<8x32xf32> to vector<8x8xf32>
    %56 = arith.truncf %55 : vector<8x8xf32> to vector<8x8xbf16>
    %57 = vector.extract_strided_slice %28 {offsets = [0, 8], sizes = [8, 8], strides = [1, 1]} : vector<8x32xf32> to vector<8x8xf32>
    %58 = arith.truncf %57 : vector<8x8xf32> to vector<8x8xbf16>
    %cst_34 = arith.constant dense<0.000000e+00> : vector<8x8xf32>
    %59 = tpu.matmul %54, %56, %cst_34 {dimension_numbers = #tpu.dot_dimension_numbers<[1], [1], [0], [0], [0, 0, 1, 0], [], []>} : vector<8x8xbf16>, vector<8x8xbf16>, vector<8x8xf32> -> vector<8x8xf32>
    %cst_35 = arith.constant 0.353553385 : f32
    %60 = vector.broadcast %cst_35 : f32 to vector<8x8xf32>
    %61 = arith.mulf %59, %60 : vector<8x8xf32>
    %cst_36 = arith.constant dense<0xFF800000> : vector<8xf32>
    %62 = vector.multi_reduction <maximumf>, %61, %cst_36 [1] : vector<8x8xf32> to vector<8xf32>
    %63 = vector.shape_cast %62 : vector<8xf32> to vector<8x1xf32>
    %64 = vector.broadcast %63 : vector<8x1xf32> to vector<8x8xf32>
    %65 = arith.subf %61, %64 : vector<8x8xf32>
    %66 = math.exp %65 : vector<8x8xf32>
    %cst_37 = arith.constant dense<0.000000e+00> : vector<8xf32>
    %67 = vector.multi_reduction <add>, %66, %cst_37 [1] : vector<8x8xf32> to vector<8xf32>
    %68 = vector.shape_cast %67 : vector<8xf32> to vector<8x1xf32>
    %69 = tpu.reciprocal %68 {approx = true} : vector<8x1xf32> -> vector<8x1xf32>
    %70 = vector.broadcast %69 : vector<8x1xf32> to vector<8x8xf32>
    %71 = arith.mulf %66, %70 : vector<8x8xf32>
    %72 = arith.truncf %71 : vector<8x8xf32> to vector<8x8xbf16>
    %cst_38 = arith.constant dense<0.000000e+00> : vector<8x8xf32>
    %73 = tpu.matmul %72, %58, %cst_38 {dimension_numbers = #tpu.dot_dimension_numbers<[1], [0], [0], [1], [0, 0, 1, 1], [], []>} : vector<8x8xbf16>, vector<8x8xbf16>, vector<8x8xf32> -> vector<8x8xf32>
    %c0_39 = arith.constant 0 : index
    %c8 = arith.constant 8 : index
    %74 = vector.load %arg34[%c0_39, %c8] : memref<8x32xf32, #tpu.memory_space<vmem>>, vector<8x8xf32>
    tpu.vector_store %arg34[%c0_39, %c8], %73 {strides = array<i32>} : memref<8x32xf32, #tpu.memory_space<vmem>>, vector<8x8xf32>,
    %75 = vector.extract_strided_slice %29 {offsets = [0, 16], sizes = [8, 8], strides = [1, 1]} : vector<8x32xf32> to vector<8x8xf32>
    %76 = arith.truncf %75 : vector<8x8xf32> to vector<8x8xbf16>
    %77 = vector.extract_strided_slice %30 {offsets = [0, 16], sizes = [8, 8], strides = [1, 1]} : vector<8x32xf32> to vector<8x8xf32>
    %78 = arith.truncf %77 : vector<8x8xf32> to vector<8x8xbf16>
    %79 = vector.extract_strided_slice %28 {offsets = [0, 16], sizes = [8, 8], strides = [1, 1]} : vector<8x32xf32> to vector<8x8xf32>
    %80 = arith.truncf %79 : vector<8x8xf32> to vector<8x8xbf16>
    %cst_40 = arith.constant dense<0.000000e+00> : vector<8x8xf32>
    %81 = tpu.matmul %76, %78, %cst_40 {dimension_numbers = #tpu.dot_dimension_numbers<[1], [1], [0], [0], [0, 0, 1, 0], [], []>} : vector<8x8xbf16>, vector<8x8xbf16>, vector<8x8xf32> -> vector<8x8xf32>
    %cst_41 = arith.constant 0.353553385 : f32
    %82 = vector.broadcast %cst_41 : f32 to vector<8x8xf32>
    %83 = arith.mulf %81, %82 : vector<8x8xf32>
    %cst_42 = arith.constant dense<0xFF800000> : vector<8xf32>
    %84 = vector.multi_reduction <maximumf>, %83, %cst_42 [1] : vector<8x8xf32> to vector<8xf32>
    %85 = vector.shape_cast %84 : vector<8xf32> to vector<8x1xf32>
    %86 = vector.broadcast %85 : vector<8x1xf32> to vector<8x8xf32>
    %87 = arith.subf %83, %86 : vector<8x8xf32>
    %88 = math.exp %87 : vector<8x8xf32>
    %cst_43 = arith.constant dense<0.000000e+00> : vector<8xf32>
    %89 = vector.multi_reduction <add>, %88, %cst_43 [1] : vector<8x8xf32> to vector<8xf32>
    %90 = vector.shape_cast %89 : vector<8xf32> to vector<8x1xf32>
    %91 = tpu.reciprocal %90 {approx = true} : vector<8x1xf32> -> vector<8x1xf32>
    %92 = vector.broadcast %91 : vector<8x1xf32> to vector<8x8xf32>
    %93 = arith.mulf %88, %92 : vector<8x8xf32>
    %94 = arith.truncf %93 : vector<8x8xf32> to vector<8x8xbf16>
    %cst_44 = arith.constant dense<0.000000e+00> : vector<8x8xf32>
    %95 = tpu.matmul %94, %80, %cst_44 {dimension_numbers = #tpu.dot_dimension_numbers<[1], [0], [0], [1], [0, 0, 1, 1], [], []>} : vector<8x8xbf16>, vector<8x8xbf16>, vector<8x8xf32> -> vector<8x8xf32>
    %c0_45 = arith.constant 0 : index
    %c16 = arith.constant 16 : index
    %96 = vector.load %arg34[%c0_45, %c16] : memref<8x32xf32, #tpu.memory_space<vmem>>, vector<8x8xf32>
    tpu.vector_store %arg34[%c0_45, %c16], %95 {strides = array<i32>} : memref<8x32xf32, #tpu.memory_space<vmem>>, vector<8x8xf32>,
    %97 = vector.extract_strided_slice %29 {offsets = [0, 24], sizes = [8, 8], strides = [1, 1]} : vector<8x32xf32> to vector<8x8xf32>
    %98 = arith.truncf %97 : vector<8x8xf32> to vector<8x8xbf16>
    %99 = vector.extract_strided_slice %30 {offsets = [0, 24], sizes = [8, 8], strides = [1, 1]} : vector<8x32xf32> to vector<8x8xf32>
    %100 = arith.truncf %99 : vector<8x8xf32> to vector<8x8xbf16>
    %101 = vector.extract_strided_slice %28 {offsets = [0, 24], sizes = [8, 8], strides = [1, 1]} : vector<8x32xf32> to vector<8x8xf32>
    %102 = arith.truncf %101 : vector<8x8xf32> to vector<8x8xbf16>
    %cst_46 = arith.constant dense<0.000000e+00> : vector<8x8xf32>
    %103 = tpu.matmul %98, %100, %cst_46 {dimension_numbers = #tpu.dot_dimension_numbers<[1], [1], [0], [0], [0, 0, 1, 0], [], []>} : vector<8x8xbf16>, vector<8x8xbf16>, vector<8x8xf32> -> vector<8x8xf32>
    %cst_47 = arith.constant 0.353553385 : f32
    %104 = vector.broadcast %cst_47 : f32 to vector<8x8xf32>
    %105 = arith.mulf %103, %104 : vector<8x8xf32>
    %cst_48 = arith.constant dense<0xFF800000> : vector<8xf32>
    %106 = vector.multi_reduction <maximumf>, %105, %cst_48 [1] : vector<8x8xf32> to vector<8xf32>
    %107 = vector.shape_cast %106 : vector<8xf32> to vector<8x1xf32>
    %108 = vector.broadcast %107 : vector<8x1xf32> to vector<8x8xf32>
    %109 = arith.subf %105, %108 : vector<8x8xf32>
    %110 = math.exp %109 : vector<8x8xf32>
    %cst_49 = arith.constant dense<0.000000e+00> : vector<8xf32>
    %111 = vector.multi_reduction <add>, %110, %cst_49 [1] : vector<8x8xf32> to vector<8xf32>
    %112 = vector.shape_cast %111 : vector<8xf32> to vector<8x1xf32>
    %113 = tpu.reciprocal %112 {approx = true} : vector<8x1xf32> -> vector<8x1xf32>
    %114 = vector.broadcast %113 : vector<8x1xf32> to vector<8x8xf32>
    %115 = arith.mulf %110, %114 : vector<8x8xf32>
    %116 = arith.truncf %115 : vector<8x8xf32> to vector<8x8xbf16>
    %cst_50 = arith.constant dense<0.000000e+00> : vector<8x8xf32>
    %117 = tpu.matmul %116, %102, %cst_50 {dimension_numbers = #tpu.dot_dimension_numbers<[1], [0], [0], [1], [0, 0, 1, 1], [], []>} : vector<8x8xbf16>, vector<8x8xbf16>, vector<8x8xf32> -> vector<8x8xf32>
    %c0_51 = arith.constant 0 : index
    %c24 = arith.constant 24 : index
    %118 = vector.load %arg34[%c0_51, %c24] : memref<8x32xf32, #tpu.memory_space<vmem>>, vector<8x8xf32>
    tpu.vector_store %arg34[%c0_51, %c24], %117 {strides = array<i32>} : memref<8x32xf32, #tpu.memory_space<vmem>>, vector<8x8xf32>,
    %c0_52 = arith.constant 0 : index
    %c0_53 = arith.constant 0 : index
    %119 = vector.load %arg34[%c0_52, %c0_53] : memref<8x32xf32, #tpu.memory_space<vmem>>, vector<8x32xf32>
    %120 = arith.truncf %119 : vector<8x32xf32> to vector<8x32xbf16>
    %c0_54 = arith.constant 0 : index
    %c0_55 = arith.constant 0 : index
    %c0_56 = arith.constant 0 : index
    %121 = vector.load %arg10[%c0_54, %c0_55, %c0_56] : memref<1x32x32xbf16, #tpu.memory_space<vmem>>, vector<1x32x32xbf16>
    %122 = vector.shape_cast %121 : vector<1x32x32xbf16> to vector<32x32xbf16>
    %cst_57 = arith.constant dense<0.000000e+00> : vector<8x32xf32>
    %123 = tpu.matmul %120, %122, %cst_57 {dimension_numbers = #tpu.dot_dimension_numbers<[1], [0], [0], [1], [0, 0, 1, 1], [], []>} : vector<8x32xbf16>, vector<32x32xbf16>, vector<8x32xf32> -> vector<8x32xf32>
    %c0_58 = arith.constant 0 : index
    %c0_59 = arith.constant 0 : index
    %c0_60 = arith.constant 0 : index
    %124 = vector.load %arg11[%c0_58, %c0_59, %c0_60] : memref<1x1x32xf32, #tpu.memory_space<vmem>>, vector<1x1x32xf32>
    %125 = vector.shape_cast %124 : vector<1x1x32xf32> to vector<1x32xf32>
    %126 = vector.broadcast %125 : vector<1x32xf32> to vector<8x32xf32>
    %127 = arith.addf %123, %126 : vector<8x32xf32>
    %128 = arith.addf %3, %127 : vector<8x32xf32>
    %cst_61 = arith.constant dense<0.000000e+00> : vector<8xf32>
    %129 = vector.multi_reduction <add>, %128, %cst_61 [1] : vector<8x32xf32> to vector<8xf32>
    %130 = vector.shape_cast %129 : vector<8xf32> to vector<8x1xf32>
    %cst_62 = arith.constant 3.200000e+01 : f32
    %131 = vector.broadcast %cst_62 : f32 to vector<8x1xf32>
    %132 = arith.divf %130, %131 : vector<8x1xf32>
    %133 = arith.mulf %128, %128 : vector<8x32xf32>
    %cst_63 = arith.constant dense<0.000000e+00> : vector<8xf32>
    %134 = vector.multi_reduction <add>, %133, %cst_63 [1] : vector<8x32xf32> to vector<8xf32>
    %135 = vector.shape_cast %134 : vector<8xf32> to vector<8x1xf32>
    %cst_64 = arith.constant 3.200000e+01 : f32
    %136 = vector.broadcast %cst_64 : f32 to vector<8x1xf32>
    %137 = arith.divf %135, %136 : vector<8x1xf32>
    %138 = arith.mulf %132, %132 : vector<8x1xf32>
    %139 = arith.subf %137, %138 : vector<8x1xf32>
    %140 = vector.broadcast %132 : vector<8x1xf32> to vector<8x32xf32>
    %141 = arith.subf %128, %140 : vector<8x32xf32>
    %cst_65 = arith.constant 9.99999974E-6 : f32
    %142 = vector.broadcast %cst_65 : f32 to vector<8x1xf32>
    %143 = arith.addf %139, %142 : vector<8x1xf32>
    %144 = math.rsqrt %143 : vector<8x1xf32>
    %145 = vector.broadcast %144 : vector<8x1xf32> to vector<8x32xf32>
    %146 = arith.mulf %141, %145 : vector<8x32xf32>
    %147 = vector.extract_strided_slice %9 {offsets = [0, 0], sizes = [1, 32], strides = [1, 1]} : vector<3x32xf32> to vector<1x32xf32>
    %148 = vector.broadcast %147 : vector<1x32xf32> to vector<8x32xf32>
    %149 = arith.mulf %146, %148 : vector<8x32xf32>
    %150 = vector.extract_strided_slice %11 {offsets = [0, 0], sizes = [1, 32], strides = [1, 1]} : vector<3x32xf32> to vector<1x32xf32>
    %151 = vector.broadcast %150 : vector<1x32xf32> to vector<8x32xf32>
    %152 = arith.addf %149, %151 : vector<8x32xf32>
    %153 = arith.addf %152, %5 : vector<8x32xf32>
    %154 = arith.truncf %153 : vector<8x32xf32> to vector<8x32xbf16>
    %c0_66 = arith.constant 0 : index
    %c0_67 = arith.constant 0 : index
    %c0_68 = arith.constant 0 : index
    %155 = vector.load %arg12[%c0_66, %c0_67, %c0_68] : memref<1x32x32xbf16, #tpu.memory_space<vmem>>, vector<1x32x32xbf16>
    %156 = vector.shape_cast %155 : vector<1x32x32xbf16> to vector<32x32xbf16>
    %cst_69 = arith.constant dense<0.000000e+00> : vector<8x32xf32>
    %157 = tpu.matmul %154, %156, %cst_69 {dimension_numbers = #tpu.dot_dimension_numbers<[1], [0], [0], [1], [0, 0, 1, 1], [], []>} : vector<8x32xbf16>, vector<32x32xbf16>, vector<8x32xf32> -> vector<8x32xf32>
    %c0_70 = arith.constant 0 : index
    %c0_71 = arith.constant 0 : index
    %c0_72 = arith.constant 0 : index
    %158 = vector.load %arg13[%c0_70, %c0_71, %c0_72] : memref<1x1x32xf32, #tpu.memory_space<vmem>>, vector<1x1x32xf32>
    %159 = vector.shape_cast %158 : vector<1x1x32xf32> to vector<1x32xf32>
    %160 = vector.broadcast %159 : vector<1x32xf32> to vector<8x32xf32>
    %161 = arith.addf %157, %160 : vector<8x32xf32>
    %c0_73 = arith.constant 0 : index
    %c0_74 = arith.constant 0 : index
    %c0_75 = arith.constant 0 : index
    %162 = vector.load %arg14[%c0_73, %c0_74, %c0_75] : memref<1x32x64xbf16, #tpu.memory_space<vmem>>, vector<1x32x64xbf16>
    %163 = vector.shape_cast %162 : vector<1x32x64xbf16> to vector<32x64xbf16>
    %cst_76 = arith.constant dense<0.000000e+00> : vector<16x64xf32>
    %164 = tpu.matmul %7, %163, %cst_76 {dimension_numbers = #tpu.dot_dimension_numbers<[1], [0], [0], [1], [0, 0, 1, 1], [], []>} : vector<16x32xbf16>, vector<32x64xbf16>, vector<16x64xf32> -> vector<16x64xf32>
    %c0_77 = arith.constant 0 : index
    %c0_78 = arith.constant 0 : index
    %c0_79 = arith.constant 0 : index
    %165 = vector.load %arg15[%c0_77, %c0_78, %c0_79] : memref<1x1x64xf32, #tpu.memory_space<vmem>>, vector<1x1x64xf32>
    %166 = vector.shape_cast %165 : vector<1x1x64xf32> to vector<1x64xf32>
    %167 = vector.broadcast %166 : vector<1x64xf32> to vector<16x64xf32>
    %168 = arith.addf %164, %167 : vector<16x64xf32>
    %169 = vector.extract_strided_slice %168 {offsets = [0, 0], sizes = [16, 32], strides = [1, 1]} : vector<16x64xf32> to vector<16x32xf32>
    %170 = vector.extract_strided_slice %168 {offsets = [0, 32], sizes = [16, 32], strides = [1, 1]} : vector<16x64xf32> to vector<16x32xf32>
    %171 = vector.extract_strided_slice %161 {offsets = [0, 0], sizes = [8, 8], strides = [1, 1]} : vector<8x32xf32> to vector<8x8xf32>
    %172 = arith.truncf %171 : vector<8x8xf32> to vector<8x8xbf16>
    %173 = vector.extract_strided_slice %169 {offsets = [0, 0], sizes = [16, 8], strides = [1, 1]} : vector<16x32xf32> to vector<16x8xf32>
    %174 = arith.truncf %173 : vector<16x8xf32> to vector<16x8xbf16>
    %175 = vector.extract_strided_slice %170 {offsets = [0, 0], sizes = [16, 8], strides = [1, 1]} : vector<16x32xf32> to vector<16x8xf32>
    %176 = arith.truncf %175 : vector<16x8xf32> to vector<16x8xbf16>
    %cst_80 = arith.constant dense<0.000000e+00> : vector<8x16xf32>
    %177 = tpu.matmul %172, %174, %cst_80 {dimension_numbers = #tpu.dot_dimension_numbers<[1], [1], [0], [0], [0, 0, 1, 0], [], []>} : vector<8x8xbf16>, vector<16x8xbf16>, vector<8x16xf32> -> vector<8x16xf32>
    %cst_81 = arith.constant 0.353553385 : f32
    %178 = vector.broadcast %cst_81 : f32 to vector<8x16xf32>
    %179 = arith.mulf %177, %178 : vector<8x16xf32>
    %cst_82 = arith.constant dense<0xFF800000> : vector<8xf32>
    %180 = vector.multi_reduction <maximumf>, %179, %cst_82 [1] : vector<8x16xf32> to vector<8xf32>
    %181 = vector.shape_cast %180 : vector<8xf32> to vector<8x1xf32>
    %182 = vector.broadcast %181 : vector<8x1xf32> to vector<8x16xf32>
    %183 = arith.subf %179, %182 : vector<8x16xf32>
    %184 = math.exp %183 : vector<8x16xf32>
    %cst_83 = arith.constant dense<0.000000e+00> : vector<8xf32>
    %185 = vector.multi_reduction <add>, %184, %cst_83 [1] : vector<8x16xf32> to vector<8xf32>
    %186 = vector.shape_cast %185 : vector<8xf32> to vector<8x1xf32>
    %187 = tpu.reciprocal %186 {approx = true} : vector<8x1xf32> -> vector<8x1xf32>
    %188 = vector.broadcast %187 : vector<8x1xf32> to vector<8x16xf32>
    %189 = arith.mulf %184, %188 : vector<8x16xf32>
    %190 = arith.truncf %189 : vector<8x16xf32> to vector<8x16xbf16>
    %cst_84 = arith.constant dense<0.000000e+00> : vector<8x8xf32>
    %191 = tpu.matmul %190, %176, %cst_84 {dimension_numbers = #tpu.dot_dimension_numbers<[1], [0], [0], [1], [0, 0, 1, 1], [], []>} : vector<8x16xbf16>, vector<16x8xbf16>, vector<8x8xf32> -> vector<8x8xf32>
    %c0_85 = arith.constant 0 : index
    %c0_86 = arith.constant 0 : index
    %192 = vector.load %arg34[%c0_85, %c0_86] : memref<8x32xf32, #tpu.memory_space<vmem>>, vector<8x8xf32>
    tpu.vector_store %arg34[%c0_85, %c0_86], %191 {strides = array<i32>} : memref<8x32xf32, #tpu.memory_space<vmem>>, vector<8x8xf32>,
    %193 = vector.extract_strided_slice %161 {offsets = [0, 8], sizes = [8, 8], strides = [1, 1]} : vector<8x32xf32> to vector<8x8xf32>
    %194 = arith.truncf %193 : vector<8x8xf32> to vector<8x8xbf16>
    %195 = vector.extract_strided_slice %169 {offsets = [0, 8], sizes = [16, 8], strides = [1, 1]} : vector<16x32xf32> to vector<16x8xf32>
    %196 = arith.truncf %195 : vector<16x8xf32> to vector<16x8xbf16>
    %197 = vector.extract_strided_slice %170 {offsets = [0, 8], sizes = [16, 8], strides = [1, 1]} : vector<16x32xf32> to vector<16x8xf32>
    %198 = arith.truncf %197 : vector<16x8xf32> to vector<16x8xbf16>
    %cst_87 = arith.constant dense<0.000000e+00> : vector<8x16xf32>
    %199 = tpu.matmul %194, %196, %cst_87 {dimension_numbers = #tpu.dot_dimension_numbers<[1], [1], [0], [0], [0, 0, 1, 0], [], []>} : vector<8x8xbf16>, vector<16x8xbf16>, vector<8x16xf32> -> vector<8x16xf32>
    %cst_88 = arith.constant 0.353553385 : f32
    %200 = vector.broadcast %cst_88 : f32 to vector<8x16xf32>
    %201 = arith.mulf %199, %200 : vector<8x16xf32>
    %cst_89 = arith.constant dense<0xFF800000> : vector<8xf32>
    %202 = vector.multi_reduction <maximumf>, %201, %cst_89 [1] : vector<8x16xf32> to vector<8xf32>
    %203 = vector.shape_cast %202 : vector<8xf32> to vector<8x1xf32>
    %204 = vector.broadcast %203 : vector<8x1xf32> to vector<8x16xf32>
    %205 = arith.subf %201, %204 : vector<8x16xf32>
    %206 = math.exp %205 : vector<8x16xf32>
    %cst_90 = arith.constant dense<0.000000e+00> : vector<8xf32>
    %207 = vector.multi_reduction <add>, %206, %cst_90 [1] : vector<8x16xf32> to vector<8xf32>
    %208 = vector.shape_cast %207 : vector<8xf32> to vector<8x1xf32>
    %209 = tpu.reciprocal %208 {approx = true} : vector<8x1xf32> -> vector<8x1xf32>
    %210 = vector.broadcast %209 : vector<8x1xf32> to vector<8x16xf32>
    %211 = arith.mulf %206, %210 : vector<8x16xf32>
    %212 = arith.truncf %211 : vector<8x16xf32> to vector<8x16xbf16>
    %cst_91 = arith.constant dense<0.000000e+00> : vector<8x8xf32>
    %213 = tpu.matmul %212, %198, %cst_91 {dimension_numbers = #tpu.dot_dimension_numbers<[1], [0], [0], [1], [0, 0, 1, 1], [], []>} : vector<8x16xbf16>, vector<16x8xbf16>, vector<8x8xf32> -> vector<8x8xf32>
    %c0_92 = arith.constant 0 : index
    %c8_93 = arith.constant 8 : index
    %214 = vector.load %arg34[%c0_92, %c8_93] : memref<8x32xf32, #tpu.memory_space<vmem>>, vector<8x8xf32>
    tpu.vector_store %arg34[%c0_92, %c8_93], %213 {strides = array<i32>} : memref<8x32xf32, #tpu.memory_space<vmem>>, vector<8x8xf32>,
    %215 = vector.extract_strided_slice %161 {offsets = [0, 16], sizes = [8, 8], strides = [1, 1]} : vector<8x32xf32> to vector<8x8xf32>
    %216 = arith.truncf %215 : vector<8x8xf32> to vector<8x8xbf16>
    %217 = vector.extract_strided_slice %169 {offsets = [0, 16], sizes = [16, 8], strides = [1, 1]} : vector<16x32xf32> to vector<16x8xf32>
    %218 = arith.truncf %217 : vector<16x8xf32> to vector<16x8xbf16>
    %219 = vector.extract_strided_slice %170 {offsets = [0, 16], sizes = [16, 8], strides = [1, 1]} : vector<16x32xf32> to vector<16x8xf32>
    %220 = arith.truncf %219 : vector<16x8xf32> to vector<16x8xbf16>
    %cst_94 = arith.constant dense<0.000000e+00> : vector<8x16xf32>
    %221 = tpu.matmul %216, %218, %cst_94 {dimension_numbers = #tpu.dot_dimension_numbers<[1], [1], [0], [0], [0, 0, 1, 0], [], []>} : vector<8x8xbf16>, vector<16x8xbf16>, vector<8x16xf32> -> vector<8x16xf32>
    %cst_95 = arith.constant 0.353553385 : f32
    %222 = vector.broadcast %cst_95 : f32 to vector<8x16xf32>
    %223 = arith.mulf %221, %222 : vector<8x16xf32>
    %cst_96 = arith.constant dense<0xFF800000> : vector<8xf32>
    %224 = vector.multi_reduction <maximumf>, %223, %cst_96 [1] : vector<8x16xf32> to vector<8xf32>
    %225 = vector.shape_cast %224 : vector<8xf32> to vector<8x1xf32>
    %226 = vector.broadcast %225 : vector<8x1xf32> to vector<8x16xf32>
    %227 = arith.subf %223, %226 : vector<8x16xf32>
    %228 = math.exp %227 : vector<8x16xf32>
    %cst_97 = arith.constant dense<0.000000e+00> : vector<8xf32>
    %229 = vector.multi_reduction <add>, %228, %cst_97 [1] : vector<8x16xf32> to vector<8xf32>
    %230 = vector.shape_cast %229 : vector<8xf32> to vector<8x1xf32>
    %231 = tpu.reciprocal %230 {approx = true} : vector<8x1xf32> -> vector<8x1xf32>
    %232 = vector.broadcast %231 : vector<8x1xf32> to vector<8x16xf32>
    %233 = arith.mulf %228, %232 : vector<8x16xf32>
    %234 = arith.truncf %233 : vector<8x16xf32> to vector<8x16xbf16>
    %cst_98 = arith.constant dense<0.000000e+00> : vector<8x8xf32>
    %235 = tpu.matmul %234, %220, %cst_98 {dimension_numbers = #tpu.dot_dimension_numbers<[1], [0], [0], [1], [0, 0, 1, 1], [], []>} : vector<8x16xbf16>, vector<16x8xbf16>, vector<8x8xf32> -> vector<8x8xf32>
    %c0_99 = arith.constant 0 : index
    %c16_100 = arith.constant 16 : index
    %236 = vector.load %arg34[%c0_99, %c16_100] : memref<8x32xf32, #tpu.memory_space<vmem>>, vector<8x8xf32>
    tpu.vector_store %arg34[%c0_99, %c16_100], %235 {strides = array<i32>} : memref<8x32xf32, #tpu.memory_space<vmem>>, vector<8x8xf32>,
    %237 = vector.extract_strided_slice %161 {offsets = [0, 24], sizes = [8, 8], strides = [1, 1]} : vector<8x32xf32> to vector<8x8xf32>
    %238 = arith.truncf %237 : vector<8x8xf32> to vector<8x8xbf16>
    %239 = vector.extract_strided_slice %169 {offsets = [0, 24], sizes = [16, 8], strides = [1, 1]} : vector<16x32xf32> to vector<16x8xf32>
    %240 = arith.truncf %239 : vector<16x8xf32> to vector<16x8xbf16>
    %241 = vector.extract_strided_slice %170 {offsets = [0, 24], sizes = [16, 8], strides = [1, 1]} : vector<16x32xf32> to vector<16x8xf32>
    %242 = arith.truncf %241 : vector<16x8xf32> to vector<16x8xbf16>
    %cst_101 = arith.constant dense<0.000000e+00> : vector<8x16xf32>
    %243 = tpu.matmul %238, %240, %cst_101 {dimension_numbers = #tpu.dot_dimension_numbers<[1], [1], [0], [0], [0, 0, 1, 0], [], []>} : vector<8x8xbf16>, vector<16x8xbf16>, vector<8x16xf32> -> vector<8x16xf32>
    %cst_102 = arith.constant 0.353553385 : f32
    %244 = vector.broadcast %cst_102 : f32 to vector<8x16xf32>
    %245 = arith.mulf %243, %244 : vector<8x16xf32>
    %cst_103 = arith.constant dense<0xFF800000> : vector<8xf32>
    %246 = vector.multi_reduction <maximumf>, %245, %cst_103 [1] : vector<8x16xf32> to vector<8xf32>
    %247 = vector.shape_cast %246 : vector<8xf32> to vector<8x1xf32>
    %248 = vector.broadcast %247 : vector<8x1xf32> to vector<8x16xf32>
    %249 = arith.subf %245, %248 : vector<8x16xf32>
    %250 = math.exp %249 : vector<8x16xf32>
    %cst_104 = arith.constant dense<0.000000e+00> : vector<8xf32>
    %251 = vector.multi_reduction <add>, %250, %cst_104 [1] : vector<8x16xf32> to vector<8xf32>
    %252 = vector.shape_cast %251 : vector<8xf32> to vector<8x1xf32>
    %253 = tpu.reciprocal %252 {approx = true} : vector<8x1xf32> -> vector<8x1xf32>
    %254 = vector.broadcast %253 : vector<8x1xf32> to vector<8x16xf32>
    %255 = arith.mulf %250, %254 : vector<8x16xf32>
    %256 = arith.truncf %255 : vector<8x16xf32> to vector<8x16xbf16>
    %cst_105 = arith.constant dense<0.000000e+00> : vector<8x8xf32>
    %257 = tpu.matmul %256, %242, %cst_105 {dimension_numbers = #tpu.dot_dimension_numbers<[1], [0], [0], [1], [0, 0, 1, 1], [], []>} : vector<8x16xbf16>, vector<16x8xbf16>, vector<8x8xf32> -> vector<8x8xf32>
    %c0_106 = arith.constant 0 : index
    %c24_107 = arith.constant 24 : index
    %258 = vector.load %arg34[%c0_106, %c24_107] : memref<8x32xf32, #tpu.memory_space<vmem>>, vector<8x8xf32>
    tpu.vector_store %arg34[%c0_106, %c24_107], %257 {strides = array<i32>} : memref<8x32xf32, #tpu.memory_space<vmem>>, vector<8x8xf32>,
    %c0_108 = arith.constant 0 : index
    %c0_109 = arith.constant 0 : index
    %259 = vector.load %arg34[%c0_108, %c0_109] : memref<8x32xf32, #tpu.memory_space<vmem>>, vector<8x32xf32>
    %260 = arith.truncf %259 : vector<8x32xf32> to vector<8x32xbf16>
    %c0_110 = arith.constant 0 : index
    %c0_111 = arith.constant 0 : index
    %c0_112 = arith.constant 0 : index
    %261 = vector.load %arg16[%c0_110, %c0_111, %c0_112] : memref<1x32x32xbf16, #tpu.memory_space<vmem>>, vector<1x32x32xbf16>
    %262 = vector.shape_cast %261 : vector<1x32x32xbf16> to vector<32x32xbf16>
    %cst_113 = arith.constant dense<0.000000e+00> : vector<8x32xf32>
    %263 = tpu.matmul %260, %262, %cst_113 {dimension_numbers = #tpu.dot_dimension_numbers<[1], [0], [0], [1], [0, 0, 1, 1], [], []>} : vector<8x32xbf16>, vector<32x32xbf16>, vector<8x32xf32> -> vector<8x32xf32>
    %c0_114 = arith.constant 0 : index
    %c0_115 = arith.constant 0 : index
    %c0_116 = arith.constant 0 : index
    %264 = vector.load %arg17[%c0_114, %c0_115, %c0_116] : memref<1x1x32xf32, #tpu.memory_space<vmem>>, vector<1x1x32xf32>
    %265 = vector.shape_cast %264 : vector<1x1x32xf32> to vector<1x32xf32>
    %266 = vector.broadcast %265 : vector<1x32xf32> to vector<8x32xf32>
    %267 = arith.addf %263, %266 : vector<8x32xf32>
    %268 = arith.addf %152, %267 : vector<8x32xf32>
    %cst_117 = arith.constant dense<0.000000e+00> : vector<8xf32>
    %269 = vector.multi_reduction <add>, %268, %cst_117 [1] : vector<8x32xf32> to vector<8xf32>
    %270 = vector.shape_cast %269 : vector<8xf32> to vector<8x1xf32>
    %cst_118 = arith.constant 3.200000e+01 : f32
    %271 = vector.broadcast %cst_118 : f32 to vector<8x1xf32>
    %272 = arith.divf %270, %271 : vector<8x1xf32>
    %273 = arith.mulf %268, %268 : vector<8x32xf32>
    %cst_119 = arith.constant dense<0.000000e+00> : vector<8xf32>
    %274 = vector.multi_reduction <add>, %273, %cst_119 [1] : vector<8x32xf32> to vector<8xf32>
    %275 = vector.shape_cast %274 : vector<8xf32> to vector<8x1xf32>
    %cst_120 = arith.constant 3.200000e+01 : f32
    %276 = vector.broadcast %cst_120 : f32 to vector<8x1xf32>
    %277 = arith.divf %275, %276 : vector<8x1xf32>
    %278 = arith.mulf %272, %272 : vector<8x1xf32>
    %279 = arith.subf %277, %278 : vector<8x1xf32>
    %280 = vector.broadcast %272 : vector<8x1xf32> to vector<8x32xf32>
    %281 = arith.subf %268, %280 : vector<8x32xf32>
    %cst_121 = arith.constant 9.99999974E-6 : f32
    %282 = vector.broadcast %cst_121 : f32 to vector<8x1xf32>
    %283 = arith.addf %279, %282 : vector<8x1xf32>
    %284 = math.rsqrt %283 : vector<8x1xf32>
    %285 = vector.broadcast %284 : vector<8x1xf32> to vector<8x32xf32>
    %286 = arith.mulf %281, %285 : vector<8x32xf32>
    %287 = vector.extract_strided_slice %9 {offsets = [1, 0], sizes = [1, 32], strides = [1, 1]} : vector<3x32xf32> to vector<1x32xf32>
    %288 = vector.broadcast %287 : vector<1x32xf32> to vector<8x32xf32>
    %289 = arith.mulf %286, %288 : vector<8x32xf32>
    %290 = vector.extract_strided_slice %11 {offsets = [1, 0], sizes = [1, 32], strides = [1, 1]} : vector<3x32xf32> to vector<1x32xf32>
    %291 = vector.broadcast %290 : vector<1x32xf32> to vector<8x32xf32>
    %292 = arith.addf %289, %291 : vector<8x32xf32>
    %293 = arith.truncf %292 : vector<8x32xf32> to vector<8x32xbf16>
    %c0_122 = arith.constant 0 : index
    %c0_123 = arith.constant 0 : index
    %c0_124 = arith.constant 0 : index
    %294 = vector.load %arg20[%c0_122, %c0_123, %c0_124] : memref<1x32x64xbf16, #tpu.memory_space<vmem>>, vector<1x32x64xbf16>
    %295 = vector.shape_cast %294 : vector<1x32x64xbf16> to vector<32x64xbf16>
    %cst_125 = arith.constant dense<0.000000e+00> : vector<8x64xf32>
    %296 = tpu.matmul %293, %295, %cst_125 {dimension_numbers = #tpu.dot_dimension_numbers<[1], [0], [0], [1], [0, 0, 1, 1], [], []>} : vector<8x32xbf16>, vector<32x64xbf16>, vector<8x64xf32> -> vector<8x64xf32>
    %c0_126 = arith.constant 0 : index
    %c0_127 = arith.constant 0 : index
    %c0_128 = arith.constant 0 : index
    %297 = vector.load %arg21[%c0_126, %c0_127, %c0_128] : memref<1x1x64xf32, #tpu.memory_space<vmem>>, vector<1x1x64xf32>
    %298 = vector.shape_cast %297 : vector<1x1x64xf32> to vector<1x64xf32>
    %299 = vector.broadcast %298 : vector<1x64xf32> to vector<8x64xf32>
    %300 = arith.addf %296, %299 : vector<8x64xf32>
    %cst_129 = arith.constant 0.000000e+00 : f32
    %301 = vector.broadcast %cst_129 : f32 to vector<8x64xf32>
    %302 = arith.maximumf %300, %301 : vector<8x64xf32>
    %303 = arith.truncf %302 : vector<8x64xf32> to vector<8x64xbf16>
    %c0_130 = arith.constant 0 : index
    %c0_131 = arith.constant 0 : index
    %c0_132 = arith.constant 0 : index
    %304 = vector.load %arg22[%c0_130, %c0_131, %c0_132] : memref<1x64x32xbf16, #tpu.memory_space<vmem>>, vector<1x64x32xbf16>
    %305 = vector.shape_cast %304 : vector<1x64x32xbf16> to vector<64x32xbf16>
    %cst_133 = arith.constant dense<0.000000e+00> : vector<8x32xf32>
    %306 = tpu.matmul %303, %305, %cst_133 {dimension_numbers = #tpu.dot_dimension_numbers<[1], [0], [0], [1], [0, 0, 1, 1], [], []>} : vector<8x64xbf16>, vector<64x32xbf16>, vector<8x32xf32> -> vector<8x32xf32>
    %c0_134 = arith.constant 0 : index
    %c0_135 = arith.constant 0 : index
    %c0_136 = arith.constant 0 : index
    %307 = vector.load %arg23[%c0_134, %c0_135, %c0_136] : memref<1x1x32xf32, #tpu.memory_space<vmem>>, vector<1x1x32xf32>
    %308 = vector.shape_cast %307 : vector<1x1x32xf32> to vector<1x32xf32>
    %309 = vector.broadcast %308 : vector<1x32xf32> to vector<8x32xf32>
    %310 = arith.addf %306, %309 : vector<8x32xf32>
    %311 = arith.addf %292, %310 : vector<8x32xf32>
    %cst_137 = arith.constant dense<0.000000e+00> : vector<8xf32>
    %312 = vector.multi_reduction <add>, %311, %cst_137 [1] : vector<8x32xf32> to vector<8xf32>
    %313 = vector.shape_cast %312 : vector<8xf32> to vector<8x1xf32>
    %cst_138 = arith.constant 3.200000e+01 : f32
    %314 = vector.broadcast %cst_138 : f32 to vector<8x1xf32>
    %315 = arith.divf %313, %314 : vector<8x1xf32>
    %316 = arith.mulf %311, %311 : vector<8x32xf32>
    %cst_139 = arith.constant dense<0.000000e+00> : vector<8xf32>
    %317 = vector.multi_reduction <add>, %316, %cst_139 [1] : vector<8x32xf32> to vector<8xf32>
    %318 = vector.shape_cast %317 : vector<8xf32> to vector<8x1xf32>
    %cst_140 = arith.constant 3.200000e+01 : f32
    %319 = vector.broadcast %cst_140 : f32 to vector<8x1xf32>
    %320 = arith.divf %318, %319 : vector<8x1xf32>
    %321 = arith.mulf %315, %315 : vector<8x1xf32>
    %322 = arith.subf %320, %321 : vector<8x1xf32>
    %323 = vector.broadcast %315 : vector<8x1xf32> to vector<8x32xf32>
    %324 = arith.subf %311, %323 : vector<8x32xf32>
    %cst_141 = arith.constant 9.99999974E-6 : f32
    %325 = vector.broadcast %cst_141 : f32 to vector<8x1xf32>
    %326 = arith.addf %322, %325 : vector<8x1xf32>
    %327 = math.rsqrt %326 : vector<8x1xf32>
    %328 = vector.broadcast %327 : vector<8x1xf32> to vector<8x32xf32>
    %329 = arith.mulf %324, %328 : vector<8x32xf32>
    %330 = vector.extract_strided_slice %9 {offsets = [2, 0], sizes = [1, 32], strides = [1, 1]} : vector<3x32xf32> to vector<1x32xf32>
    %331 = vector.broadcast %330 : vector<1x32xf32> to vector<8x32xf32>
    %332 = arith.mulf %329, %331 : vector<8x32xf32>
    %333 = vector.extract_strided_slice %11 {offsets = [2, 0], sizes = [1, 32], strides = [1, 1]} : vector<3x32xf32> to vector<1x32xf32>
    %334 = vector.broadcast %333 : vector<1x32xf32> to vector<8x32xf32>
    %335 = arith.addf %332, %334 : vector<8x32xf32>
    %c0_142 = arith.constant 0 : index
    %c0_143 = arith.constant 0 : index
    %336 = vector.load %arg32[%c0_142, %c0_143] : memref<8x32xf32, #tpu.memory_space<vmem>>, vector<8x32xf32>
    tpu.vector_store %arg32[%c0_142, %c0_143], %335 {strides = array<i32>} : memref<8x32xf32, #tpu.memory_space<vmem>>, vector<8x32xf32>,
    %c0_144 = arith.constant 0 : index
    %c0_145 = arith.constant 0 : index
    %c0_146 = arith.constant 0 : index
    %c0_147 = arith.constant 0 : index
    %337 = vector.load %arg30[%c0_144, %c0_145, %c0_146, %c0_147] : memref<1x1x8x32xf32, #tpu.memory_space<vmem>>, vector<1x1x8x32xf32>
    %338 = vector.shape_cast %337 : vector<1x1x8x32xf32> to vector<8x32xf32>
    %339 = vector.shape_cast %335 : vector<8x32xf32> to vector<1x1x8x32xf32>
    tpu.vector_store %arg30[%c0_144, %c0_145, %c0_146, %c0_147], %339 {strides = array<i32>} : memref<1x1x8x32xf32, #tpu.memory_space<vmem>>, vector<1x1x8x32xf32>,
    %c0_148 = arith.constant 0 : index
    %c0_149 = arith.constant 0 : index
    %340 = vector.load %arg33[%c0_148, %c0_149] : memref<8x7xf32, #tpu.memory_space<vmem>>, vector<8x7xf32>
    %341 = arith.truncf %335 : vector<8x32xf32> to vector<8x32xbf16>
    %c0_150 = arith.constant 0 : index
    %c0_151 = arith.constant 0 : index
    %342 = vector.load %arg24[%c0_150, %c0_151] : memref<32x32xbf16, #tpu.memory_space<vmem>>, vector<32x32xbf16>
    %cst_152 = arith.constant dense<0.000000e+00> : vector<8x32xf32>
    %343 = tpu.matmul %341, %342, %cst_152 {dimension_numbers = #tpu.dot_dimension_numbers<[1], [0], [0], [1], [0, 0, 1, 1], [], []>} : vector<8x32xbf16>, vector<32x32xbf16>, vector<8x32xf32> -> vector<8x32xf32>
    %c0_153 = arith.constant 0 : index
    %c0_154 = arith.constant 0 : index
    %344 = vector.load %arg25[%c0_153, %c0_154] : memref<1x32xf32, #tpu.memory_space<vmem>>, vector<1x32xf32>
    %345 = vector.broadcast %344 : vector<1x32xf32> to vector<8x32xf32>
    %346 = arith.addf %343, %345 : vector<8x32xf32>
    %cst_155 = arith.constant 0.000000e+00 : f32
    %347 = vector.broadcast %cst_155 : f32 to vector<8x32xf32>
    %348 = arith.maximumf %346, %347 : vector<8x32xf32>
    %349 = arith.truncf %348 : vector<8x32xf32> to vector<8x32xbf16>
    %c0_156 = arith.constant 0 : index
    %c0_157 = arith.constant 0 : index
    %350 = vector.load %arg26[%c0_156, %c0_157] : memref<32x32xbf16, #tpu.memory_space<vmem>>, vector<32x32xbf16>
    %cst_158 = arith.constant dense<0.000000e+00> : vector<8x32xf32>
    %351 = tpu.matmul %349, %350, %cst_158 {dimension_numbers = #tpu.dot_dimension_numbers<[1], [0], [0], [1], [0, 0, 1, 1], [], []>} : vector<8x32xbf16>, vector<32x32xbf16>, vector<8x32xf32> -> vector<8x32xf32>
    %c0_159 = arith.constant 0 : index
    %c0_160 = arith.constant 0 : index
    %352 = vector.load %arg27[%c0_159, %c0_160] : memref<1x32xf32, #tpu.memory_space<vmem>>, vector<1x32xf32>
    %353 = vector.broadcast %352 : vector<1x32xf32> to vector<8x32xf32>
    %354 = arith.addf %351, %353 : vector<8x32xf32>
    %cst_161 = arith.constant 0.000000e+00 : f32
    %355 = vector.broadcast %cst_161 : f32 to vector<8x32xf32>
    %356 = arith.maximumf %354, %355 : vector<8x32xf32>
    %357 = arith.truncf %356 : vector<8x32xf32> to vector<8x32xbf16>
    %c0_162 = arith.constant 0 : index
    %c0_163 = arith.constant 0 : index
    %358 = vector.load %arg28[%c0_162, %c0_163] : memref<32x7xbf16, #tpu.memory_space<vmem>>, vector<32x7xbf16>
    %cst_164 = arith.constant dense<0.000000e+00> : vector<8x7xf32>
    %359 = tpu.matmul %357, %358, %cst_164 {dimension_numbers = #tpu.dot_dimension_numbers<[1], [0], [0], [1], [0, 0, 1, 1], [], []>} : vector<8x32xbf16>, vector<32x7xbf16>, vector<8x7xf32> -> vector<8x7xf32>
    %c0_165 = arith.constant 0 : index
    %c0_166 = arith.constant 0 : index
    %360 = vector.load %arg29[%c0_165, %c0_166] : memref<1x7xf32, #tpu.memory_space<vmem>>, vector<1x7xf32>
    %361 = vector.broadcast %360 : vector<1x7xf32> to vector<8x7xf32>
    %362 = arith.addf %359, %361 : vector<8x7xf32>
    %363 = arith.addf %340, %362 : vector<8x7xf32>
    %c0_167 = arith.constant 0 : index
    %c0_168 = arith.constant 0 : index
    %364 = vector.load %arg33[%c0_167, %c0_168] : memref<8x7xf32, #tpu.memory_space<vmem>>, vector<8x7xf32>
    tpu.vector_store %arg33[%c0_167, %c0_168], %363 {strides = array<i32>} : memref<8x7xf32, #tpu.memory_space<vmem>>, vector<8x7xf32>,
    %c0_169 = arith.constant 0 : index
    %c0_170 = arith.constant 0 : index
    %c0_171 = arith.constant 0 : index
    %c0_172 = arith.constant 0 : index
    %365 = vector.load %arg31[%c0_169, %c0_170, %c0_171, %c0_172] : memref<1x1x8x7xf32, #tpu.memory_space<vmem>>, vector<1x1x8x7xf32>
    %366 = vector.shape_cast %365 : vector<1x1x8x7xf32> to vector<8x7xf32>
    %367 = vector.shape_cast %363 : vector<8x7xf32> to vector<1x1x8x7xf32>
    tpu.vector_store %arg31[%c0_169, %c0_170, %c0_171, %c0_172], %367 {strides = array<i32>} : memref<1x1x8x7xf32, #tpu.memory_space<vmem>>, vector<1x1x8x7xf32>,
    return
  }
  func.func @transform_0(%arg0: i32, %arg1: i32) -> (i32, i32, i32) {
    %c0_i32 = arith.constant 0 : i32
    %c0_i32_0 = arith.constant 0 : i32
    %c0_i32_1 = arith.constant 0 : i32
    return %arg0, %c0_i32, %c0_i32_0 : i32, i32, i32
  }
  func.func @transform_1(%arg0: i32, %arg1: i32) -> (i32, i32, i32) {
    %c0_i32 = arith.constant 0 : i32
    %c0_i32_0 = arith.constant 0 : i32
    %c0_i32_1 = arith.constant 0 : i32
    return %arg0, %c0_i32, %c0_i32_0 : i32, i32, i32
  }
  func.func @transform_2(%arg0: i32, %arg1: i32) -> (i32, i32, i32) {
    %c0_i32 = arith.constant 0 : i32
    %c0_i32_0 = arith.constant 0 : i32
    %c0_i32_1 = arith.constant 0 : i32
    return %arg0, %c0_i32, %c0_i32_0 : i32, i32, i32
  }
  func.func @transform_3(%arg0: i32, %arg1: i32) -> (i32, i32, i32) {
    %c0_i32 = arith.constant 0 : i32
    %c0_i32_0 = arith.constant 0 : i32
    %c0_i32_1 = arith.constant 0 : i32
    return %arg0, %c0_i32, %c0_i32_0 : i32, i32, i32
  }
  func.func @transform_4(%arg0: i32, %arg1: i32) -> (i32, i32, i32) {
    %c0_i32 = arith.constant 0 : i32
    %c0_i32_0 = arith.constant 0 : i32
    %c0_i32_1 = arith.constant 0 : i32
    return %arg1, %c0_i32, %c0_i32_0 : i32, i32, i32
  }
  func.func @transform_5(%arg0: i32, %arg1: i32) -> (i32, i32, i32) {
    %c0_i32 = arith.constant 0 : i32
    %c0_i32_0 = arith.constant 0 : i32
    %c0_i32_1 = arith.constant 0 : i32
    return %arg1, %c0_i32, %c0_i32_0 : i32, i32, i32
  }
  func.func @transform_6(%arg0: i32, %arg1: i32) -> (i32, i32, i32) {
    %c0_i32 = arith.constant 0 : i32
    %c0_i32_0 = arith.constant 0 : i32
    %c0_i32_1 = arith.constant 0 : i32
    return %arg1, %c0_i32, %c0_i32_0 : i32, i32, i32
  }
  func.func @transform_7(%arg0: i32, %arg1: i32) -> (i32, i32, i32) {
    %c0_i32 = arith.constant 0 : i32
    %c0_i32_0 = arith.constant 0 : i32
    %c0_i32_1 = arith.constant 0 : i32
    return %arg1, %c0_i32, %c0_i32_0 : i32, i32, i32
  }
  func.func @transform_8(%arg0: i32, %arg1: i32) -> (i32, i32, i32) {
    %c0_i32 = arith.constant 0 : i32
    %c0_i32_0 = arith.constant 0 : i32
    %c0_i32_1 = arith.constant 0 : i32
    return %arg1, %c0_i32, %c0_i32_0 : i32, i32, i32
  }
  func.func @transform_9(%arg0: i32, %arg1: i32) -> (i32, i32, i32) {
    %c0_i32 = arith.constant 0 : i32
    %c0_i32_0 = arith.constant 0 : i32
    %c0_i32_1 = arith.constant 0 : i32
    return %arg1, %c0_i32, %c0_i32_0 : i32, i32, i32
  }
  func.func @transform_10(%arg0: i32, %arg1: i32) -> (i32, i32, i32) {
    %c0_i32 = arith.constant 0 : i32
    %c0_i32_0 = arith.constant 0 : i32
    %c0_i32_1 = arith.constant 0 : i32
    return %arg1, %c0_i32, %c0_i32_0 : i32, i32, i32
  }
  func.func @transform_11(%arg0: i32, %arg1: i32) -> (i32, i32, i32) {
    %c0_i32 = arith.constant 0 : i32
    %c0_i32_0 = arith.constant 0 : i32
    %c0_i32_1 = arith.constant 0 : i32
    return %arg1, %c0_i32, %c0_i32_0 : i32, i32, i32
  }
  func.func @transform_12(%arg0: i32, %arg1: i32) -> (i32, i32, i32) {
    %c0_i32 = arith.constant 0 : i32
    %c0_i32_0 = arith.constant 0 : i32
    %c0_i32_1 = arith.constant 0 : i32
    return %arg1, %c0_i32, %c0_i32_0 : i32, i32, i32
  }
  func.func @transform_13(%arg0: i32, %arg1: i32) -> (i32, i32, i32) {
    %c0_i32 = arith.constant 0 : i32
    %c0_i32_0 = arith.constant 0 : i32
    %c0_i32_1 = arith.constant 0 : i32
    return %arg1, %c0_i32, %c0_i32_0 : i32, i32, i32
  }
  func.func @transform_14(%arg0: i32, %arg1: i32) -> (i32, i32, i32) {
    %c0_i32 = arith.constant 0 : i32
    %c0_i32_0 = arith.constant 0 : i32
    %c0_i32_1 = arith.constant 0 : i32
    return %arg1, %c0_i32, %c0_i32_0 : i32, i32, i32
  }
  func.func @transform_15(%arg0: i32, %arg1: i32) -> (i32, i32, i32) {
    %c0_i32 = arith.constant 0 : i32
    %c0_i32_0 = arith.constant 0 : i32
    %c0_i32_1 = arith.constant 0 : i32
    return %arg1, %c0_i32, %c0_i32_0 : i32, i32, i32
  }
  func.func @transform_16(%arg0: i32, %arg1: i32) -> (i32, i32, i32) {
    %c0_i32 = arith.constant 0 : i32
    %c0_i32_0 = arith.constant 0 : i32
    %c0_i32_1 = arith.constant 0 : i32
    return %arg1, %c0_i32, %c0_i32_0 : i32, i32, i32
  }
  func.func @transform_17(%arg0: i32, %arg1: i32) -> (i32, i32, i32) {
    %c0_i32 = arith.constant 0 : i32
    %c0_i32_0 = arith.constant 0 : i32
    %c0_i32_1 = arith.constant 0 : i32
    return %arg1, %c0_i32, %c0_i32_0 : i32, i32, i32
  }
  func.func @transform_18(%arg0: i32, %arg1: i32) -> (i32, i32, i32) {
    %c0_i32 = arith.constant 0 : i32
    %c0_i32_0 = arith.constant 0 : i32
    %c0_i32_1 = arith.constant 0 : i32
    return %arg1, %c0_i32, %c0_i32_0 : i32, i32, i32
  }
  func.func @transform_19(%arg0: i32, %arg1: i32) -> (i32, i32, i32) {
    %c0_i32 = arith.constant 0 : i32
    %c0_i32_0 = arith.constant 0 : i32
    %c0_i32_1 = arith.constant 0 : i32
    return %arg1, %c0_i32, %c0_i32_0 : i32, i32, i32
  }
  func.func @transform_20(%arg0: i32, %arg1: i32) -> (i32, i32, i32) {
    %c0_i32 = arith.constant 0 : i32
    %c0_i32_0 = arith.constant 0 : i32
    %c0_i32_1 = arith.constant 0 : i32
    return %arg1, %c0_i32, %c0_i32_0 : i32, i32, i32
  }
  func.func @transform_21(%arg0: i32, %arg1: i32) -> (i32, i32, i32) {
    %c0_i32 = arith.constant 0 : i32
    %c0_i32_0 = arith.constant 0 : i32
    %c0_i32_1 = arith.constant 0 : i32
    return %arg1, %c0_i32, %c0_i32_0 : i32, i32, i32
  }
  func.func @transform_22(%arg0: i32, %arg1: i32) -> (i32, i32) {
    %c0_i32 = arith.constant 0 : i32
    %c0_i32_0 = arith.constant 0 : i32
    %c0_i32_1 = arith.constant 0 : i32
    return %c0_i32, %c0_i32_0 : i32, i32
  }
  func.func @transform_23(%arg0: i32, %arg1: i32) -> (i32, i32) {
    %c0_i32 = arith.constant 0 : i32
    %c0_i32_0 = arith.constant 0 : i32
    %c0_i32_1 = arith.constant 0 : i32
    return %c0_i32, %c0_i32_0 : i32, i32
  }
  func.func @transform_24(%arg0: i32, %arg1: i32) -> (i32, i32) {
    %c0_i32 = arith.constant 0 : i32
    %c0_i32_0 = arith.constant 0 : i32
    %c0_i32_1 = arith.constant 0 : i32
    return %c0_i32, %c0_i32_0 : i32, i32
  }
  func.func @transform_25(%arg0: i32, %arg1: i32) -> (i32, i32) {
    %c0_i32 = arith.constant 0 : i32
    %c0_i32_0 = arith.constant 0 : i32
    %c0_i32_1 = arith.constant 0 : i32
    return %c0_i32, %c0_i32_0 : i32, i32
  }
  func.func @transform_26(%arg0: i32, %arg1: i32) -> (i32, i32) {
    %c0_i32 = arith.constant 0 : i32
    %c0_i32_0 = arith.constant 0 : i32
    %c0_i32_1 = arith.constant 0 : i32
    return %c0_i32, %c0_i32_0 : i32, i32
  }
  func.func @transform_27(%arg0: i32, %arg1: i32) -> (i32, i32) {
    %c0_i32 = arith.constant 0 : i32
    %c0_i32_0 = arith.constant 0 : i32
    %c0_i32_1 = arith.constant 0 : i32
    return %c0_i32, %c0_i32_0 : i32, i32
  }
  func.func @transform_28(%arg0: i32, %arg1: i32) -> (i32, i32, i32, i32) {
    %c0_i32 = arith.constant 0 : i32
    %c0_i32_0 = arith.constant 0 : i32
    %c0_i32_1 = arith.constant 0 : i32
    return %arg1, %arg0, %c0_i32, %c0_i32_0 : i32, i32, i32, i32
  }
  func.func @transform_29(%arg0: i32, %arg1: i32) -> (i32, i32, i32, i32) {
    %c0_i32 = arith.constant 0 : i32
    %c0_i32_0 = arith.constant 0 : i32
    %c0_i32_1 = arith.constant 0 : i32
    return %arg1, %arg0, %c0_i32, %c0_i32_0 : i32, i32, i32, i32
  }
}

</mosaic_0001>

<bundles_post_ra>
// kernel: transformer_decoder_forward.1
= control target key start
LH: loop header
LB: loop body
LE: loop exit
PB: predicated region body
PF: predicated region fallthrough
CT: control target
= control target key end

     0   :  { %s6011_s6 = smov 1   ;;  %s6012_s10 = smov 2   ;;  %s7569_s0 = inlined_call_operand.smem [shape: u32[30], index: -1, kind: input, shape index: {}] }
   0x1   :  { %s6094_s5 = sld [smem:[%s7569_s0]]   ;;  %s6013_s14 = smov 3  }
   0x2   :  { %s6099_s9 = sld [smem:[%s7569_s0 + %s6011_s6]]   ;;  %s6014_s18 = smov 4  }
   0x3   :  { %s6104_s13 = sld [smem:[%s7569_s0 + %s6012_s10]]   ;;  %s6015_s22 = smov 5  }
   0x4   :  { %s6109_s17 = sld [smem:[%s7569_s0 + %s6013_s14]]   ;;  %s6016_s26 = smov 6  }
   0x5   :  { %s6114_s21 = sld [smem:[%s7569_s0 + %s6014_s18]]   ;;  %s6017_s30 = smov 7  }
   0x6   :  { %s6119_s25 = sld [smem:[%s7569_s0 + %s6015_s22]]   ;;  %s6018_s4 = smov 8  }
   0x7   :  { %7649 = sst [smem:[#allocation71_spill]] %s6094_s5  ;;  %s6019_s10 = smov 9  }
   0x8   :  { %7650 = sst [smem:[#allocation72_spill]] %s6099_s9  ;;  %s6020_s15 = smov 10  }
   0x9   :  { %7651 = sst [smem:[#allocation73_spill]] %s6104_s13  ;;  %s6021_s20 = smov 11  }
   0xa   :  { %7652 = sst [smem:[#allocation74_spill]] %s6109_s17  ;;  %s6023_s1 = smov 13  }
   0xb   :  { %7653 = sst [smem:[#allocation75_spill]] %s6114_s21  ;;  %s6024_s7 = smov 14  }
   0xc   :  { %7654 = sst [smem:[#allocation76_spill]] %s6119_s25  ;;  %s6026_s22 = smov 16  }
   0xd   :  { %s6124_s29 = sld [smem:[%s7569_s0 + %s6016_s26]]   ;;  %s6022_s26 = smov 12  }
   0xe   :  { %s6129_s3 = sld [smem:[%s7569_s0 + %s6017_s30]]   ;;  %s6027_s28 = smov 17  }
   0xf   :  { %s6134_s8 = sld [smem:[%s7569_s0 + %s6018_s4]]  }
  0x10   :  { %s6139_s14 = sld [smem:[%s7569_s0 + %s6019_s10]]  }
  0x11   :  { %s6144_s19 = sld [smem:[%s7569_s0 + %s6020_s15]]   ;;  %s6025_s15 = smov 15  }
  0x12   :  { %s6149_s24 = sld [smem:[%s7569_s0 + %s6021_s20]]  }
  0x13   :  { %7655 = sst [smem:[#allocation77_spill]] %s6124_s29 }
  0x14   :  { %7656 = sst [smem:[#allocation78_spill]] %s6129_s3 }
  0x15   :  { %7657 = sst [smem:[#allocation79_spill]] %s6134_s8 }
  0x16   :  { %7658 = sst [smem:[#allocation80_spill]] %s6139_s14 }
  0x17   :  { %7659 = sst [smem:[#allocation81_spill]] %s6144_s19 }
  0x18   :  { %7660 = sst [smem:[#allocation82_spill]] %s6149_s24 }
  0x19   :  { %s6154_s30 = sld [smem:[%s7569_s0 + %s6022_s26]]  }
  0x1a   :  { %s6159_s6 = sld [smem:[%s7569_s0 + %s6023_s1]]  }
  0x1b   :  { %s6164_s12 = sld [smem:[%s7569_s0 + %s6024_s7]]   ;;  %s6028_s7 = smov 18  }
  0x1c   :  { %s6169_s20 = sld [smem:[%s7569_s0 + %s6025_s15]]   ;;  %s6029_s15 = smov 19  }
  0x1d   :  { %s6174_s27 = sld [smem:[%s7569_s0 + %s6026_s22]]   ;;  %s6030_s22 = smov 20  }
  0x1e   :  { %s6179_s4 = sld [smem:[%s7569_s0 + %s6027_s28]]   ;;  %s6031_s28 = smov 21  }
  0x1f   :  { %7661 = sst [smem:[#allocation83_spill]] %s6154_s30 }
  0x20   :  { %7662 = sst [smem:[#allocation84_spill]] %s6159_s6 }
  0x21   :  { %7663 = sst [smem:[#allocation85_spill]] %s6164_s12 }
  0x22   :  { %7664 = sst [smem:[#allocation86_spill]] %s6169_s20 }
  0x23   :  { %7665 = sst [smem:[#allocation87_spill]] %s6174_s27 }
  0x24   :  { %7666 = sst [smem:[#allocation88_spill]] %s6179_s4 }
  0x25   :  { %s6184_s12 = sld [smem:[%s7569_s0 + %s6028_s7]]   ;;  %s6032_s7 = smov 22  }
  0x26   :  { %s6189_s30 = sld [smem:[%s7569_s0 + %s6029_s15]]   ;;  %s6033_s15 = smov 23  }
  0x27   :  { %s6194_s27 = sld [smem:[%s7569_s0 + %s6030_s22]]   ;;  %s6034_s22 = smov 24  }
  0x28   :  { %s6199_s19 = sld [smem:[%s7569_s0 + %s6031_s28]]   ;;  %s6035_s28 = smov 25  }
  0x29   :  { %s6209_s8 = sld [smem:[%s7569_s0 + %s6033_s15]]   ;;  %s6037_s15 = smov 27  }
  0x2a   :  { %s6229_s21 = sld [smem:[%s7569_s0 + %s6037_s15]]  }
  0x2b   :  { %7667 = sst [smem:[#allocation89_spill]] %s6184_s12 }
  0x2c   :  { %7668 = sst [smem:[#allocation90_spill]] %s6189_s30 }
  0x2d   :  { %7669 = sst [smem:[#allocation91_spill]] %s6194_s27 }
  0x2e   :  { %7670 = sst [smem:[#allocation92_spill]] %s6199_s19 }
  0x2f   :  { %s6204_s12 = sld [smem:[%s7569_s0 + %s6032_s7]]   ;;  %s6036_s7 = smov 26  }
  0x30   :  { %7672 = sst [smem:[#allocation94_spill]] %s6209_s8 }
  0x31   :  { %s6214_s27 = sld [smem:[%s7569_s0 + %s6034_s22]]   ;;  %s6038_s22 = smov 28  }
  0x32   :  { %s6219_s19 = sld [smem:[%s7569_s0 + %s6035_s28]]   ;;  %s6039_s28 = smov 29  }
  0x33   :  { %s6224_s29 = sld [smem:[%s7569_s0 + %s6036_s7]]  }
  0x34   :  { %7676 = sst [smem:[#allocation98_spill]] %s6229_s21 }
  0x35   :  { %7671 = sst [smem:[#allocation93_spill]] %s6204_s12 }
  0x36   :  { %s6234_s13 = sld [smem:[%s7569_s0 + %s6038_s22]]  }
  0x37   :  { %7673 = sst [smem:[#allocation95_spill]] %s6214_s27 }
  0x38   :  { %7674 = sst [smem:[#allocation96_spill]] %s6219_s19 }
  0x39   :  { %7675 = sst [smem:[#allocation97_spill]] %s6224_s29 }
  0x3a   :  { %s6239_s5 = sld [smem:[%s7569_s0 + %s6039_s28]]  }
  0x3c   :  { %7677 = sst [smem:[#allocation99_spill]] %s6234_s13 }
  0x40   :  { %7678 = sst [smem:[#allocation100_spill]] %s6239_s5 }
  0x41   :  { %65 = vsyncpa [#allocation6], 0 }
  0x42   :  { %67 = vsyncpa [#allocation6 + $0x1], 0 }
  0x43   :  { %68 = vsyncpa [#allocation9], 0 }
  0x44   :  { %70 = vsyncpa [#allocation9 + $0x1], 0 }
  0x45   :  { %71 = vsyncpa [#allocation12], 0 }
  0x46   :  { %73 = vsyncpa [#allocation12 + $0x1], 0 }
  0x47   :  { %74 = vsyncpa [#allocation15], 0 }
  0x48   :  { %76 = vsyncpa [#allocation15 + $0x1], 0 }
  0x49   :  { %77 = vsyncpa [#allocation18], 0 }
  0x4a   :  { %79 = vsyncpa [#allocation18 + $0x1], 0 }
  0x4b   :  { %80 = vsyncpa [#allocation21], 0 }
  0x4c   :  { %82 = vsyncpa [#allocation21 + $0x1], 0 }
  0x4d   :  { %83 = vsyncpa [#allocation24], 0 }
  0x4e   :  { %85 = vsyncpa [#allocation24 + $0x1], 0 }
  0x4f   :  { %86 = vsyncpa [#allocation27], 0 }
  0x50   :  { %88 = vsyncpa [#allocation27 + $0x1], 0 }
  0x51   :  { %89 = vsyncpa [#allocation30], 0 }
  0x52   :  { %91 = vsyncpa [#allocation30 + $0x1], 0 }
  0x53   :  { %92 = vsyncpa [#allocation33], 0 }
  0x54   :  { %94 = vsyncpa [#allocation33 + $0x1], 0 }
  0x55   :  { %95 = vsyncpa [#allocation36], 0 }
  0x56   :  { %97 = vsyncpa [#allocation36 + $0x1], 0 }
  0x57   :  { %98 = vsyncpa [#allocation39], 0 }
  0x58   :  { %100 = vsyncpa [#allocation39 + $0x1], 0 }
  0x59   :  { %101 = vsyncpa [#allocation42], 0 }
  0x5a   :  { %102 = vsyncpa [#allocation45], 0 }
  0x5b   :  { %103 = vsyncpa [#allocation48], 0 }
  0x5c   :  { %104 = vsyncpa [#allocation7], 0 }
  0x5d   :  { %106 = vsyncpa [#allocation7 + $0x1], 0 }
  0x5e   :  { %107 = vsyncpa [#allocation51], 0 }
  0x5f   :  { %109 = vsyncpa [#allocation51 + $0x1], 0  ;;  %s6241_s0 = smov 0   ;;  %s6243_s7 = smov 0  }
  0x60   :  { %s6245_s10 = smov 0   ;;  %s6247_s11 = smov 0  }
  0x61   :  { %s6249_s15 = smov 0   ;;  %s6251_s16 = smov 0  }
  0x62   :  { %s6253_s18 = smov 0   ;;  %s6255_s22 = smov 0  }
  0x63   :  { %s6257_s23 = smov 0   ;;  %s6259_s26 = smov 0  }
  0x64   :  { %s6261_s28 = smov 0   ;;  %s6263_s1 = smov 0  }
  0x65   :  { %s6265_s2 = smov 0   ;;  %s6267_s5 = smov 0  }
  0x66 LB: > { %s7679_s29 = sld [smem:[#allocation97_spill]]  ;;  %s7680_s27 = sld [smem:[#allocation95_spill]]  ;;  %s5989_s23 = sphi %s6257_s23, %s7814_s23   ;;  %s5985_s22 = sphi %s6255_s22, %s7813_s22   ;;  %s5981_s18 = sphi %s6253_s18, %s7804_s18   ;;  %s5977_s16 = sphi %s6251_s16, %s7812_s16   ;;  %s5973_s15 = sphi %s6249_s15, %s7811_s15   ;;  %s5969_s11 = sphi %s6247_s11, %s7810_s11   ;;  %s5965_s10 = sphi %s6245_s10, %s7802_s10   ;;  %s5961_s7 = sphi %s6243_s7, %s7809_s7   ;;  %s5957_s0 = sphi %s6241_s0, %s7808_s0   ;;  %s6009_s5 = sphi %s6267_s5, %s115_s5   ;;  %s6005_s2 = sphi %s6265_s2, %s7818_s2   ;;  %s6001_s1 = sphi %s6263_s1, %s7817_s1   ;;  %s5997_s28 = sphi %s6261_s28, %s7816_s28   ;;  %s5993_s26 = sphi %s6259_s26, %s7815_s26  }
  0x67   : > { %s7681_s25 = sld [smem:[#allocation76_spill]]  ;;  %s7682_s21 = sld [smem:[#allocation98_spill]] }
  0x68   : > { %s7683_s17 = sld [smem:[#allocation74_spill]]  ;;  %s7684_s12 = sld [smem:[#allocation93_spill]] }
  0x69   : > { %s7685_s9 = sld [smem:[#allocation72_spill]]  ;;  %s7687_s8 = sld [smem:[#allocation94_spill]] }
  0x6a   : > { %s7686_s19 = sld [smem:[#allocation96_spill]]  ;;  %7688 = sst [smem:[#allocation101_spill]] %s5957_s0 }
  0x6b   : > { %7689 = sst [smem:[#allocation102_spill]] %s5965_s10  ;;  %s6310_s13 = sadd.s32 4294967295, %s6009_s5  }
  0x6c   : > { %7690 = sst [smem:[#allocation103_spill]] %s5985_s22  ;;  %s127_s30 = sadd.s32 1, %s6005_s2 }
  0x6d   : > { %7691 = sst [smem:[#allocation104_spill]] %s5993_s26  ;;  %s134_s4 = sadd.s32 1, %s5989_s23 }
  0x6e   : > { %7692 = sst [smem:[#allocation105_spill]] %s5997_s28  ;;  %s124_s28 = sadd.s32 1, %s6001_s1 }
  0x6f   : > { %p125_p0 = scmp.ge.s32.totalorder %s124_s28, 3  ;;  %p141_p1 = scmp.ne.s32.totalorder %s5989_s23, %s5985_s22 }
  0x70   : > { %p142_p2 = scmp.eq.s32.totalorder %s6009_s5, 0  ;;  %p147_p4 = scmp.ne.s32.totalorder %s5985_s22, %s5981_s18 }
  0x71   : > { %s7820_s28 = smov (%p125_p0, %s124_s28), 0  ;;  %s7822_s30 = smov (!%p125_p0, %s127_s30), %s6005_s2 }
  0x72   : > { %7693 = sst [smem:[#allocation106_spill]] %s7820_s28  ;;  %p6324_p3 = por %p142_p2, %p141_p1 }
  0x73   : > { %p129_p5 = scmp.ge.s32.totalorder %s7822_s30, 2  ;;  %p7596_p6 = scmp.eq.s32.totalorder %s6310_s13, 0 }
  0x74   : > { %s7694_s26 = scalar_select %p6324_p3, 1, 0 }
  0x75   : > { %s235_s20 = ssub.s32 %s6001_s1, %s7820_s28  ;;  %s238_s6 = sadd.s32 1, %s5977_s16 }
  0x76   : > { %s7824_s30 = smov (%p129_p5, %s7822_s30), 0  ;;  %p6337_p7 = por %p7596_p6, %p147_p4 }
  0x77   : > { %7695 = sst [smem:[#allocation107_spill]] %s7824_s30  ;;  %p236_p8 = scmp.eq.s32.totalorder %s235_s20, 0 }
  0x78   : > { %s7696_s24 = scalar_select %p6337_p7, 1, 0 }
  0x79   : > { %s131_s18 = ssub.s32 %s6005_s2, %s7824_s30  ;;  %p245_p9 = scmp.ne.s32.totalorder %s5977_s16, %s5973_s15 }
  0x7a   : > { %7697 = sst [smem:[#allocation108_spill]] %s7696_s24  ;;  %p132_p10 = scmp.eq.s32.totalorder %s131_s18, 0 }
  0x7b   : > { %p251_p11 = scmp.ne.s32.totalorder %s5973_s15, %s5969_s11  ;;  %p6355_p12 = por %p245_p9, %p142_p2 }
  0x7c   : > { %s6348_s28 = scalar_select %p236_p8, %s5977_s16, %s238_s6  }
  0x7d   : > { %s6351_s22 = scalar_select %p132_p10, %s5989_s23, %s134_s4  }
  0x7e   : > { %7698 = sst [smem:[#allocation109_spill]] %s6348_s28  ;;  %p6361_p13 = por %p251_p11, %p7596_p6 }
  0x7f   : > { %7699 = sst [smem:[#allocation110_spill]] %s6351_s22  ;;  %s831_s30 = sor.u32 %s235_s20, %s131_s18 }
  0x80   : > { %s7700_s14 = scalar_select %p6355_p12, 1, 0 }
  0x81   : > { %s7701_s24 = scalar_select %p6361_p13, 1, 0 }
  0x82   : > { %s834_s3 = sadd.s32 1, %s5965_s10  ;;  %p832_p0 = scmp.eq.s32.totalorder %s831_s30, 0 }
  0x83   : > { %p844_p1 = scmp.ne.s32.totalorder %s5965_s10, %s5961_s7  ;;  %p845_p4 = scmp.eq.s32.totalorder %s6310_s13, 5 }
  0x84   : > { %p850_p5 = scmp.ne.s32.totalorder %s5961_s7, %s5957_s0  ;;  %s7704_s11 = sadd.s32 4294967294, %s6009_s5  }
  0x85   : > { %s6372_s6 = scalar_select %p832_p0, %s5965_s10, %s834_s3  }
  0x86   : > { %p6374_p2 = por %p845_p4, %p844_p1  ;;  %p851_p8 = scmp.eq.s32.totalorder %s7704_s11, 5 }
  0x87   : > { %7702 = sst [smem:[#allocation111_spill]] %s6372_s6  ;;  %p4234_p9 = scmp.ge.s32.totalorder %s6009_s5, 1 }
  0x88   : > { %s7703_s4 = scalar_select %p6374_p2, 1, 0 }
  0x89   : > { %p886_p10 = scmp.lt.s32.totalorder %s6009_s5, 7  ;;  %p6382_p11 = por %p851_p8, %p850_p5 }
  0x8a   : > { %s6040_s3 = smov [#allocation41]   ;;  %s6041_s22 = smov [#allocation44]  }
  0x8b   : > { %s7705_s20 = scalar_select %p6382_p11, 1, 0 }
  0x8c   : > { %p6386_p6 = pnand %p4234_p9, %p886_p10  ;;  %s912_s18 = sshll.u32 %s6040_s3, 4  ;;  %s913_s18 = int_to_ptr.vmem [resolvable:$true] %s912_s18 }
  0x8d   : > { %7706 = sst [smem:[#allocation112_spill]] %s7705_s20  ;;  %s936_s28 = sshll.u32 %s6041_s22, 4  ;;  %s6398_s28 = int_to_ptr.vmem [resolvable:$true] %s936_s28 }
  0x8e   : > { %s7707_s30 = scalar_select %p6386_p6, 1, 0 }
  0x8f   : > { %p4718_p0 = pneg %p6386_p6  ;;  %p7708_p1 = scmp.eq.s32.totalorder %s6310_s13, 0 }
  0x90   : > { %s4983_s6 = scalar_lea.hbm %s7687_s8, 16 }
  0x91   : > { %p6394_p4 = pnand %p4718_p0, %p7708_p1  ;;  %p4984_p5 = scmp.ne.s32.totalorder %s7687_s8, %s4983_s6 }
  0x92   : > { %p4990_p11 = scmp.lt.u32.totalorder %s4983_s6, %s7687_s8 }
  0x93   : > { %p6404_p8 = pneg %p6394_p4 }
  0x95   : > { %p4986_p9 = pnand %p6404_p8, %p4984_p5 }
  0x97   : > { %p4987_p10 = pneg %p4986_p9 }
  0x99   : > { %p4992_p2 = pnand %p4990_p11, %p4987_p10 }
  0x9b   : > { %4995 = shalt.err (!%p4992_p2)
}
  0x9c   : > { %s4996_s22 = scalar_lea.vmem %s913_s18, 16  ;;  %s5003_s3 = scalar_lea.vmem %s913_s18, 32 }
  0x9d   : > { %p4997_p0 = scmp.ne.s32.totalorder %s913_s18, %s4996_s22  ;;  %p5004_p7 = scmp.lt.s32.totalorder %s913_s18, %s913_s18 }
  0x9e   : > { %p5005_p6 = scmp.lt.s32.totalorder %s5003_s3, %s4996_s22 }
  0x9f   : > { %p4999_p1 = pnand %p4997_p0, %p6404_p8 }
  0xa0   : > { %p5006_p12 = por %p5005_p6, %p5004_p7 }
  0xa1   : > { %p5000_p13 = pneg %p4999_p1 }
  0xa3   : > { %p5007_p3 = pnand %p5006_p12, %p5000_p13 }
  0xa5   : > { %5010 = shalt.err (!%p5007_p3)
}
  0xa6   : > { %4724 = dma.hbm_to_vmem [thread:$0]  (!%p6394_p4), %s7687_s8, 16, %s913_s18, [#allocation42]  }
  0xa7   : > { %s5011_s6 = scalar_lea.hbm %s7686_s19, 16 }
  0xa8   : > { %p5012_p2 = scmp.ne.s32.totalorder %s7686_s19, %s5011_s6  ;;  %p5018_p9 = scmp.lt.u32.totalorder %s5011_s6, %s7686_s19 }
  0xaa   : > { %p5014_p11 = pnand %p5012_p2, %p6404_p8 }
  0xac   : > { %p5015_p5 = pneg %p5014_p11 }
  0xae   : > { %p5020_p10 = pnand %p5018_p9, %p5015_p5 }
  0xb0   : > { %5023 = shalt.err (!%p5020_p10)
}
  0xb1   : > { %s5024_s22 = scalar_lea.vmem %s6398_s28, 16  ;;  %s5031_s3 = scalar_lea.vmem %s6398_s28, 32 }
  0xb2   : > { %p5025_p3 = scmp.ne.s32.totalorder %s6398_s28, %s5024_s22  ;;  %p5032_p12 = scmp.lt.s32.totalorder %s6398_s28, %s6398_s28 }
  0xb3   : > { %p5033_p13 = scmp.lt.s32.totalorder %s5031_s3, %s5024_s22 }
  0xb4   : > { %p5027_p6 = pnand %p5025_p3, %p6404_p8 }
  0xb5   : > { %p5034_p0 = por %p5033_p13, %p5032_p12 }
  0xb6   : > { %p5028_p7 = pneg %p5027_p6 }
  0xb8   : > { %p5035_p1 = pnand %p5034_p0, %p5028_p7 }
  0xba   : > { %5038 = shalt.err (!%p5035_p1)
}
  0xbb   : > { %4730 = dma.hbm_to_vmem [thread:$0]  (!%p6394_p4), %s7686_s19, 16, %s6398_s28, [#allocation45]  }
  0xbc   : > { %s6042_s18 = smov [#allocation40]   ;;  %s5039_s8 = scalar_lea.hbm %s7684_s12, 256 }
  0xbd   : > { %s898_s6 = sshll.u32 %s6042_s18, 4  ;;  %p5040_p2 = scmp.ne.s32.totalorder %s7684_s12, %s5039_s8  ;;  %s899_s6 = int_to_ptr.vmem [resolvable:$true] %s898_s6 }
  0xbe   : > { %p5046_p9 = scmp.lt.u32.totalorder %s5039_s8, %s7684_s12 }
  0xbf   : > { %p5042_p11 = pnand %p5040_p2, %p6404_p8 }
  0xc1   : > { %p5043_p5 = pneg %p5042_p11 }
  0xc3   : > { %p5048_p10 = pnand %p5046_p9, %p5043_p5 }
  0xc5   : > { %5051 = shalt.err (!%p5048_p10)
}
  0xc6   : > { %s5052_s22 = scalar_lea.vmem %s899_s6, 256  ;;  %p5060_p12 = scmp.lt.s32.totalorder %s899_s6, %s899_s6 }
  0xc7   : > { %p5053_p3 = scmp.ne.s32.totalorder %s899_s6, %s5052_s22  ;;  %p5061_p13 = scmp.lt.s32.totalorder %s5052_s22, %s5052_s22 }
  0xc9   : > { %p5055_p6 = pnand %p5053_p3, %p6404_p8  ;;  %p5062_p0 = por %p5061_p13, %p5060_p12 }
  0xcb   : > { %p5056_p7 = pneg %p5055_p6 }
  0xcd   : > { %p5063_p1 = pnand %p5062_p0, %p5056_p7 }
  0xcf   : > { %5066 = shalt.err (!%p5063_p1)
}
  0xd0   : > { %s6043_s28 = smov 64   ;;  %s6044_s8 = smov 4  }
  0xd1   : > { %4721 = dma.hbm_to_vmem [thread:$0]  (!%p6394_p4), %s7684_s12, 256, %s899_s6, [#allocation39], %s6043_s28, %s6043_s28, %s6044_s8  }
  0xd2   : > { %s6045_s3 = smov [#allocation43]   ;;  %s6046_s22 = smov [#allocation46]  }
  0xd3   : > { %s922_s18 = sshll.u32 %s6045_s3, 4  ;;  %s946_s19 = sshll.u32 %s6046_s22, 4  ;;  %s923_s18 = int_to_ptr.vmem [resolvable:$true] %s922_s18  ;;  %s947_s19 = int_to_ptr.vmem [resolvable:$true] %s946_s19 }
  0xd4   : > { %s5067_s20 = scalar_lea.hbm %s7680_s27, 256 }
  0xd5   : > { %p5068_p2 = scmp.ne.s32.totalorder %s7680_s27, %s5067_s20  ;;  %p5074_p9 = scmp.lt.u32.totalorder %s5067_s20, %s7680_s27 }
  0xd7   : > { %p5070_p11 = pnand %p5068_p2, %p6404_p8 }
  0xd9   : > { %p5071_p5 = pneg %p5070_p11 }
  0xdb   : > { %p5076_p10 = pnand %p5074_p9, %p5071_p5 }
  0xdd   : > { %5079 = shalt.err (!%p5076_p10)
}
  0xde   : > { %s5080_s0 = scalar_lea.vmem %s923_s18, 256  ;;  %p5088_p12 = scmp.lt.s32.totalorder %s923_s18, %s923_s18 }
  0xdf   : > { %p5081_p3 = scmp.ne.s32.totalorder %s923_s18, %s5080_s0  ;;  %p5089_p13 = scmp.lt.s32.totalorder %s5080_s0, %s5080_s0 }
  0xe1   : > { %p5083_p6 = pnand %p5081_p3, %p6404_p8  ;;  %p5090_p0 = por %p5089_p13, %p5088_p12 }
  0xe3   : > { %p5084_p7 = pneg %p5083_p6 }
  0xe5   : > { %p5091_p1 = pnand %p5090_p0, %p5084_p7 }
  0xe7   : > { %5094 = shalt.err (!%p5091_p1)
}
  0xe8   : > { %4727 = dma.hbm_to_vmem [thread:$0]  (!%p6394_p4), %s7680_s27, 256, %s923_s18, [#allocation42], %s6043_s28, %s6043_s28, %s6044_s8  }
  0xe9   : > { %s5095_s20 = scalar_lea.hbm %s7679_s29, 256 }
  0xea   : > { %p5096_p2 = scmp.ne.s32.totalorder %s7679_s29, %s5095_s20  ;;  %p5102_p9 = scmp.lt.u32.totalorder %s5095_s20, %s7679_s29 }
  0xec   : > { %p5098_p11 = pnand %p5096_p2, %p6404_p8 }
  0xee   : > { %p5099_p5 = pneg %p5098_p11 }
  0xf0   : > { %p5104_p10 = pnand %p5102_p9, %p5099_p5 }
  0xf2   : > { %5107 = shalt.err (!%p5104_p10)
}
  0xf3   : > { %s5108_s0 = scalar_lea.vmem %s947_s19, 256  ;;  %p5116_p12 = scmp.lt.s32.totalorder %s947_s19, %s947_s19 }
  0xf4   : > { %p5109_p3 = scmp.ne.s32.totalorder %s947_s19, %s5108_s0  ;;  %p5117_p13 = scmp.lt.s32.totalorder %s5108_s0, %s5108_s0 }
  0xf6   : > { %p5111_p6 = pnand %p5109_p3, %p6404_p8  ;;  %p5118_p0 = por %p5117_p13, %p5116_p12 }
  0xf8   : > { %p5112_p7 = pneg %p5111_p6 }
  0xfa   : > { %p5119_p1 = pnand %p5118_p0, %p5112_p7 }
  0xfc   : > { %5122 = shalt.err (!%p5119_p1)
}
  0xfd   : > { %4733 = dma.hbm_to_vmem [thread:$0]  (!%p6394_p4), %s7679_s29, 256, %s947_s19, [#allocation45], %s6043_s28, %s6043_s28, %s6044_s8  }
  0xfe   : > { %s6047_s6 = smov [#allocation47]   ;;  %s5123_s18 = scalar_lea.hbm %s7682_s21, 16 }
  0xff   : > { %s960_s3 = sshll.u32 %s6047_s6, 4  ;;  %p5124_p2 = scmp.ne.s32.totalorder %s7682_s21, %s5123_s18  ;;  %s961_s3 = int_to_ptr.vmem [resolvable:$true] %s960_s3 }
 0x100   : > { %p5130_p9 = scmp.lt.u32.totalorder %s5123_s18, %s7682_s21 }
 0x101   : > { %p5126_p11 = pnand %p5124_p2, %p6404_p8 }
 0x103   : > { %p5127_p5 = pneg %p5126_p11 }
 0x105   : > { %p5132_p10 = pnand %p5130_p9, %p5127_p5 }
 0x107   : > { %5135 = shalt.err (!%p5132_p10)
}
 0x108   : > { %s5136_s22 = scalar_lea.vmem %s961_s3, 16  ;;  %s5143_s20 = scalar_lea.vmem %s961_s3, 32 }
 0x109   : > { %p5137_p3 = scmp.ne.s32.totalorder %s961_s3, %s5136_s22  ;;  %p5144_p12 = scmp.lt.s32.totalorder %s961_s3, %s961_s3 }
 0x10a   : > { %p5145_p13 = scmp.lt.s32.totalorder %s5143_s20, %s5136_s22 }
 0x10b   : > { %p5139_p6 = pnand %p5137_p3, %p6404_p8 }
 0x10c   : > { %p5146_p0 = por %p5145_p13, %p5144_p12 }
 0x10d   : > { %p5140_p7 = pneg %p5139_p6 }
 0x10f   : > { %p5147_p1 = pnand %p5146_p0, %p5140_p7 }
 0x111   : > { %5150 = shalt.err (!%p5147_p1)
}
 0x112   : > { %4736 = dma.hbm_to_vmem [thread:$0]  (!%p6394_p4), %s7682_s21, 16, %s961_s3, [#allocation48]  }
 0x113   : > { %p4241_p2 = scmp.ge.s32.totalorder %s6009_s5, 6 }
 0x114   : > { %s7608_s19 = sand.u32 (!%p4241_p2), 1, %s5989_s23   ;;  %s6484_s10 = sshll.u32 (!%p4241_p2), %s6005_s2, 7 }
 0x115   : > { %967 = sbr.rel (%p4241_p2) target bundleno = 869 (0x365), region = 40  ;;  %s6488_s28 = sshll.u32 (!%p4241_p2), %s7608_s19, 3 }
 0x116   : > { %s6491_s11 = sand.u32 (!%p4241_p2), 1, %s6009_s5   ;;  %s6495_s8 = scalar_lea.hbm (!%p4241_p2), %s7685_s9, %s6484_s10 }
 0x117   : > { %s993_s0 = scalar_lea.vmem (!%p4241_p2), [#allocation8], %s6488_s28  ;;  %s5151_s18 = scalar_lea.hbm (!%p4241_p2), %s6495_s8, 128 }
 0x118   : > { %s1000_s6 = sshll.u32 (!%p4241_p2), %s993_s0, 4  ;;  %p5152_p4 = scmp.ne.s32.totalorder (!%p4241_p2), %s6495_s8, %s5151_s18  ;;  %s1001_s6 = int_to_ptr.vmem [resolvable:$true] %s1000_s6 }
 0x119   : > { %p7711_p8 = scmp.ne.s32.totalorder (!%p4241_p2), %s7694_s26, 0  ;;  %s5155_s22 = scalar_lea.hbm (!%p4241_p2), %s7685_s9, 256 }
 0x11a   : > { %p5156_p9 = scmp.lt.u32.totalorder (!%p4241_p2), %s6495_s8, %s7685_s9  ;;  %p5157_p10 = scmp.lt.u32.totalorder (!%p4241_p2), %s5155_s22, %s5151_s18 }
 0x11b   : > { %p5153_p11 = pnand (!%p4241_p2), %p5152_p4, %p7711_p8  ;;  %p5159_p6 = scmp.lt.u32.totalorder (!%p4241_p2), %s5151_s18, %s6495_s8 }
 0x11c   : > { %p5158_p3 = por %p5157_p10, %p5156_p9 }
 0x11d   : > { %p5154_p5 = pneg %p5153_p11 }
 0x11e   : > { %p5160_p7 = por %p5159_p6, %p5158_p3 }
 0x120   : > { %p5161_p12 = pnand %p5160_p7, %p5154_p5 }
 0x122   : > { %5164 = shalt.err (!%p5161_p12)
}
 0x123   : > { %s5165_s20 = scalar_lea.vmem %s1001_s6, 128  ;;  %s6048_s0 = smov [#allocation8]  }
 0x124   : > { %p5166_p13 = scmp.ne.s32.totalorder %s1001_s6, %s5165_s20  ;;  %s5169_s19 = sshll.u32 %s6048_s0, 4  ;;  %s5170_s19 = int_to_ptr.vmem [resolvable:$false] %s5169_s19 }
 0x125   : > { %s5171_s3 = scalar_lea.vmem %s5170_s19, 256  ;;  %p5172_p2 = scmp.lt.s32.totalorder %s1001_s6, %s5170_s19 }
 0x126   : > { %p5167_p0 = pnand %p5166_p13, %p7711_p8  ;;  %p5173_p4 = scmp.lt.s32.totalorder %s5171_s3, %s5165_s20 }
 0x128   : > { %p5168_p1 = pneg %p5167_p0  ;;  %p5174_p11 = por %p5173_p4, %p5172_p2 }
 0x12a   : > { %p5175_p9 = pnand %p5174_p11, %p5168_p1 }
 0x12c   : > { %5178 = shalt.err (!%p5175_p9)
}
 0x12d   : > { %s7712_s18 = scalar_lea.sflag [#allocation9], %s6491_s11  ;;  %s6516_s22 = scalar_lea.hbm %s7683_s17, %s6484_s10 }
 0x12e   : > { %4659 = dma.hbm_to_vmem [thread:$0]  (%p7711_p8), %s6495_s8, 128, %s1001_s6, %s7712_s18  }
 0x12f   : > { %s1032_s19 = scalar_lea.vmem [#allocation11], %s6488_s28  ;;  %s6520_s20 = sand.u32 1, %s5977_s16  }
 0x130   : > { %s1039_s3 = sshll.u32 %s1032_s19, 4  ;;  %s7612_s0 = scalar_lea.sflag [#allocation12], %s6491_s11  ;;  %s1040_s3 = int_to_ptr.vmem [resolvable:$true] %s1039_s3 }
 0x131   : > { %s5179_s9 = scalar_lea.hbm %s6516_s22, 128  ;;  %s5183_s12 = scalar_lea.hbm %s7683_s17, 256 }
 0x132   : > { %p5180_p5 = scmp.ne.s32.totalorder %s6516_s22, %s5179_s9  ;;  %p5184_p6 = scmp.lt.u32.totalorder %s6516_s22, %s7683_s17 }
 0x133   : > { %p5185_p7 = scmp.lt.u32.totalorder %s5183_s12, %s5179_s9  ;;  %p5187_p13 = scmp.lt.u32.totalorder %s5179_s9, %s6516_s22 }
 0x134   : > { %p5181_p10 = pnand %p5180_p5, %p7711_p8 }
 0x135   : > { %p5186_p12 = por %p5185_p7, %p5184_p6 }
 0x136   : > { %p5182_p3 = pneg %p5181_p10 }
 0x137   : > { %p5188_p0 = por %p5187_p13, %p5186_p12 }
 0x139   : > { %p5189_p1 = pnand %p5188_p0, %p5182_p3 }
 0x13b   : > { %5192 = shalt.err (!%p5189_p1)
}
 0x13c   : > { %s5193_s8 = scalar_lea.vmem %s1040_s3, 128  ;;  %s6049_s6 = smov [#allocation11]  }
 0x13d   : > { %p5194_p2 = scmp.ne.s32.totalorder %s1040_s3, %s5193_s8  ;;  %s5197_s18 = sshll.u32 %s6049_s6, 4  ;;  %s5198_s18 = int_to_ptr.vmem [resolvable:$false] %s5197_s18 }
 0x13e   : > { %s5199_s19 = scalar_lea.vmem %s5198_s18, 256  ;;  %p5200_p9 = scmp.lt.s32.totalorder %s1040_s3, %s5198_s18 }
 0x13f   : > { %p5195_p4 = pnand %p5194_p2, %p7711_p8  ;;  %p5201_p5 = scmp.lt.s32.totalorder %s5199_s19, %s5193_s8 }
 0x141   : > { %p5196_p11 = pneg %p5195_p4  ;;  %p5202_p10 = por %p5201_p5, %p5200_p9 }
 0x143   : > { %p5203_p6 = pnand %p5202_p10, %p5196_p11 }
 0x145   : > { %5206 = shalt.err (!%p5203_p6)
}
 0x146   : > { %4661 = dma.hbm_to_vmem [thread:$0]  (%p7711_p8), %s6516_s22, 128, %s1040_s3, %s7612_s0  }
 0x147   : > { %s6539_s9 = sshll.u32 %s6001_s1, 4  ;;  %s1070_s8 = scalar_lea.vmem [#allocation14], %s6520_s20 }
 0x148   : > { %s6543_s12 = scalar_lea.hbm %s7681_s25, %s6539_s9  ;;  %s1077_s6 = sshll.u32 %s1070_s8, 4  ;;  %s1078_s6 = int_to_ptr.vmem [resolvable:$true] %s1077_s6 }
 0x149   : > { %s7615_s18 = scalar_lea.sflag [#allocation15], %s6491_s11  ;;  %s5207_s19 = scalar_lea.hbm %s6543_s12, 16 }
 0x14a   : > { %p5208_p3 = scmp.ne.s32.totalorder %s6543_s12, %s5207_s19  ;;  %p7713_p7 = scmp.ne.s32.totalorder %s7700_s14, 0 }
 0x14b   : > { %s5211_s17 = scalar_lea.hbm %s7681_s25, 48  ;;  %p5212_p0 = scmp.lt.u32.totalorder %s6543_s12, %s7681_s25 }
 0x14c   : > { %p5209_p12 = pnand %p5208_p3, %p7713_p7  ;;  %p5213_p1 = scmp.lt.u32.totalorder %s5211_s17, %s5207_s19 }
 0x14d   : > { %p5215_p4 = scmp.lt.u32.totalorder %s5207_s19, %s6543_s12 }
 0x14e   : > { %p5210_p13 = pneg %p5209_p12  ;;  %p5214_p2 = por %p5213_p1, %p5212_p0 }
 0x150   : > { %p5216_p11 = por %p5215_p4, %p5214_p2 }
 0x152   : > { %p5217_p9 = pnand %p5216_p11, %p5210_p13 }
 0x154   : > { %5220 = shalt.err (!%p5217_p9)
}
 0x155   : > { %s5221_s22 = scalar_lea.vmem %s1078_s6, 16  ;;  %s6050_s3 = smov [#allocation14]  }
 0x156   : > { %p5222_p5 = scmp.ne.s32.totalorder %s1078_s6, %s5221_s22  ;;  %s5225_s8 = sshll.u32 %s6050_s3, 4  ;;  %s5226_s8 = int_to_ptr.vmem [resolvable:$false] %s5225_s8 }
 0x157   : > { %s5227_s0 = scalar_lea.vmem %s5226_s8, 32  ;;  %p5228_p3 = scmp.lt.s32.totalorder %s1078_s6, %s5226_s8 }
 0x158   : > { %p5223_p10 = pnand %p5222_p5, %p7713_p7  ;;  %p5229_p12 = scmp.lt.s32.totalorder %s5227_s0, %s5221_s22 }
 0x15a   : > { %p5224_p6 = pneg %p5223_p10  ;;  %p5230_p8 = por %p5229_p12, %p5228_p3 }
 0x15c   : > { %p5231_p0 = pnand %p5230_p8, %p5224_p6 }
 0x15e   : > { %5234 = shalt.err (!%p5231_p0)
}
 0x15f   : > { %s7714_s17 = sld [smem:[#allocation78_spill]]  ;;  %s1108_s0 = scalar_lea.vmem [#allocation17], %s6520_s20 }
 0x160   : > { %4663 = dma.hbm_to_vmem [thread:$0]  (%p7713_p7), %s6543_s12, 16, %s1078_s6, %s7615_s18  }
 0x161   : > { %s1115_s22 = sshll.u32 %s1108_s0, 4  ;;  %s7617_s3 = scalar_lea.sflag [#allocation18], %s6491_s11  ;;  %s1116_s22 = int_to_ptr.vmem [resolvable:$true] %s1115_s22 }
 0x165   : > { %s6564_s19 = scalar_lea.hbm %s7714_s17, %s6539_s9  ;;  %s5239_s21 = scalar_lea.hbm %s7714_s17, 48 }
 0x166   : > { %s5235_s8 = scalar_lea.hbm %s6564_s19, 16  ;;  %p5240_p2 = scmp.lt.u32.totalorder %s6564_s19, %s7714_s17 }
 0x167   : > { %p5236_p8 = scmp.ne.s32.totalorder %s6564_s19, %s5235_s8  ;;  %p5241_p4 = scmp.lt.u32.totalorder %s5239_s21, %s5235_s8 }
 0x168   : > { %p5243_p9 = scmp.lt.u32.totalorder %s5235_s8, %s6564_s19 }
 0x169   : > { %p5237_p13 = pnand %p5236_p8, %p7713_p7  ;;  %p5242_p11 = por %p5241_p4, %p5240_p2 }
 0x16b   : > { %p5238_p1 = pneg %p5237_p13  ;;  %p5244_p5 = por %p5243_p9, %p5242_p11 }
 0x16d   : > { %p5245_p10 = pnand %p5244_p5, %p5238_p1 }
 0x16f   : > { %5248 = shalt.err (!%p5245_p10)
}
 0x170   : > { %s5249_s12 = scalar_lea.vmem %s1116_s22, 16  ;;  %s6051_s6 = smov [#allocation17]  }
 0x171   : > { %p5250_p6 = scmp.ne.s32.totalorder %s1116_s22, %s5249_s12  ;;  %s5253_s0 = sshll.u32 %s6051_s6, 4  ;;  %s5254_s0 = int_to_ptr.vmem [resolvable:$false] %s5253_s0 }
 0x172   : > { %s5255_s18 = scalar_lea.vmem %s5254_s0, 32  ;;  %p5256_p0 = scmp.lt.s32.totalorder %s1116_s22, %s5254_s0 }
 0x173   : > { %p5251_p3 = pnand %p5250_p6, %p7713_p7  ;;  %p5257_p8 = scmp.lt.s32.totalorder %s5255_s18, %s5249_s12 }
 0x175   : > { %p5252_p12 = pneg %p5251_p3  ;;  %p5258_p13 = por %p5257_p8, %p5256_p0 }
 0x177   : > { %p5259_p2 = pnand %p5258_p13, %p5252_p12 }
 0x179   : > { %5262 = shalt.err (!%p5259_p2)
}
 0x17a   : > { %s7715_s21 = sld [smem:[#allocation80_spill]]  ;;  %s1146_s18 = scalar_lea.vmem [#allocation20], %s6520_s20 }
 0x17b   : > { %4665 = dma.hbm_to_vmem [thread:$0]  (%p7713_p7), %s6564_s19, 16, %s1116_s22, %s7617_s3  }
 0x17c   : > { %s1153_s12 = sshll.u32 %s1146_s18, 4  ;;  %s7619_s6 = scalar_lea.sflag [#allocation21], %s6491_s11  ;;  %s1154_s12 = int_to_ptr.vmem [resolvable:$true] %s1153_s12 }
 0x180   : > { %s6585_s8 = scalar_lea.hbm %s7715_s21, %s6539_s9  ;;  %s5267_s17 = scalar_lea.hbm %s7715_s21, 48 }
 0x181   : > { %s5263_s0 = scalar_lea.hbm %s6585_s8, 16  ;;  %p5268_p9 = scmp.lt.u32.totalorder %s6585_s8, %s7715_s21 }
 0x182   : > { %p5264_p1 = scmp.ne.s32.totalorder %s6585_s8, %s5263_s0  ;;  %p5269_p5 = scmp.lt.u32.totalorder %s5267_s17, %s5263_s0 }
 0x183   : > { %p5271_p6 = scmp.lt.u32.totalorder %s5263_s0, %s6585_s8 }
 0x184   : > { %p5265_p4 = pnand %p5264_p1, %p7713_p7  ;;  %p5270_p10 = por %p5269_p5, %p5268_p9 }
 0x186   : > { %p5266_p11 = pneg %p5265_p4  ;;  %p5272_p3 = por %p5271_p6, %p5270_p10 }
 0x188   : > { %p5273_p12 = pnand %p5272_p3, %p5266_p11 }
 0x18a   : > { %5276 = shalt.err (!%p5273_p12)
}
 0x18b   : > { %s5277_s19 = scalar_lea.vmem %s1154_s12, 16  ;;  %s6052_s22 = smov [#allocation20]  }
 0x18c   : > { %p5278_p0 = scmp.ne.s32.totalorder %s1154_s12, %s5277_s19  ;;  %s5281_s18 = sshll.u32 %s6052_s22, 4  ;;  %s5282_s18 = int_to_ptr.vmem [resolvable:$false] %s5281_s18 }
 0x18d   : > { %s5283_s3 = scalar_lea.vmem %s5282_s18, 32  ;;  %p5284_p2 = scmp.lt.s32.totalorder %s1154_s12, %s5282_s18 }
 0x18e   : > { %p5279_p8 = pnand %p5278_p0, %p7713_p7  ;;  %p5285_p1 = scmp.lt.s32.totalorder %s5283_s3, %s5277_s19 }
 0x190   : > { %p5280_p13 = pneg %p5279_p8  ;;  %p5286_p4 = por %p5285_p1, %p5284_p2 }
 0x192   : > { %p5287_p5 = pnand %p5286_p4, %p5280_p13 }
 0x194   : > { %5290 = shalt.err (!%p5287_p5)
}
 0x195   : > { %s7716_s17 = sld [smem:[#allocation82_spill]]  ;;  %s1184_s3 = scalar_lea.vmem [#allocation23], %s6520_s20 }
 0x196   : > { %4667 = dma.hbm_to_vmem [thread:$0]  (%p7713_p7), %s6585_s8, 16, %s1154_s12, %s7619_s6  }
 0x197   : > { %s1191_s19 = sshll.u32 %s1184_s3, 4  ;;  %s7621_s22 = scalar_lea.sflag [#allocation24], %s6491_s11  ;;  %s1192_s19 = int_to_ptr.vmem [resolvable:$true] %s1191_s19 }
 0x19b   : > { %s6606_s0 = scalar_lea.hbm %s7716_s17, %s6539_s9  ;;  %s5295_s21 = scalar_lea.hbm %s7716_s17, 48 }
 0x19c   : > { %s5291_s18 = scalar_lea.hbm %s6606_s0, 16  ;;  %p5296_p6 = scmp.lt.u32.totalorder %s6606_s0, %s7716_s17 }
 0x19d   : > { %p5292_p11 = scmp.ne.s32.totalorder %s6606_s0, %s5291_s18  ;;  %p5297_p3 = scmp.lt.u32.totalorder %s5295_s21, %s5291_s18 }
 0x19e   : > { %p5299_p0 = scmp.lt.u32.totalorder %s5291_s18, %s6606_s0 }
 0x19f   : > { %p5293_p9 = pnand %p5292_p11, %p7713_p7  ;;  %p5298_p12 = por %p5297_p3, %p5296_p6 }
 0x1a1   : > { %p5294_p10 = pneg %p5293_p9  ;;  %p5300_p8 = por %p5299_p0, %p5298_p12 }
 0x1a3   : > { %p5301_p13 = pnand %p5300_p8, %p5294_p10 }
 0x1a5   : > { %5304 = shalt.err (!%p5301_p13)
}
 0x1a6   : > { %s5305_s8 = scalar_lea.vmem %s1192_s19, 16  ;;  %s6053_s12 = smov [#allocation23]  }
 0x1a7   : > { %p5306_p2 = scmp.ne.s32.totalorder %s1192_s19, %s5305_s8  ;;  %s5309_s3 = sshll.u32 %s6053_s12, 4  ;;  %s5310_s3 = int_to_ptr.vmem [resolvable:$false] %s5309_s3 }
 0x1a8   : > { %s5311_s6 = scalar_lea.vmem %s5310_s3, 32  ;;  %p5312_p5 = scmp.lt.s32.totalorder %s1192_s19, %s5310_s3 }
 0x1a9   : > { %p5307_p1 = pnand %p5306_p2, %p7713_p7  ;;  %p5313_p11 = scmp.lt.s32.totalorder %s5311_s6, %s5305_s8 }
 0x1ab   : > { %p5308_p4 = pneg %p5307_p1  ;;  %p5314_p9 = por %p5313_p11, %p5312_p5 }
 0x1ad   : > { %p5315_p3 = pnand %p5314_p9, %p5308_p4 }
 0x1af   : > { %5318 = shalt.err (!%p5315_p3)
}
 0x1b0   : > { %s7717_s21 = sld [smem:[#allocation84_spill]]  ;;  %s1222_s6 = scalar_lea.vmem [#allocation26], %s6520_s20 }
 0x1b1   : > { %4669 = dma.hbm_to_vmem [thread:$0]  (%p7713_p7), %s6606_s0, 16, %s1192_s19, %s7621_s22  }
 0x1b2   : > { %s1229_s8 = sshll.u32 %s1222_s6, 4  ;;  %s7625_s12 = scalar_lea.sflag [#allocation27], %s6491_s11  ;;  %s1230_s8 = int_to_ptr.vmem [resolvable:$true] %s1229_s8 }
 0x1b6   : > { %s6627_s18 = scalar_lea.hbm %s7717_s21, %s6539_s9  ;;  %s5323_s17 = scalar_lea.hbm %s7717_s21, 48 }
 0x1b7   : > { %s5319_s3 = scalar_lea.hbm %s6627_s18, 16  ;;  %p5324_p0 = scmp.lt.u32.totalorder %s6627_s18, %s7717_s21 }
 0x1b8   : > { %p5320_p10 = scmp.ne.s32.totalorder %s6627_s18, %s5319_s3  ;;  %p5325_p8 = scmp.lt.u32.totalorder %s5323_s17, %s5319_s3 }
 0x1b9   : > { %p5327_p2 = scmp.lt.u32.totalorder %s5319_s3, %s6627_s18 }
 0x1ba   : > { %p5321_p6 = pnand %p5320_p10, %p7713_p7  ;;  %p5326_p13 = por %p5325_p8, %p5324_p0 }
 0x1bc   : > { %p5322_p12 = pneg %p5321_p6  ;;  %p5328_p1 = por %p5327_p2, %p5326_p13 }
 0x1be   : > { %p5329_p4 = pnand %p5328_p1, %p5322_p12 }
 0x1c0   : > { %5332 = shalt.err (!%p5329_p4)
}
 0x1c1   : > { %s5333_s0 = scalar_lea.vmem %s1230_s8, 16  ;;  %s6054_s19 = smov [#allocation26]  }
 0x1c2   : > { %p5334_p5 = scmp.ne.s32.totalorder %s1230_s8, %s5333_s0  ;;  %s5337_s6 = sshll.u32 %s6054_s19, 4  ;;  %s5338_s6 = int_to_ptr.vmem [resolvable:$false] %s5337_s6 }
 0x1c3   : > { %s5339_s22 = scalar_lea.vmem %s5338_s6, 32  ;;  %p5340_p3 = scmp.lt.s32.totalorder %s1230_s8, %s5338_s6 }
 0x1c4   : > { %p5335_p11 = pnand %p5334_p5, %p7713_p7  ;;  %p5341_p10 = scmp.lt.s32.totalorder %s5339_s22, %s5333_s0 }
 0x1c6   : > { %p5336_p9 = pneg %p5335_p11  ;;  %p5342_p6 = por %p5341_p10, %p5340_p3 }
 0x1c8   : > { %p5343_p0 = pnand %p5342_p6, %p5336_p9 }
 0x1ca   : > { %5346 = shalt.err (!%p5343_p0)
}
 0x1cb   : > { %s7718_s17 = sld [smem:[#allocation86_spill]]  ;;  %s1260_s22 = scalar_lea.vmem [#allocation29], %s6520_s20 }
 0x1cc   : > { %4671 = dma.hbm_to_vmem [thread:$0]  (%p7713_p7), %s6627_s18, 16, %s1230_s8, %s7625_s12  }
 0x1cd   : > { %s1267_s0 = sshll.u32 %s1260_s22, 4  ;;  %s7628_s19 = sshll.u32 %s6520_s20, 2  ;;  %s6652_s0 = int_to_ptr.vmem [resolvable:$true] %s1267_s0 }
 0x1ce   : > { %s7630_s6 = sshll.u32 %s6001_s1, 6  ;;  %s7627_s21 = scalar_lea.sflag [#allocation30], %s6491_s11 }
 0x1d1   : > { %s6648_s3 = scalar_lea.hbm %s7718_s17, %s6539_s9  ;;  %s5351_s27 = scalar_lea.hbm %s7718_s17, 48 }
 0x1d2   : > { %s5347_s25 = scalar_lea.hbm %s6648_s3, 16  ;;  %p5352_p2 = scmp.lt.u32.totalorder %s6648_s3, %s7718_s17 }
 0x1d3   : > { %p5348_p12 = scmp.ne.s32.totalorder %s6648_s3, %s5347_s25  ;;  %p5353_p1 = scmp.lt.u32.totalorder %s5351_s27, %s5347_s25 }
 0x1d4   : > { %p5355_p5 = scmp.lt.u32.totalorder %s5347_s25, %s6648_s3 }
 0x1d5   : > { %p5349_p8 = pnand %p5348_p12, %p7713_p7  ;;  %p5354_p4 = por %p5353_p1, %p5352_p2 }
 0x1d7   : > { %p5350_p13 = pneg %p5349_p8  ;;  %p5356_p11 = por %p5355_p5, %p5354_p4 }
 0x1d9   : > { %p5357_p9 = pnand %p5356_p11, %p5350_p13 }
 0x1db   : > { %5360 = shalt.err (!%p5357_p9)
}
 0x1dc   : > { %s5361_s18 = scalar_lea.vmem %s6652_s0, 16  ;;  %s6055_s8 = smov [#allocation29]  }
 0x1dd   : > { %p5362_p3 = scmp.ne.s32.totalorder %s6652_s0, %s5361_s18  ;;  %s5365_s22 = sshll.u32 %s6055_s8, 4  ;;  %s5366_s22 = int_to_ptr.vmem [resolvable:$false] %s5365_s22 }
 0x1de   : > { %s5367_s12 = scalar_lea.vmem %s5366_s22, 32  ;;  %p5368_p0 = scmp.lt.s32.totalorder %s6652_s0, %s5366_s22 }
 0x1df   : > { %p5363_p10 = pnand %p5362_p3, %p7713_p7  ;;  %p5369_p12 = scmp.lt.s32.totalorder %s5367_s12, %s5361_s18 }
 0x1e1   : > { %p5364_p6 = pneg %p5363_p10  ;;  %p5370_p8 = por %p5369_p12, %p5368_p0 }
 0x1e3   : > { %p5371_p2 = pnand %p5370_p8, %p5364_p6 }
 0x1e5   : > { %5374 = shalt.err (!%p5371_p2)
}
 0x1e6   : > { %s7719_s25 = sld [smem:[#allocation88_spill]]  ;;  %s1296_s12 = scalar_lea.vmem [#allocation32], %s7628_s19 }
 0x1e7   : > { %4673 = dma.hbm_to_vmem [thread:$0]  (%p7713_p7), %s6648_s3, 16, %s6652_s0, %s7627_s21  }
 0x1e8   : > { %s1303_s18 = sshll.u32 %s1296_s12, 4  ;;  %s7629_s8 = scalar_lea.sflag [#allocation33], %s6491_s11  ;;  %s1304_s18 = int_to_ptr.vmem [resolvable:$true] %s1303_s18 }
 0x1ec   : > { %s6678_s27 = scalar_lea.hbm %s7719_s25, %s7630_s6  ;;  %s5379_s17 = scalar_lea.hbm %s7719_s25, 192 }
 0x1ed   : > { %s5375_s22 = scalar_lea.hbm %s6678_s27, 64  ;;  %p5380_p5 = scmp.lt.u32.totalorder %s6678_s27, %s7719_s25 }
 0x1ee   : > { %p5376_p13 = scmp.ne.s32.totalorder %s6678_s27, %s5375_s22  ;;  %p5381_p11 = scmp.lt.u32.totalorder %s5379_s17, %s5375_s22 }
 0x1ef   : > { %p5383_p3 = scmp.lt.u32.totalorder %s5375_s22, %s6678_s27 }
 0x1f0   : > { %p5377_p1 = pnand %p5376_p13, %p7713_p7  ;;  %p5382_p9 = por %p5381_p11, %p5380_p5 }
 0x1f2   : > { %p5378_p4 = pneg %p5377_p1  ;;  %p5384_p10 = por %p5383_p3, %p5382_p9 }
 0x1f4   : > { %p5385_p6 = pnand %p5384_p10, %p5378_p4 }
 0x1f6   : > { %5388 = shalt.err (!%p5385_p6)
}
 0x1f7   : > { %s5389_s3 = scalar_lea.vmem %s1304_s18, 64  ;;  %s6056_s0 = smov [#allocation32]  }
 0x1f8   : > { %p5390_p0 = scmp.ne.s32.totalorder %s1304_s18, %s5389_s3  ;;  %s5393_s12 = sshll.u32 %s6056_s0, 4  ;;  %s5394_s12 = int_to_ptr.vmem [resolvable:$false] %s5393_s12 }
 0x1f9   : > { %s5395_s21 = scalar_lea.vmem %s5394_s12, 128  ;;  %p5396_p2 = scmp.lt.s32.totalorder %s1304_s18, %s5394_s12 }
 0x1fa   : > { %p5391_p12 = pnand %p5390_p0, %p7713_p7  ;;  %p5397_p13 = scmp.lt.s32.totalorder %s5395_s21, %s5389_s3 }
 0x1fc   : > { %p5392_p8 = pneg %p5391_p12  ;;  %p5398_p1 = por %p5397_p13, %p5396_p2 }
 0x1fe   : > { %p5399_p5 = pnand %p5398_p1, %p5392_p8 }
 0x200   : > { %5402 = shalt.err (!%p5399_p5)
}
 0x201   : > { %s7720_s17 = sld [smem:[#allocation90_spill]]  ;;  %s1334_s21 = scalar_lea.vmem [#allocation35], %s6520_s20 }
 0x202   : > { %4675 = dma.hbm_to_vmem [thread:$0]  (%p7713_p7), %s6678_s27, 64, %s1304_s18, %s7629_s8  }
 0x203   : > { %s1341_s3 = sshll.u32 %s1334_s21, 4  ;;  %s7633_s0 = scalar_lea.sflag [#allocation36], %s6491_s11  ;;  %s1342_s3 = int_to_ptr.vmem [resolvable:$true] %s1341_s3 }
 0x207   : > { %s6700_s22 = scalar_lea.hbm %s7720_s17, %s6539_s9  ;;  %s5407_s19 = scalar_lea.hbm %s7720_s17, 48 }
 0x208   : > { %s5403_s12 = scalar_lea.hbm %s6700_s22, 16  ;;  %p5408_p3 = scmp.lt.u32.totalorder %s6700_s22, %s7720_s17 }
 0x209   : > { %p5404_p4 = scmp.ne.s32.totalorder %s6700_s22, %s5403_s12  ;;  %p5409_p10 = scmp.lt.u32.totalorder %s5407_s19, %s5403_s12 }
 0x20a   : > { %p5411_p0 = scmp.lt.u32.totalorder %s5403_s12, %s6700_s22 }
 0x20b   : > { %p5405_p11 = pnand %p5404_p4, %p7713_p7  ;;  %p5410_p6 = por %p5409_p10, %p5408_p3 }
 0x20d   : > { %p5406_p9 = pneg %p5405_p11  ;;  %p5412_p12 = por %p5411_p0, %p5410_p6 }
 0x20f   : > { %p5413_p8 = pnand %p5412_p12, %p5406_p9 }
 0x211   : > { %5416 = shalt.err (!%p5413_p8)
}
 0x212   : > { %s5417_s27 = scalar_lea.vmem %s1342_s3, 16  ;;  %s6057_s18 = smov [#allocation35]  }
 0x213   : > { %p5418_p2 = scmp.ne.s32.totalorder %s1342_s3, %s5417_s27  ;;  %s5421_s21 = sshll.u32 %s6057_s18, 4  ;;  %s5422_s21 = int_to_ptr.vmem [resolvable:$false] %s5421_s21 }
 0x214   : > { %s5423_s8 = scalar_lea.vmem %s5422_s21, 32  ;;  %p5424_p5 = scmp.lt.s32.totalorder %s1342_s3, %s5422_s21 }
 0x215   : > { %p5419_p13 = pnand %p5418_p2, %p7713_p7  ;;  %p5425_p4 = scmp.lt.s32.totalorder %s5423_s8, %s5417_s27 }
 0x217   : > { %p5420_p1 = pneg %p5419_p13  ;;  %p5426_p11 = por %p5425_p4, %p5424_p5 }
 0x219   : > { %p5427_p3 = pnand %p5426_p11, %p5420_p1 }
 0x21b   : > { %5430 = shalt.err (!%p5427_p3)
}
 0x21c   : > { %s7721_s19 = sld [smem:[#allocation71_spill]]  ;;  %s975_s8 = scalar_lea.vmem [#allocation5], %s6488_s28 }
 0x21d   : > { %4677 = dma.hbm_to_vmem [thread:$0]  (%p7713_p7), %s6700_s22, 16, %s1342_s3, %s7633_s0  }
 0x21e   : > { %s982_s27 = sshll.u32 %s975_s8, 4  ;;  %s7722_s18 = sand.u32 1, %s5989_s23   ;;  %s983_s27 = int_to_ptr.vmem [resolvable:$true] %s982_s27 }
 0x21f   : > { %s972_s21 = scalar_lea.sflag [#allocation6], %s7722_s18  ;;  %p7723_p10 = scmp.ne.s32.totalorder %s7694_s26, 0 }
 0x222   : > { %s6721_s12 = scalar_lea.hbm %s7721_s19, %s6484_s10  ;;  %s5435_s17 = scalar_lea.hbm %s7721_s19, 256 }
 0x223   : > { %s5431_s6 = scalar_lea.hbm %s6721_s12, 128  ;;  %p5436_p12 = scmp.lt.u32.totalorder %s6721_s12, %s7721_s19 }
 0x224   : > { %p5432_p9 = scmp.ne.s32.totalorder %s6721_s12, %s5431_s6  ;;  %p5437_p8 = scmp.lt.u32.totalorder %s5435_s17, %s5431_s6 }
 0x225   : > { %p5439_p13 = scmp.lt.u32.totalorder %s5431_s6, %s6721_s12 }
 0x226   : > { %p5433_p6 = pnand %p5432_p9, %p7723_p10  ;;  %p5438_p2 = por %p5437_p8, %p5436_p12 }
 0x228   : > { %p5434_p0 = pneg %p5433_p6  ;;  %p5440_p1 = por %p5439_p13, %p5438_p2 }
 0x22a   : > { %p5441_p5 = pnand %p5440_p1, %p5434_p0 }
 0x22c   : > { %5444 = shalt.err (!%p5441_p5)
}
 0x22d   : > { %s5445_s22 = scalar_lea.vmem %s983_s27, 128  ;;  %s6058_s3 = smov [#allocation5]  }
 0x22e   : > { %p5446_p4 = scmp.ne.s32.totalorder %s983_s27, %s5445_s22  ;;  %s5449_s8 = sshll.u32 %s6058_s3, 4  ;;  %s5450_s8 = int_to_ptr.vmem [resolvable:$false] %s5449_s8 }
 0x22f   : > { %s5451_s18 = scalar_lea.vmem %s5450_s8, 256  ;;  %p5452_p9 = scmp.lt.s32.totalorder %s983_s27, %s5450_s8 }
 0x230   : > { %p5447_p11 = pnand %p5446_p4, %p7723_p10  ;;  %p5453_p6 = scmp.lt.s32.totalorder %s5451_s18, %s5445_s22 }
 0x232   : > { %p5448_p3 = pneg %p5447_p11  ;;  %p5454_p7 = por %p5453_p6, %p5452_p9 }
 0x234   : > { %p5455_p8 = pnand %p5454_p7, %p5448_p3 }
 0x236   : > { %5458 = shalt.err (!%p5455_p8)
}
 0x237   : > { %s7724_s6 = sld [smem:[#allocation73_spill]]  ;;  %s1011_s22 = scalar_lea.vmem [#allocation10], %s6488_s28 }
 0x238   : > { %4658 = dma.hbm_to_vmem [thread:$0]  (%p7723_p10), %s6721_s12, 128, %s983_s27, %s972_s21  }
 0x239   : > { %s1018_s3 = sshll.u32 %s1011_s22, 4  ;;  %s6747_s8 = sshll.u32 %s6520_s20, 4  ;;  %s6744_s3 = int_to_ptr.vmem [resolvable:$true] %s1018_s3 }
 0x23d   : > { %s6741_s17 = scalar_lea.hbm %s7724_s6, %s6484_s10  ;;  %s5463_s0 = scalar_lea.hbm %s7724_s6, 256 }
 0x23e   : > { %s5459_s18 = scalar_lea.hbm %s6741_s17, 128  ;;  %p5464_p2 = scmp.lt.u32.totalorder %s6741_s17, %s7724_s6 }
 0x23f   : > { %p5460_p7 = scmp.ne.s32.totalorder %s6741_s17, %s5459_s18  ;;  %p5465_p13 = scmp.lt.u32.totalorder %s5463_s0, %s5459_s18 }
 0x240   : > { %p5467_p5 = scmp.lt.u32.totalorder %s5459_s18, %s6741_s17 }
 0x241   : > { %p5461_p0 = pnand %p5460_p7, %p7723_p10  ;;  %p5466_p1 = por %p5465_p13, %p5464_p2 }
 0x243   : > { %p5462_p12 = pneg %p5461_p0  ;;  %p5468_p4 = por %p5467_p5, %p5466_p1 }
 0x245   : > { %p5469_p11 = pnand %p5468_p4, %p5462_p12 }
 0x247   : > { %5472 = shalt.err (!%p5469_p11)
}
 0x248   : > { %s5473_s10 = scalar_lea.vmem %s6744_s3, 128  ;;  %s6059_s28 = smov [#allocation10]  }
 0x249   : > { %p5474_p3 = scmp.ne.s32.totalorder %s6744_s3, %s5473_s10  ;;  %s5477_s12 = sshll.u32 %s6059_s28, 4  ;;  %s5478_s12 = int_to_ptr.vmem [resolvable:$false] %s5477_s12 }
 0x24a   : > { %s5479_s27 = scalar_lea.vmem %s5478_s12, 256  ;;  %p5480_p8 = scmp.lt.s32.totalorder %s6744_s3, %s5478_s12 }
 0x24b   : > { %p5475_p9 = pnand %p5474_p3, %p7723_p10  ;;  %p5481_p7 = scmp.lt.s32.totalorder %s5479_s27, %s5473_s10 }
 0x24d   : > { %p5476_p6 = pneg %p5475_p9  ;;  %p5482_p0 = por %p5481_p7, %p5480_p8 }
 0x24f   : > { %p5483_p2 = pnand %p5482_p0, %p5476_p6 }
 0x251   : > { %5486 = shalt.err (!%p5483_p2)
}
 0x252   : > { %s6060_s0 = smov 64   ;;  %s7725_s21 = sld [smem:[#allocation75_spill]] }
 0x253   : > { %s6061_s22 = smov 4   ;;  %s7726_s18 = scalar_lea.sflag [#allocation9], %s6491_s11 }
 0x254   : > { %4660 = dma.hbm_to_vmem [thread:$0]  (%p7723_p10), %s6741_s17, 128, %s6744_s3, %s7726_s18, %s6060_s0, %s6060_s0, %s6061_s22  }
 0x255   : > { %s6772_s10 = sshll.u32 %s6001_s1, 8  ;;  %s1050_s12 = scalar_lea.vmem [#allocation13], %s6747_s8 }
 0x256   : > { %s1057_s27 = sshll.u32 %s1050_s12, 4  ;;  %p7727_p13 = scmp.ne.s32.totalorder %s7700_s14, 0  ;;  %s6779_s27 = int_to_ptr.vmem [resolvable:$true] %s1057_s27 }
 0x258   : > { %s6776_s28 = scalar_lea.hbm %s7725_s21, %s6772_s10  ;;  %s5491_s26 = scalar_lea.hbm %s7725_s21, 768 }
 0x259   : > { %s5487_s6 = scalar_lea.hbm %s6776_s28, 256  ;;  %p5492_p10 = scmp.lt.u32.totalorder %s6776_s28, %s7725_s21 }
 0x25a   : > { %p5488_p12 = scmp.ne.s32.totalorder %s6776_s28, %s5487_s6  ;;  %p5493_p4 = scmp.lt.u32.totalorder %s5491_s26, %s5487_s6 }
 0x25b   : > { %p5495_p3 = scmp.lt.u32.totalorder %s5487_s6, %s6776_s28 }
 0x25c   : > { %p5489_p1 = pnand %p5488_p12, %p7727_p13  ;;  %p5494_p11 = por %p5493_p4, %p5492_p10 }
 0x25e   : > { %p5490_p5 = pneg %p5489_p1  ;;  %p5496_p9 = por %p5495_p3, %p5494_p11 }
 0x260   : > { %p5497_p6 = pnand %p5496_p9, %p5490_p5 }
 0x262   : > { %5500 = shalt.err (!%p5497_p6)
}
 0x263   : > { %s5501_s17 = scalar_lea.vmem %s6779_s27, 256  ;;  %s6062_s3 = smov [#allocation13]  }
 0x264   : > { %p5502_p8 = scmp.ne.s32.totalorder %s6779_s27, %s5501_s17  ;;  %s5505_s18 = sshll.u32 %s6062_s3, 4  ;;  %s5506_s18 = int_to_ptr.vmem [resolvable:$false] %s5505_s18 }
 0x265   : > { %s5507_s12 = scalar_lea.vmem %s5506_s18, 512  ;;  %p5508_p2 = scmp.lt.s32.totalorder %s6779_s27, %s5506_s18 }
 0x266   : > { %p5503_p7 = pnand %p5502_p8, %p7727_p13  ;;  %p5509_p12 = scmp.lt.s32.totalorder %s5507_s12, %s5501_s17 }
 0x268   : > { %p5504_p0 = pneg %p5503_p7  ;;  %p5510_p1 = por %p5509_p12, %p5508_p2 }
 0x26a   : > { %p5511_p10 = pnand %p5510_p1, %p5504_p0 }
 0x26c   : > { %5514 = shalt.err (!%p5511_p10)
}
 0x26d   : > { %s7728_s6 = scalar_lea.sflag [#allocation12], %s6491_s11  ;;  %s7729_s26 = sld [smem:[#allocation77_spill]] }
 0x26e   : > { %4662 = dma.hbm_to_vmem [thread:$0]  (%p7727_p13), %s6776_s28, 256, %s6779_s27, %s7728_s6, %s6060_s0, %s6060_s0, %s6061_s22  }
 0x26f   : > { %s1088_s3 = scalar_lea.vmem [#allocation16], %s6747_s8 }
 0x270   : > { %s1095_s18 = sshll.u32 %s1088_s3, 4  ;;  %s6808_s18 = int_to_ptr.vmem [resolvable:$true] %s1095_s18 }
 0x273   : > { %s7730_s19 = smov %s7729_s26  ;;  %s6805_s17 = scalar_lea.hbm %s7729_s26, %s6772_s10 }
 0x274   : > { %s5515_s12 = scalar_lea.hbm %s6805_s17, 256  ;;  %s5519_s21 = scalar_lea.hbm %s7730_s19, 768 }
 0x275   : > { %p5516_p5 = scmp.ne.s32.totalorder %s6805_s17, %s5515_s12  ;;  %p5520_p3 = scmp.lt.u32.totalorder %s6805_s17, %s7730_s19 }
 0x276   : > { %p5521_p9 = scmp.lt.u32.totalorder %s5519_s21, %s5515_s12  ;;  %p5523_p8 = scmp.lt.u32.totalorder %s5515_s12, %s6805_s17 }
 0x277   : > { %p5517_p4 = pnand %p5516_p5, %p7727_p13 }
 0x278   : > { %p5522_p6 = por %p5521_p9, %p5520_p3 }
 0x279   : > { %p5518_p11 = pneg %p5517_p4 }
 0x27a   : > { %p5524_p7 = por %p5523_p8, %p5522_p6 }
 0x27c   : > { %p5525_p0 = pnand %p5524_p7, %p5518_p11 }
 0x27e   : > { %5528 = shalt.err (!%p5525_p0)
}
 0x27f   : > { %s5529_s28 = scalar_lea.vmem %s6808_s18, 256  ;;  %s6063_s27 = smov [#allocation16]  }
 0x280   : > { %p5530_p2 = scmp.ne.s32.totalorder %s6808_s18, %s5529_s28  ;;  %s5533_s6 = sshll.u32 %s6063_s27, 4  ;;  %s5534_s6 = int_to_ptr.vmem [resolvable:$false] %s5533_s6 }
 0x281   : > { %s5535_s26 = scalar_lea.vmem %s5534_s6, 512  ;;  %p5536_p10 = scmp.lt.s32.totalorder %s6808_s18, %s5534_s6 }
 0x282   : > { %p5531_p12 = pnand %p5530_p2, %p7727_p13  ;;  %p5537_p5 = scmp.lt.s32.totalorder %s5535_s26, %s5529_s28 }
 0x284   : > { %p5532_p1 = pneg %p5531_p12  ;;  %p5538_p4 = por %p5537_p5, %p5536_p10 }
 0x286   : > { %p5539_p3 = pnand %p5538_p4, %p5532_p1 }
 0x288   : > { %5542 = shalt.err (!%p5539_p3)
}
 0x289   : > { %s7731_s21 = scalar_lea.sflag [#allocation15], %s6491_s11  ;;  %s7732_s3 = sld [smem:[#allocation79_spill]] }
 0x28a   : > { %4664 = dma.hbm_to_vmem [thread:$0]  (%p7727_p13), %s6805_s17, 256, %s6808_s18, %s7731_s21, %s6060_s0, %s6060_s0, %s6061_s22  }
 0x28b   : > { %s1126_s28 = scalar_lea.vmem [#allocation19], %s6747_s8 }
 0x28c   : > { %s1133_s27 = sshll.u32 %s1126_s28, 4  ;;  %s6837_s27 = int_to_ptr.vmem [resolvable:$true] %s1133_s27 }
 0x28f   : > { %s6834_s12 = scalar_lea.hbm %s7732_s3, %s6772_s10  ;;  %s5547_s26 = scalar_lea.hbm %s7732_s3, 768 }
 0x290   : > { %s5543_s6 = scalar_lea.hbm %s6834_s12, 256  ;;  %p5548_p8 = scmp.lt.u32.totalorder %s6834_s12, %s7732_s3 }
 0x291   : > { %p5544_p11 = scmp.ne.s32.totalorder %s6834_s12, %s5543_s6  ;;  %p5549_p7 = scmp.lt.u32.totalorder %s5547_s26, %s5543_s6 }
 0x292   : > { %p5551_p2 = scmp.lt.u32.totalorder %s5543_s6, %s6834_s12 }
 0x293   : > { %p5545_p9 = pnand %p5544_p11, %p7727_p13  ;;  %p5550_p0 = por %p5549_p7, %p5548_p8 }
 0x295   : > { %p5546_p6 = pneg %p5545_p9  ;;  %p5552_p12 = por %p5551_p2, %p5550_p0 }
 0x297   : > { %p5553_p1 = pnand %p5552_p12, %p5546_p6 }
 0x299   : > { %5556 = shalt.err (!%p5553_p1)
}
 0x29a   : > { %s5557_s17 = scalar_lea.vmem %s6837_s27, 256  ;;  %s6064_s18 = smov [#allocation19]  }
 0x29b   : > { %p5558_p10 = scmp.ne.s32.totalorder %s6837_s27, %s5557_s17  ;;  %s5561_s21 = sshll.u32 %s6064_s18, 4  ;;  %s5562_s21 = int_to_ptr.vmem [resolvable:$false] %s5561_s21 }
 0x29c   : > { %s5563_s28 = scalar_lea.vmem %s5562_s21, 512  ;;  %p5564_p3 = scmp.lt.s32.totalorder %s6837_s27, %s5562_s21 }
 0x29d   : > { %p5559_p5 = pnand %p5558_p10, %p7727_p13  ;;  %p5565_p11 = scmp.lt.s32.totalorder %s5563_s28, %s5557_s17 }
 0x29f   : > { %p5560_p4 = pneg %p5559_p5  ;;  %p5566_p9 = por %p5565_p11, %p5564_p3 }
 0x2a1   : > { %p5567_p8 = pnand %p5566_p9, %p5560_p4 }
 0x2a3   : > { %5570 = shalt.err (!%p5567_p8)
}
 0x2a4   : > { %s7733_s6 = scalar_lea.sflag [#allocation18], %s6491_s11  ;;  %s7734_s26 = sld [smem:[#allocation81_spill]] }
 0x2a5   : > { %4666 = dma.hbm_to_vmem [thread:$0]  (%p7727_p13), %s6834_s12, 256, %s6837_s27, %s7733_s6, %s6060_s0, %s6060_s0, %s6061_s22  }
 0x2a6   : > { %s1164_s18 = scalar_lea.vmem [#allocation22], %s6747_s8 }
 0x2a7   : > { %s1171_s21 = sshll.u32 %s1164_s18, 4  ;;  %s6866_s21 = int_to_ptr.vmem [resolvable:$true] %s1171_s21 }
 0x2aa   : > { %s7735_s3 = smov %s7734_s26  ;;  %s6863_s17 = scalar_lea.hbm %s7734_s26, %s6772_s10 }
 0x2ab   : > { %s5571_s28 = scalar_lea.hbm %s6863_s17, 256  ;;  %s5575_s19 = scalar_lea.hbm %s7735_s3, 768 }
 0x2ac   : > { %p5572_p6 = scmp.ne.s32.totalorder %s6863_s17, %s5571_s28  ;;  %p5576_p2 = scmp.lt.u32.totalorder %s6863_s17, %s7735_s3 }
 0x2ad   : > { %p5577_p12 = scmp.lt.u32.totalorder %s5575_s19, %s5571_s28  ;;  %p5579_p10 = scmp.lt.u32.totalorder %s5571_s28, %s6863_s17 }
 0x2ae   : > { %p5573_p7 = pnand %p5572_p6, %p7727_p13 }
 0x2af   : > { %p5578_p1 = por %p5577_p12, %p5576_p2 }
 0x2b0   : > { %p5574_p0 = pneg %p5573_p7 }
 0x2b1   : > { %p5580_p5 = por %p5579_p10, %p5578_p1 }
 0x2b3   : > { %p5581_p4 = pnand %p5580_p5, %p5574_p0 }
 0x2b5   : > { %5584 = shalt.err (!%p5581_p4)
}
 0x2b6   : > { %s5585_s12 = scalar_lea.vmem %s6866_s21, 256  ;;  %s6065_s27 = smov [#allocation22]  }
 0x2b7   : > { %p5586_p3 = scmp.ne.s32.totalorder %s6866_s21, %s5585_s12  ;;  %s5589_s6 = sshll.u32 %s6065_s27, 4  ;;  %s5590_s6 = int_to_ptr.vmem [resolvable:$false] %s5589_s6 }
 0x2b8   : > { %s5591_s26 = scalar_lea.vmem %s5590_s6, 512  ;;  %p5592_p8 = scmp.lt.s32.totalorder %s6866_s21, %s5590_s6 }
 0x2b9   : > { %p5587_p11 = pnand %p5586_p3, %p7727_p13  ;;  %p5593_p6 = scmp.lt.s32.totalorder %s5591_s26, %s5585_s12 }
 0x2bb   : > { %p5588_p9 = pneg %p5587_p11  ;;  %p5594_p7 = por %p5593_p6, %p5592_p8 }
 0x2bd   : > { %p5595_p2 = pnand %p5594_p7, %p5588_p9 }
 0x2bf   : > { %5598 = shalt.err (!%p5595_p2)
}
 0x2c0   : > { %s7736_s19 = scalar_lea.sflag [#allocation21], %s6491_s11  ;;  %s7737_s18 = sld [smem:[#allocation83_spill]] }
 0x2c1   : > { %4668 = dma.hbm_to_vmem [thread:$0]  (%p7727_p13), %s6863_s17, 256, %s6866_s21, %s7736_s19, %s6060_s0, %s6060_s0, %s6061_s22  }
 0x2c2   : > { %s1202_s12 = scalar_lea.vmem [#allocation25], %s6747_s8 }
 0x2c3   : > { %s1209_s27 = sshll.u32 %s1202_s12, 4  ;;  %s6895_s27 = int_to_ptr.vmem [resolvable:$true] %s1209_s27 }
 0x2c6   : > { %s7738_s3 = smov %s7737_s18  ;;  %s6892_s28 = scalar_lea.hbm %s7737_s18, %s6772_s10 }
 0x2c7   : > { %s5599_s6 = scalar_lea.hbm %s6892_s28, 256  ;;  %s5603_s26 = scalar_lea.hbm %s7738_s3, 768 }
 0x2c8   : > { %p5600_p0 = scmp.ne.s32.totalorder %s6892_s28, %s5599_s6  ;;  %p5604_p10 = scmp.lt.u32.totalorder %s6892_s28, %s7738_s3 }
 0x2c9   : > { %p5605_p5 = scmp.lt.u32.totalorder %s5603_s26, %s5599_s6  ;;  %p5607_p3 = scmp.lt.u32.totalorder %s5599_s6, %s6892_s28 }
 0x2ca   : > { %p5601_p12 = pnand %p5600_p0, %p7727_p13 }
 0x2cb   : > { %p5606_p4 = por %p5605_p5, %p5604_p10 }
 0x2cc   : > { %p5602_p1 = pneg %p5601_p12 }
 0x2cd   : > { %p5608_p11 = por %p5607_p3, %p5606_p4 }
 0x2cf   : > { %p5609_p9 = pnand %p5608_p11, %p5602_p1 }
 0x2d1   : > { %5612 = shalt.err (!%p5609_p9)
}
 0x2d2   : > { %s5613_s17 = scalar_lea.vmem %s6895_s27, 256  ;;  %s6066_s21 = smov [#allocation25]  }
 0x2d3   : > { %p5614_p8 = scmp.ne.s32.totalorder %s6895_s27, %s5613_s17  ;;  %s5617_s19 = sshll.u32 %s6066_s21, 4  ;;  %s5618_s19 = int_to_ptr.vmem [resolvable:$false] %s5617_s19 }
 0x2d4   : > { %s5619_s18 = scalar_lea.vmem %s5618_s19, 512  ;;  %p5620_p2 = scmp.lt.s32.totalorder %s6895_s27, %s5618_s19 }
 0x2d5   : > { %p5615_p6 = pnand %p5614_p8, %p7727_p13  ;;  %p5621_p0 = scmp.lt.s32.totalorder %s5619_s18, %s5613_s17 }
 0x2d7   : > { %p5616_p7 = pneg %p5615_p6  ;;  %p5622_p12 = por %p5621_p0, %p5620_p2 }
 0x2d9   : > { %p5623_p10 = pnand %p5622_p12, %p5616_p7 }
 0x2db   : > { %5626 = shalt.err (!%p5623_p10)
}
 0x2dc   : > { %s7739_s12 = scalar_lea.sflag [#allocation24], %s6491_s11  ;;  %s7740_s6 = sld [smem:[#allocation85_spill]] }
 0x2dd   : > { %4670 = dma.hbm_to_vmem [thread:$0]  (%p7727_p13), %s6892_s28, 256, %s6895_s27, %s7739_s12, %s6060_s0, %s6060_s0, %s6061_s22  }
 0x2de   : > { %s1240_s17 = scalar_lea.vmem [#allocation28], %s6747_s8 }
 0x2df   : > { %s1247_s21 = sshll.u32 %s1240_s17, 4  ;;  %s6924_s21 = int_to_ptr.vmem [resolvable:$true] %s1247_s21 }
 0x2e2   : > { %s6921_s26 = scalar_lea.hbm %s7740_s6, %s6772_s10  ;;  %s5631_s18 = scalar_lea.hbm %s7740_s6, 768 }
 0x2e3   : > { %s5627_s19 = scalar_lea.hbm %s6921_s26, 256  ;;  %p5632_p3 = scmp.lt.u32.totalorder %s6921_s26, %s7740_s6 }
 0x2e4   : > { %p5628_p1 = scmp.ne.s32.totalorder %s6921_s26, %s5627_s19  ;;  %p5633_p11 = scmp.lt.u32.totalorder %s5631_s18, %s5627_s19 }
 0x2e5   : > { %p5635_p8 = scmp.lt.u32.totalorder %s5627_s19, %s6921_s26 }
 0x2e6   : > { %p5629_p5 = pnand %p5628_p1, %p7727_p13  ;;  %p5634_p9 = por %p5633_p11, %p5632_p3 }
 0x2e8   : > { %p5630_p4 = pneg %p5629_p5  ;;  %p5636_p6 = por %p5635_p8, %p5634_p9 }
 0x2ea   : > { %p5637_p7 = pnand %p5636_p6, %p5630_p4 }
 0x2ec   : > { %5640 = shalt.err (!%p5637_p7)
}
 0x2ed   : > { %s5641_s28 = scalar_lea.vmem %s6924_s21, 256  ;;  %s6067_s27 = smov [#allocation28]  }
 0x2ee   : > { %p5642_p2 = scmp.ne.s32.totalorder %s6924_s21, %s5641_s28  ;;  %s5645_s12 = sshll.u32 %s6067_s27, 4  ;;  %s5646_s12 = int_to_ptr.vmem [resolvable:$false] %s5645_s12 }
 0x2ef   : > { %s5647_s17 = scalar_lea.vmem %s5646_s12, 512  ;;  %p5648_p10 = scmp.lt.s32.totalorder %s6924_s21, %s5646_s12 }
 0x2f0   : > { %p5643_p0 = pnand %p5642_p2, %p7727_p13  ;;  %p5649_p1 = scmp.lt.s32.totalorder %s5647_s17, %s5641_s28 }
 0x2f2   : > { %p5644_p12 = pneg %p5643_p0  ;;  %p5650_p5 = por %p5649_p1, %p5648_p10 }
 0x2f4   : > { %p5651_p3 = pnand %p5650_p5, %p5644_p12 }
 0x2f6   : > { %5654 = shalt.err (!%p5651_p3)
}
 0x2f7   : > { %s7741_s19 = scalar_lea.sflag [#allocation27], %s6491_s11  ;;  %s7742_s18 = sld [smem:[#allocation87_spill]] }
 0x2f8   : > { %4672 = dma.hbm_to_vmem [thread:$0]  (%p7727_p13), %s6921_s26, 256, %s6924_s21, %s7741_s19, %s6060_s0, %s6060_s0, %s6061_s22  }
 0x2f9   : > { %s7744_s28 = sshll.u32 %s6001_s1, 6  ;;  %s7745_s12 = sshll.u32 %s6520_s20, 2 }
 0x2fa   : > { %s1278_s17 = scalar_lea.vmem [#allocation31], %s7745_s12 }
 0x2fb   : > { %s1285_s6 = sshll.u32 %s1278_s17, 4  ;;  %s1286_s6 = int_to_ptr.vmem [resolvable:$true] %s1285_s6 }
 0x2fd   : > { %s7743_s3 = smov %s7742_s18  ;;  %s6951_s27 = scalar_lea.hbm %s7742_s18, %s7744_s28 }
 0x2fe   : > { %s5655_s25 = scalar_lea.hbm %s6951_s27, 64  ;;  %s5659_s29 = scalar_lea.hbm %s7743_s3, 192 }
 0x2ff   : > { %p5656_p4 = scmp.ne.s32.totalorder %s6951_s27, %s5655_s25  ;;  %p5660_p8 = scmp.lt.u32.totalorder %s6951_s27, %s7743_s3 }
 0x300   : > { %p5661_p6 = scmp.lt.u32.totalorder %s5659_s29, %s5655_s25  ;;  %p5663_p2 = scmp.lt.u32.totalorder %s5655_s25, %s6951_s27 }
 0x301   : > { %p5657_p11 = pnand %p5656_p4, %p7727_p13 }
 0x302   : > { %p5662_p7 = por %p5661_p6, %p5660_p8 }
 0x303   : > { %p5658_p9 = pneg %p5657_p11 }
 0x304   : > { %p5664_p0 = por %p5663_p2, %p5662_p7 }
 0x306   : > { %p5665_p12 = pnand %p5664_p0, %p5658_p9 }
 0x308   : > { %5668 = shalt.err (!%p5665_p12)
}
 0x309   : > { %s5669_s26 = scalar_lea.vmem %s1286_s6, 64  ;;  %s6068_s21 = smov [#allocation31]  }
 0x30a   : > { %p5670_p10 = scmp.ne.s32.totalorder %s1286_s6, %s5669_s26  ;;  %s5673_s19 = sshll.u32 %s6068_s21, 4  ;;  %s5674_s19 = int_to_ptr.vmem [resolvable:$false] %s5673_s19 }
 0x30b   : > { %s5675_s18 = scalar_lea.vmem %s5674_s19, 128  ;;  %p5676_p3 = scmp.lt.s32.totalorder %s1286_s6, %s5674_s19 }
 0x30c   : > { %p5671_p1 = pnand %p5670_p10, %p7727_p13  ;;  %p5677_p4 = scmp.lt.s32.totalorder %s5675_s18, %s5669_s26 }
 0x30e   : > { %p5672_p5 = pneg %p5671_p1  ;;  %p5678_p11 = por %p5677_p4, %p5676_p3 }
 0x310   : > { %p5679_p6 = pnand %p5678_p11, %p5672_p5 }
 0x312   : > { %5682 = shalt.err (!%p5679_p6)
}
 0x313   : > { %s7746_s29 = scalar_lea.sflag [#allocation30], %s6491_s11  ;;  %s7747_s25 = sld [smem:[#allocation89_spill]] }
 0x314   : > { %4674 = dma.hbm_to_vmem [thread:$0]  (%p7727_p13), %s6951_s27, 64, %s1286_s6, %s7746_s29  }
 0x315   : > { %s1314_s12 = scalar_lea.vmem [#allocation34], %s6747_s8  ;;  %s4283_s26 = sshll.u32 %s6520_s20, 5 }
 0x316   : > { %s1321_s17 = sshll.u32 %s1314_s12, 4  ;;  %s6975_s17 = int_to_ptr.vmem [resolvable:$true] %s1321_s17 }
 0x319   : > { %s6972_s28 = scalar_lea.hbm %s7747_s25, %s6772_s10  ;;  %s5687_s19 = scalar_lea.hbm %s7747_s25, 768 }
 0x31a   : > { %s5683_s21 = scalar_lea.hbm %s6972_s28, 256  ;;  %p5688_p2 = scmp.lt.u32.totalorder %s6972_s28, %s7747_s25 }
 0x31b   : > { %p5684_p9 = scmp.ne.s32.totalorder %s6972_s28, %s5683_s21  ;;  %p5689_p0 = scmp.lt.u32.totalorder %s5687_s19, %s5683_s21 }
 0x31c   : > { %p5691_p10 = scmp.lt.u32.totalorder %s5683_s21, %s6972_s28 }
 0x31d   : > { %p5685_p8 = pnand %p5684_p9, %p7727_p13  ;;  %p5690_p12 = por %p5689_p0, %p5688_p2 }
 0x31f   : > { %p5686_p7 = pneg %p5685_p8  ;;  %p5692_p1 = por %p5691_p10, %p5690_p12 }
 0x321   : > { %p5693_p5 = pnand %p5692_p1, %p5686_p7 }
 0x323   : > { %5696 = shalt.err (!%p5693_p5)
}
 0x324   : > { %s5697_s8 = scalar_lea.vmem %s6975_s17, 256  ;;  %s6069_s10 = smov [#allocation34]  }
 0x325   : > { %p5698_p3 = scmp.ne.s32.totalorder %s6975_s17, %s5697_s8  ;;  %s5701_s6 = sshll.u32 %s6069_s10, 4  ;;  %s5702_s6 = int_to_ptr.vmem [resolvable:$false] %s5701_s6 }
 0x326   : > { %s5703_s27 = scalar_lea.vmem %s5702_s6, 512  ;;  %p5704_p6 = scmp.lt.s32.totalorder %s6975_s17, %s5702_s6 }
 0x327   : > { %p5699_p4 = pnand %p5698_p3, %p7727_p13  ;;  %p5705_p9 = scmp.lt.s32.totalorder %s5703_s27, %s5697_s8 }
 0x329   : > { %p5700_p11 = pneg %p5699_p4  ;;  %p5706_p8 = por %p5705_p9, %p5704_p6 }
 0x32b   : > { %p5707_p2 = pnand %p5706_p8, %p5700_p11 }
 0x32d   : > { %5710 = shalt.err (!%p5707_p2)
}
 0x32e   : > { %s7748_s18 = scalar_lea.sflag [#allocation33], %s6491_s11  ;;  %s7749_s29 = sld [smem:[#allocation91_spill]] }
 0x32f   : > { %4676 = dma.hbm_to_vmem [thread:$0]  (%p7727_p13), %s6972_s28, 256, %s6975_s17, %s7748_s18, %s6060_s0, %s6060_s0, %s6061_s22  }
 0x330   : > { %s4390_s12 = sshll.u32 %s6001_s1, 9  ;;  %s1352_s19 = scalar_lea.vmem [#allocation37], %s4283_s26 }
 0x331   : > { %s1359_s8 = sshll.u32 %s1352_s19, 4  ;;  %s7006_s8 = int_to_ptr.vmem [resolvable:$true] %s1359_s8 }
 0x334   : > { %s7002_s21 = scalar_lea.hbm %s7749_s29, %s4390_s12  ;;  %s5715_s6 = scalar_lea.hbm %s7749_s29, 1536 }
 0x335   : > { %s5711_s10 = scalar_lea.hbm %s7002_s21, 512  ;;  %p5716_p10 = scmp.lt.u32.totalorder %s7002_s21, %s7749_s29 }
 0x336   : > { %p5712_p7 = scmp.ne.s32.totalorder %s7002_s21, %s5711_s10  ;;  %p5717_p1 = scmp.lt.u32.totalorder %s5715_s6, %s5711_s10 }
 0x337   : > { %p5719_p3 = scmp.lt.u32.totalorder %s5711_s10, %s7002_s21 }
 0x338   : > { %p5713_p0 = pnand %p5712_p7, %p7727_p13  ;;  %p5718_p5 = por %p5717_p1, %p5716_p10 }
 0x33a   : > { %p5714_p12 = pneg %p5713_p0  ;;  %p5720_p4 = por %p5719_p3, %p5718_p5 }
 0x33c   : > { %p5721_p11 = pnand %p5720_p4, %p5714_p12 }
 0x33e   : > { %5724 = shalt.err (!%p5721_p11)
}
 0x33f   : > { %s5725_s28 = scalar_lea.vmem %s7006_s8, 512  ;;  %s6070_s17 = smov [#allocation37]  }
 0x340   : > { %p5726_p6 = scmp.ne.s32.totalorder %s7006_s8, %s5725_s28  ;;  %s5729_s26 = sshll.u32 %s6070_s17, 4  ;;  %s5730_s26 = int_to_ptr.vmem [resolvable:$false] %s5729_s26 }
 0x341   : > { %s5731_s27 = scalar_lea.vmem %s5730_s26, 1024  ;;  %p5732_p2 = scmp.lt.s32.totalorder %s7006_s8, %s5730_s26 }
 0x342   : > { %p5727_p9 = pnand %p5726_p6, %p7727_p13  ;;  %p5733_p7 = scmp.lt.s32.totalorder %s5731_s27, %s5725_s28 }
 0x344   : > { %p5728_p8 = pneg %p5727_p9  ;;  %p5734_p0 = por %p5733_p7, %p5732_p2 }
 0x346   : > { %p5735_p10 = pnand %p5734_p0, %p5728_p8 }
 0x348   : > { %5738 = shalt.err (!%p5735_p10)
}
 0x349   : > { %s7750_s18 = scalar_lea.sflag [#allocation36], %s6491_s11  ;;  %s7751_s12 = sld [smem:[#allocation92_spill]] }
 0x34a   : > { %4678 = dma.hbm_to_vmem [thread:$0]  (%p7727_p13), %s7002_s21, 512, %s7006_s8, %s7750_s18, %s6060_s0, %s6060_s0, %s6061_s22  }
 0x34b   : > { %s1372_s10 = scalar_lea.vmem [#allocation38], %s6520_s20  ;;  %s1370_s28 = scalar_lea.sflag [#allocation39], %s6491_s11 }
 0x34c   : > { %s1379_s6 = sshll.u32 %s1372_s10, 4  ;;  %s1380_s6 = int_to_ptr.vmem [resolvable:$true] %s1379_s6 }
 0x34f   : > { %s7032_s19 = scalar_lea.hbm %s7751_s12, %s6539_s9  ;;  %s5743_s26 = scalar_lea.hbm %s7751_s12, 48 }
 0x350   : > { %s5739_s17 = scalar_lea.hbm %s7032_s19, 16  ;;  %p5744_p3 = scmp.lt.u32.totalorder %s7032_s19, %s7751_s12 }
 0x351   : > { %p5740_p12 = scmp.ne.s32.totalorder %s7032_s19, %s5739_s17  ;;  %p5745_p4 = scmp.lt.u32.totalorder %s5743_s26, %s5739_s17 }
 0x352   : > { %p5747_p6 = scmp.lt.u32.totalorder %s5739_s17, %s7032_s19 }
 0x353   : > { %p5741_p1 = pnand %p5740_p12, %p7727_p13  ;;  %p5746_p11 = por %p5745_p4, %p5744_p3 }
 0x355   : > { %p5742_p5 = pneg %p5741_p1  ;;  %p5748_p9 = por %p5747_p6, %p5746_p11 }
 0x357   : > { %p5749_p8 = pnand %p5748_p9, %p5742_p5 }
 0x359   : > { %5752 = shalt.err (!%p5749_p8)
}
 0x35a   : > { %s5753_s9 = scalar_lea.vmem %s1380_s6, 16  ;;  %s6071_s11 = smov [#allocation38]  }
 0x35b   : > { %p5754_p2 = scmp.ne.s32.totalorder %s1380_s6, %s5753_s9  ;;  %s5757_s20 = sshll.u32 %s6071_s11, 4  ;;  %s5758_s20 = int_to_ptr.vmem [resolvable:$false] %s5757_s20 }
 0x35c   : > { %s5759_s0 = scalar_lea.vmem %s5758_s20, 32  ;;  %p5760_p10 = scmp.lt.s32.totalorder %s1380_s6, %s5758_s20 }
 0x35d   : > { %p5755_p7 = pnand %p5754_p2, %p7727_p13  ;;  %p5761_p12 = scmp.lt.s32.totalorder %s5759_s0, %s5753_s9 }
 0x35f   : > { %p5756_p0 = pneg %p5755_p7  ;;  %p5762_p1 = por %p5761_p12, %p5760_p10 }
 0x361   : > { %p5763_p3 = pnand %p5762_p1, %p5756_p0 }
 0x363   : > { %5766 = shalt.err (!%p5763_p3)
}
 0x364   : > { %4679 = dma.hbm_to_vmem [thread:$0]  (%p7727_p13), %s7032_s19, 16, %s1380_s6, %s1370_s28  }
 0x365 PF: > { %p7752_p5 = scmp.ne.s32.totalorder %s7707_s30, 0 }
 0x366   : > { %s7753_s22 = sld [smem:[#allocation103_spill]] (!%p7752_p5)  ;;  %s7754_s21 = sld [smem:[#allocation108_spill]] (!%p7752_p5) }
 0x367   : > { %1388 = sbr.rel (%p7752_p5) target bundleno = 5510 (0x1586), region = 132 }
 0x36c   : > { %s1390_s8 = sand.u32 (!%p7752_p5), 1, %s7753_s22   ;;  %p7755_p4 = scmp.ne.s32.totalorder (!%p7752_p5), %s7754_s21, 0 }
 0x36d   : > { %s7052_s27 = sshll.u32 (!%p7752_p5), %s1390_s8, 3  ;;  %s1391_s18 = scalar_lea.sflag (!%p7752_p5), [#allocation6], %s1390_s8 }
 0x36e   : > { %s1394_s10 = scalar_lea.vmem [#allocation5], %s7052_s27 }
 0x36f   : > { %5880 = dma.done.wait (%p7755_p4), %s1391_s18, 128  }
 0x370   : > { %5882 = vsyncadd (%p7755_p4), %s1391_s18, 4294967168  ;;  %s7060_s14 = sand.u32 1, %s6310_s13   ;;  %s1403_s19 = scalar_lea.vmem [#allocation8], %s7052_s27 }
 0x371   : > { %s1400_s30 = scalar_lea.sflag [#allocation9], %s7060_s14 }
 0x372   : > { %5884 = dma.done.wait (%p7755_p4), %s1400_s30, 256  }
 0x373   : > { %5886 = vsyncadd (%p7755_p4), %s1400_s30, 4294967040  ;;  %s1418_s28 = scalar_lea.sflag [#allocation12], %s7060_s14  ;;  %s1421_s17 = scalar_lea.vmem [#allocation11], %s7052_s27 }
 0x374   : > { %5888 = dma.done.wait (%p7755_p4), %s1418_s28, 128  }
 0x375   : > { %5890 = vsyncadd (%p7755_p4), %s1418_s28, 4294967168  ;;  %s7076_s26 = sand.u32 1, %s5973_s15   ;;  %p7756_p13 = scmp.ne.s32.totalorder %s7701_s24, 0 }
 0x376   : > { %s7079_s9 = sshll.u32 %s7076_s26, 4 }
 0x377   : > { %s1430_s11 = scalar_lea.vmem [#allocation13], %s7079_s9 }
 0x378   : > { %5892 = dma.done.wait (%p7756_p13), %s1418_s28, 256  }
 0x379   : > { %5894 = vsyncadd (%p7756_p13), %s1418_s28, 4294967040  ;;  %s1436_s20 = scalar_lea.sflag [#allocation15], %s7060_s14 }
 0x37a   : > { %5896 = dma.done.wait (%p7756_p13), %s1436_s20, 272  }
 0x37b   : > { %5898 = vsyncadd (%p7756_p13), %s1436_s20, 4294967024  ;;  %s1453_s21 = scalar_lea.sflag [#allocation18], %s7060_s14 }
 0x37c   : > { %5900 = dma.done.wait (%p7756_p13), %s1453_s21, 272  }
 0x37d   : > { %5902 = vsyncadd (%p7756_p13), %s1453_s21, 4294967024  ;;  %s1470_s30 = scalar_lea.sflag [#allocation21], %s7060_s14 }
 0x37e   : > { %5904 = dma.done.wait (%p7756_p13), %s1470_s30, 272  }
 0x37f   : > { %5906 = vsyncadd (%p7756_p13), %s1470_s30, 4294967024  ;;  %s1487_s6 = scalar_lea.sflag [#allocation24], %s7060_s14 }
 0x380   : > { %5908 = dma.done.wait (%p7756_p13), %s1487_s6, 272  }
 0x381   : > { %5910 = vsyncadd (%p7756_p13), %s1487_s6, 4294967024  ;;  %s1504_s28 = scalar_lea.sflag [#allocation27], %s7060_s14 }
 0x382   : > { %5912 = dma.done.wait (%p7756_p13), %s1504_s28, 272  }
 0x383   : > { %5914 = vsyncadd (%p7756_p13), %s1504_s28, 4294967024  ;;  %s1521_s8 = scalar_lea.sflag [#allocation30], %s7060_s14 }
 0x384   : > { %5916 = dma.done.wait (%p7756_p13), %s1521_s8, 80  }
 0x385   : > { %5918 = vsyncadd (%p7756_p13), %s1521_s8, 4294967216  ;;  %s4298_s6 = sshll.u32 %s7076_s26, 2  ;;  %s1538_s21 = scalar_lea.sflag [#allocation33], %s7060_s14 }
 0x386   : > { %s7128_s18 = scalar_lea.vmem [#allocation31], %s4298_s6  ;;  %s7131_s28 = scalar_lea.vmem [#allocation32], %s4298_s6 }
 0x387   : > { %5920 = dma.done.wait (%p7756_p13), %s1538_s21, 320  }
 0x388   : > { %5922 = vsyncadd (%p7756_p13), %s1538_s21, 4294966976  ;;  %s1556_s8 = scalar_lea.sflag [#allocation36], %s7060_s14 }
 0x389   : > { %5924 = dma.done.wait (%p7756_p13), %s1556_s8, 528  }
 0x38a   : > { %5926 = vsyncadd (%p7756_p13), %s1556_s8, 4294966768  ;;  %s4301_s6 = sshll.u32 %s7076_s26, 5  ;;  %s1573_s21 = scalar_lea.sflag [#allocation39], %s7060_s14 }
 0x38b   : > { %s7145_s22 = scalar_lea.vmem [#allocation37], %s4301_s6 }
 0x38c   : > { %5928 = dma.done.wait (%p7756_p13), %s1573_s21, 16  }
 0x38d   : > { %5930 = vsyncadd (%p7756_p13), %s1573_s21, 4294967280  ;;  %p7757_p11 = scmp.eq.s32.totalorder %s6310_s13, 0 }
 0x38f   : > { %5932 = dma.done.wait (%p7757_p11), [#allocation39], 256   ;;  %p7758_p6 = pmov %p7757_p11 }
 0x391   : > { %5934 = vsyncadd (%p7758_p6), [#allocation39], 4294967040  ;;  %p7759_p9 = pmov %p7758_p6 }
 0x392   : > { %p7760_p8 = pmov %p7758_p6 }
 0x393   : > { %5936 = dma.done.wait (%p7759_p9), [#allocation42], 272  }
 0x394   : > { %5938 = vsyncadd (%p7760_p8), [#allocation42], 4294967024  ;;  %p7761_p2 = pmov %p7758_p6 }
 0x396   : > { %5940 = dma.done.wait (%p7761_p2), [#allocation45], 272   ;;  %p7762_p7 = pmov %p7761_p2 }
 0x397   : > { %p7763_p0 = pmov %p7761_p2 }
 0x398   : > { %5942 = vsyncadd (%p7762_p7), [#allocation45], 4294967024 }
 0x399   : > { %5944 = dma.done.wait (%p7763_p0), [#allocation48], 16   ;;  %p7764_p10 = pmov %p7763_p0 }
 0x39a   : > { %s7170_s24 = sand.u32 1, %s5961_s7   ;;  %s7765_s21 = sld [smem:[#allocation104_spill]] }
 0x39b   : > { %5946 = vsyncadd (%p7764_p10), [#allocation48], 4294967280  ;;  %s4308_s14 = sshll.u32 %s7170_s24, 3 }
 0x39c   : > { %s7173_s8 = scalar_lea.vmem [#allocation49], %s4308_s14  ;;  %s7175_s6 = scalar_lea.vmem [#allocation50], %s4308_s14 }
 0x3a0   : > { %p4310_p12 = scmp.ne.s32.totalorder %s7765_s21, 0 }
 0x3a1   : > { %v1781_v0 = vld [vmem:[%s1394_s10] sm:$0xff] (!%p4310_p12)  ;;  %vm1782_vm0 = vcmask (!%p4310_p12), 261120   ;;  %v1784_v1 = vld [vmem:[%s1421_s17] sm:$0xff] (!%p4310_p12)  ;;  %vm1785_vm1 = vcmask (!%p4310_p12), 56320  }
 0x3a2   : > { %1780 = sbr.rel (%p4310_p12) target bundleno = 937 (0x3a9), region = 248  ;;  %1783 = vst.msk [vmem:[#allocation2] sm:$0xff] (!%p4310_p12), %vm1782_vm0, %v1781_v0 }
 0x3a3   : > { %1786 = vst.msk [vmem:[#allocation3] sm:$0xff] (!%p4310_p12), %vm1785_vm1, %v1784_v1 }
 0x3a9 PF: > { %v4920_v2 = vld [vmem:[%s1430_s11] sm:$0xff]   ;;  %v6072_v3 = vmov 0.0   ;;  %v4921_v4 = vld [vmem:[%s1430_s11 + $0x8] sm:$0xff]   ;;  %vm6073_vm2 = vmmov 0   ;;  %vm1819_vm3 = vcmask 261120   ;;  %s7766_s13 = scalar_lea.vmem [#allocation14], %s7076_s26 }
 0x3aa   : > { %4458 = vmatprep.subr.bf16.mxu0 %v6072_v3  ;;  %4466 = vmatprep.subr.bf16.mxu1 %v6072_v3  ;;  %v7190_v5 = vld [vmem:[#allocation2] sm:$0xff]  ;;  %v7194_v6 = vld [vmem:[%s1403_s19] sm:$0xff]  ;;  %s6074_s10 = smov 120   ;;  %s6075_s19 = smov 96   ;;  %vm1934_vm4 = vcmask 64512   ;;  %vm1997_vm5 = vcmask 1043456  }
 0x3ab   : > { %4459 = vmatpush3.bf16.msra.mxu0 %v4920_v2  ;;  %4462 = vmatprep.mubr.msk.bf16.mxu0 %vm6073_vm2, %v6072_v3  ;;  %v1794_v7 = vadd.f32 %v7194_v6, %v7190_v5  ;;  %v4311_v9 = vld [vmem:[%s7766_s13] ss:$0 sm:$0xff]  ;;  %s7644_s17 = smov 80   ;;  %s6077_s11 = smov 88   ;;  %v1793_v18 = vpack.c.bf16 %v7190_v5, %v7190_v5  ;;  %vm2158_vm6 = vcmask 130112   ;;  %vm2275_vm7 = vcmask 195712  }
 0x3ac   : > { %4460 = vmatprep.subr.bf16.mxu0 %v6072_v3  ;;  %4470 = vmatprep.mubr.msk.bf16.mxu1 %vm6073_vm2, %v6072_v3  ;;  %s7648_s14 = smov 72   ;;  %s6079_s21 = smov 112   ;;  %vm2392_vm8 = vcmask 261312   ;;  %vm2678_vm9 = vcmask 130048   ;;  %vm3284_vm10 = vcmask 523264  }
 0x3ad   : > { %v1795_v8 = vpack.c.bf16 %v1794_v7, %v1794_v7  ;;  %s6080_s13 = smov 104   ;;  %s7767_s0 = scalar_lea.vmem [#allocation16], %s7079_s9 }
 0x3ae   : > { %v4922_v16 = vld [vmem:[%s7767_s0] sm:$0xff]   ;;  %s7768_s30 = smov %s7767_s0  ;;  %s7769_s0 = scalar_lea.vmem [#allocation17], %s7076_s26 }
 0x3af   : > { %4461 = vmatpush3.bf16.msra.mxu0 %v4921_v4  ;;  %4467 = vmatpush3.bf16.msra.mxu1 %v4922_v16  ;;  %v4923_v17 = vld [vmem:[%s7768_s30 + $0x8] sm:$0xff]   ;;  %v4315_v54 = vld [vmem:[%s7769_s0] ss:$0 sm:$0xff]  ;;  %s7645_s30 = smov 8   ;;  %s7647_s0 = smov 16  }
 0x3b0   : > { %4474 = vmatprep.subr.bf16.mxu0 %v6072_v3  ;;  %4468 = vmatprep.subr.bf16.mxu1 %v6072_v3  ;;  %s7770_s20 = scalar_lea.vmem [#allocation19], %s7079_s9  ;;  %p7795_p3 = scmp.ne.s32.totalorder %s7703_s4, 0 }
 0x3b2   : > { %4463 = vmatmul.mubr.msk.bf16.vlgmr.msra.gmra.mrb[0].mxu0 %vm1819_vm3, %v1795_v8 }
 0x3b3   : > { %4476 = vmatprep.mubr.msk.bf16.mxu0 %vm6073_vm2, %v6072_v3  ;;  %4469 = vmatpush3.bf16.msra.mxu1 %v4923_v17 }
 0x3b4   : > { %4480 = vmatprep.subr.bf16.mxu1 %v6072_v3 }
 0x3b6   : > { %4471 = vmatmul.mubr.msk.bf16.vlgmr.msra.gmra.mrb[0].mxu1 %vm1819_vm3, %v1793_v18 }
 0x3b7   : > { %4482 = vmatprep.mubr.msk.bf16.mxu1 %vm6073_vm2, %v6072_v3 }
 0x485   : > { %v1857_v10 = vpop.f32.mrb[0].mxu0 }
 0x486   : > { %v1858_v11 = vadd.f32 %v4311_v9, %v1857_v10  ;;  %v4464_v12 = vpop.f32.mrb[1].mxu0 }
 0x487   : > { %v1860_v13 = vpop.f32.mrb[2].mxu0 }
 0x488   : > { %v1929_v14 = vpack.c.bf16 %v1858_v11, %v1858_v11  ;;  %v4465_v15 = vpop.f32.mrb[3].mxu0 }
 0x489   : > { %v1923_v55 = vpop.f32.mrb[0].mxu1 }
 0x48a   : > { %2042 = vrot.lane.b32.xlu1 %v1929_v14, %s6074_s10  ;;  %1932 = vrot.lane.b32.xlu0 %v1929_v14, %s6075_s19  ;;  %v1924_v56 = vadd.f32 %v4315_v54, %v1923_v55  ;;  %v4472_v57 = vpop.f32.mrb[1].mxu1  ;;  %v4924_v55 = vld [vmem:[%s7770_s20] sm:$0xff]  }
 0x48b   : > { %v1926_v58 = vpop.f32.mrb[2].mxu1 }
 0x48c   : > { %v4473_v59 = vpop.f32.mrb[3].mxu1  ;;  %v1930_v60 = vpack.c.bf16 %v1924_v56, %v1924_v56 }
 0x48e   : > { %2162 = vrot.lane.b32.xlu1 %v1929_v14, %s7644_s17  ;;  %2044 = vrot.lane.b32.xlu0 %v1929_v14, %s6077_s11  ;;  %v1999_v61 = vsel %vm1997_vm5, %v1930_v60, 0  ;;  %s7771_s17 = smov %s7770_s20  ;;  %s7772_s20 = scalar_lea.vmem [#allocation20], %s7076_s26 }
 0x48f   : > { %4481 = vmatpush3.bf16.msra.mxu1 %v1999_v61  ;;  %v4925_v56 = vld [vmem:[%s7771_s17 + $0x8] sm:$0xff]   ;;  %s7773_s17 = scalar_lea.vmem [#allocation25], %s7079_s9 }
 0x490   : > { %4492 = vmatprep.subr.bf16.mxu1 %v6072_v3 }
 0x492   : > { %2279 = vrot.lane.b32.xlu1 %v1929_v14, %s7648_s14  ;;  %2160 = vrot.lane.b32.xlu0 %v1929_v14, %s6079_s21 }
 0x496   : > { %2277 = vrot.lane.b32.xlu0 %v1929_v14, %s6080_s13 }
 0x4fc   : > { %v1933_v19 = vpop.permute.xlu0 %1932  ;;  %v2043_v22 = vpop.permute.xlu1 %2042 }
 0x4fd   : > { %v1939_v20 = vsel %vm1934_vm4, %v1933_v19, 0 }
 0x4fe   : > { %4475 = vmatpush3.bf16.xpose.msra.mxu0 %v1939_v20 }
 0x4ff   : > { %4486 = vmatprep.subr.bf16.mxu0 %v6072_v3 }
 0x500   : > { %v2045_v21 = vpop.permute.xlu0 %2044  ;;  %v2163_v24 = vpop.permute.xlu1 %2162 }
 0x501   : > { %v2050_v23 = vsel %vm1934_vm4, %v2045_v21, 0  ;;  %v2168_v25 = vsel %vm1934_vm4, %v2163_v24, 0 }
 0x504   : > { %v2280_v26 = vpop.permute.xlu1 %2279  ;;  %v2161_v27 = vpop.permute.xlu0 %2160 }
 0x505   : > { %4477 = vmatmul.mubr.msk.bf16.vlgmr.msra.gmra.mrb[4].mxu0 %vm1934_vm4, %v1929_v14  ;;  %v2285_v28 = vsel %vm1934_vm4, %v2280_v26, 0 }
 0x506   : > { %4487 = vmatpush3.bf16.xpose.msra.mxu0 %v2050_v23  ;;  %4488 = vmatprep.mubr.msk.bf16.mxu0 %vm6073_vm2, %v6072_v3 }
 0x507   : > { %4498 = vmatprep.subr.bf16.mxu0 %v6072_v3 }
 0x508   : > { %v2278_v29 = vpop.permute.xlu0 %2277 }
 0x50d   : > { %4489 = vmatmul.mubr.msk.bf16.vlgmr.msra.gmra.mrb[8].mxu0 %vm1934_vm4, %v2043_v22 }
 0x50e   : > { %4499 = vmatpush3.bf16.xpose.msra.mxu0 %v2168_v25  ;;  %4500 = vmatprep.mubr.msk.bf16.mxu0 %vm6073_vm2, %v6072_v3 }
 0x50f   : > { %4510 = vmatprep.subr.bf16.mxu0 %v6072_v3 }
 0x515   : > { %4501 = vmatmul.mubr.msk.bf16.vlgmr.msra.gmra.mrb[12].mxu0 %vm1934_vm4, %v2161_v27 }
 0x516   : > { %4511 = vmatpush3.bf16.xpose.msra.mxu0 %v2285_v28  ;;  %4512 = vmatprep.mubr.msk.bf16.mxu0 %vm6073_vm2, %v6072_v3 }
 0x517   : > { %4522 = vmatprep.subr.bf16.mxu0 %v6072_v3 }
 0x51d   : > { %4513 = vmatmul.mubr.msk.bf16.vlgmr.msra.gmra.mrb[16].mxu0 %vm1934_vm4, %v2278_v29 }
 0x51e   : > { %4526 = vmatprep.mubr.msk.bf16.mxu0 %vm6073_vm2, %v6072_v3  ;;  %4523 = vmatpush3.bf16.msra.mxu0 %v4924_v55 }
 0x51f   : > { %4524 = vmatprep.subr.bf16.mxu0 %v6072_v3 }
 0x522   : > { %4525 = vmatpush3.bf16.msra.mxu0 %v4925_v56 }
 0x523   : > { %4538 = vmatprep.subr.bf16.mxu0 %v6072_v3 }
 0x5d8   : > { %v1975_v30 = vpop.f32.mrb[4].mxu0 }
 0x5d9   : > { %v1981_v31 = vmul.f32 0.35355338, %v1975_v30  ;;  %v4478_v32 = vpop.f32.mrb[5].mxu0 }
 0x5da   : > { %v1978_v33 = vpop.f32.mrb[6].mxu0 }
 0x5db   : > { %v4479_v34 = vpop.f32.mrb[7].mxu0  ;;  %v1982_v35 = vsel %vm1934_vm4, %v1981_v31, -inf }
 0x5dc   : > { %1983 = vmax.xlane.f32.xlu1 %v1982_v35 }
 0x5e0   : > { %v2086_v36 = vpop.f32.mrb[8].mxu0 }
 0x5e1   : > { %v2092_v37 = vmul.f32 0.35355338, %v2086_v36  ;;  %v4490_v38 = vpop.f32.mrb[9].mxu0 }
 0x5e2   : > { %v2089_v39 = vpop.f32.mrb[10].mxu0 }
 0x5e3   : > { %v4491_v40 = vpop.f32.mrb[11].mxu0  ;;  %v2093_v41 = vsel %vm1934_vm4, %v2092_v37, -inf }
 0x5e4   : > { %2094 = vmax.xlane.f32.xlu0 %v2093_v41 }
 0x5e8   : > { %v2204_v42 = vpop.f32.mrb[12].mxu0 }
 0x5e9   : > { %v2210_v43 = vmul.f32 0.35355338, %v2204_v42  ;;  %v4502_v44 = vpop.f32.mrb[13].mxu0 }
 0x5ea   : > { %v2207_v45 = vpop.f32.mrb[14].mxu0 }
 0x5eb   : > { %v4503_v46 = vpop.f32.mrb[15].mxu0  ;;  %v2211_v47 = vsel %vm1934_vm4, %v2210_v43, -inf }
 0x5ec   : > { %2212 = vmax.xlane.f32.xlu0 %v2211_v47 }
 0x5f0   : > { %v2321_v48 = vpop.f32.mrb[16].mxu0 }
 0x5f1   : > { %v2327_v49 = vmul.f32 0.35355338, %v2321_v48  ;;  %v4514_v50 = vpop.f32.mrb[17].mxu0 }
 0x5f2   : > { %v2324_v51 = vpop.f32.mrb[18].mxu0 }
 0x5f3   : > { %v4515_v52 = vpop.f32.mrb[19].mxu0  ;;  %v2328_v53 = vsel %vm1934_vm4, %v2327_v49, -inf }
 0x5f4   : > { %2329 = vmax.xlane.f32.xlu1 %v2328_v53 }
 0x669   : > { %v1984_v62 = vpop.xlane.xlu1 %1983 }
 0x66a   : > { %v1985_v63 = vsub.f32 %v1981_v31, %v1984_v62 }
 0x66c   : > { %v1986_v0 = vmul.f32 1.442695, %v1985_v63 }
 0x66e   : > { %4945 = vpow2.f32 %v1986_v0 }
 0x671   : > { %v2095_v1 = vpop.xlane.xlu0 %2094 }
 0x672   : > { %v2096_v2 = vsub.f32 %v2092_v37, %v2095_v1 }
 0x674   : > { %v2097_v4 = vmul.f32 1.442695, %v2096_v2  ;;  %v4327_v2 = vld [vmem:[%s7772_s20] ss:$0 sm:$0xff]  ;;  %s7774_s20 = smov %s7773_s17 }
 0x676   : > { %4947 = vpow2.f32 %v2097_v4 }
 0x678   : > { %v4946_v7 = vpop.eup %4945 }
 0x679   : > { %v2213_v8 = vpop.xlane.xlu0 %2212  ;;  %v1988_v9 = vsel %vm1934_vm4, %v4946_v7, 0.0 }
 0x67a   : > { %v2214_v10 = vsub.f32 %v2210_v43, %v2213_v8  ;;  %1989 = vadd.xlane.f32.xlu0 %v1988_v9 }
 0x67c   : > { %v2215_v11 = vmul.f32 1.442695, %v2214_v10 }
 0x67e   : > { %4949 = vpow2.f32 %v2215_v11 }
 0x680   : > { %v4948_v12 = vpop.eup %4947 }
 0x681   : > { %v2099_v13 = vsel %vm1934_vm4, %v4948_v12, 0.0  ;;  %v2330_v16 = vpop.xlane.xlu1 %2329 }
 0x682   : > { %2100 = vadd.xlane.f32.xlu1 %v2099_v13  ;;  %v2331_v17 = vsub.f32 %v2327_v49, %v2330_v16  ;;  %v4927_v16 = vld [vmem:[%s7774_s20 + $0x8] sm:$0xff]   ;;  %s7791_s20 = scalar_lea.vmem [#allocation38], %s7076_s26 }
 0x684   : > { %v2332_v18 = vmul.f32 1.442695, %v2331_v17 }
 0x686   : > { %4951 = vpow2.f32 %v2332_v18 }
 0x688   : > { %v4950_v14 = vpop.eup %4949 }
 0x689   : > { %v2217_v15 = vsel %vm1934_vm4, %v4950_v14, 0.0 }
 0x68a   : > { %2218 = vadd.xlane.f32.xlu0 %v2217_v15  ;;  %v4926_v15 = vld [vmem:[%s7773_s17] sm:$0xff]  }
 0x690   : > { %v4952_v19 = vpop.eup %4951 }
 0x691   : > { %v2334_v20 = vsel %vm1934_vm4, %v4952_v19, 0.0 }
 0x693   : > { %2223 = vrot.lane.b32.xlu1 %v1930_v60, %s6079_s21 }
 0x6a0   : > { %2106 = vrot.lane.b32.xlu0 %v1930_v60, %s6074_s10 }
 0x6b7   : > { %2335 = vadd.xlane.f32.xlu1 %v2334_v20 }
 0x6c8   : > { %2340 = vrot.lane.b32.xlu1 %v1930_v60, %s6080_s13 }
 0x707   : > { %v1990_v21 = vpop.xlane.xlu0 %1989 }
 0x708   : > { %4953 = vrcp.f32 %v1990_v21 }
 0x70f   : > { %v2101_v22 = vpop.xlane.xlu1 %2100 }
 0x710   : > { %4955 = vrcp.f32 %v2101_v22 }
 0x712   : > { %v4954_v23 = vpop.eup %4953 }
 0x713   : > { %v1992_v24 = vmul.f32 %v4954_v23, %v4946_v7  ;;  %v2224_v31 = vpop.permute.xlu1 %2223 }
 0x714   : > { %v2229_v33 = vsel %vm1997_vm5, %v2224_v31, 0 }
 0x715   : > { %v1993_v25 = vpack.c.bf16 %v1992_v24, %v1992_v24 }
 0x717   : > { %v2219_v26 = vpop.xlane.xlu0 %2218  ;;  %4483 = vmatmul.mubr.msk.bf16.vlgmr.msra.gmra.mrb[4].mxu1 %vm1934_vm4, %v1993_v25  ;;  %v2479_v25 = vlaneseq }
 0x718   : > { %4957 = vrcp.f32 %v2219_v26  ;;  %4494 = vmatprep.mubr.msk.bf16.mxu1 %vm6073_vm2, %v6072_v3 }
 0x71a   : > { %v4956_v27 = vpop.eup %4955 }
 0x71b   : > { %v2103_v28 = vmul.f32 %v4956_v27, %v4948_v12  ;;  %v2107_v29 = vpop.permute.xlu0 %2106  ;;  %v7316_v27 = vshrl.u32 %v2479_v25, 7 }
 0x71c   : > { %v2112_v30 = vsel %vm1997_vm5, %v2107_v29, 0  ;;  %v7320_v29 = vld [vmem:[%s7128_s18] sm:$0x7]  ;;  %s7779_s18 = scalar_lea.vmem [#allocation23], %s7076_s26 }
 0x71d   : > { %4493 = vmatpush3.bf16.msra.mxu1 %v2112_v30  ;;  %v2104_v32 = vpack.c.bf16 %v2103_v28, %v2103_v28  ;;  %v2481_v28 = vsub.s32 0, %v7316_v27  ;;  %v7323_v30 = vld [vmem:[%s7131_s28] sm:$0x7]  ;;  %s7780_s28 = smov 72  }
 0x71e   : > { %4504 = vmatprep.subr.bf16.mxu1 %v6072_v3 }
 0x720   : > { %4495 = vmatmul.mubr.msk.bf16.vlgmr.msra.gmra.mrb[8].mxu1 %vm1934_vm4, %v2104_v32  ;;  %v2482_v32 = vrot.slane %v7320_v29, %v2481_v28 }
 0x721   : > { %4505 = vmatpush3.bf16.msra.mxu1 %v2229_v33  ;;  %4506 = vmatprep.mubr.msk.bf16.mxu1 %vm6073_vm2, %v6072_v3 }
 0x722   : > { %v4958_v34 = vpop.eup %4957  ;;  %4516 = vmatprep.subr.bf16.mxu1 %v6072_v3 }
 0x723   : > { %v2221_v35 = vmul.f32 %v4958_v34, %v4950_v14 }
 0x725   : > { %v2222_v36 = vpack.c.bf16 %v2221_v35, %v2221_v35  ;;  %v2487_v35 = vrot.slane %v7323_v30, %v2481_v28 }
 0x728   : > { %4507 = vmatmul.mubr.msk.bf16.vlgmr.msra.gmra.mrb[12].mxu1 %vm1934_vm4, %v2222_v36 }
 0x729   : > { %4518 = vmatprep.mubr.msk.bf16.mxu1 %vm6073_vm2, %v6072_v3 }
 0x744   : > { %v2336_v37 = vpop.xlane.xlu1 %2335 }
 0x745   : > { %4959 = vrcp.f32 %v2336_v37 }
 0x748   : > { %v2341_v38 = vpop.permute.xlu1 %2340 }
 0x749   : > { %v2346_v39 = vsel %vm1997_vm5, %v2341_v38, 0 }
 0x74a   : > { %4517 = vmatpush3.bf16.msra.mxu1 %v2346_v39 }
 0x74b   : > { %4530 = vmatprep.subr.bf16.mxu1 %v6072_v3 }
 0x74f   : > { %v4960_v40 = vpop.eup %4959 }
 0x750   : > { %v2338_v41 = vmul.f32 %v4960_v40, %v4952_v19 }
 0x752   : > { %v2339_v42 = vpack.c.bf16 %v2338_v41, %v2338_v41 }
 0x754   : > { %4519 = vmatmul.mubr.msk.bf16.vlgmr.msra.gmra.mrb[16].mxu1 %vm1934_vm4, %v2339_v42 }
 0x755   : > { %4534 = vmatprep.mubr.msk.bf16.mxu1 %vm6073_vm2, %v6072_v3 }
 0x7ea   : > { %v2035_v43 = vpop.f32.mrb[4].mxu1 }
 0x7eb   : > { %2041 = vst.msk [vmem:[#allocation4] sm:$0xff] %vm1934_vm4, %v2035_v43  ;;  %v4484_v44 = vpop.f32.mrb[5].mxu1 }
 0x7ec   : > { %v2038_v45 = vpop.f32.mrb[6].mxu1 }
 0x7ed   : > { %v4485_v46 = vpop.f32.mrb[7].mxu1 }
 0x7f3   : > { %v2148_v47 = vpop.f32.mrb[8].mxu1 }
 0x7f4   : > { %2155 = vrot.lane.b32.xlu0 %v2148_v47, %s7645_s30  ;;  %v4496_v48 = vpop.f32.mrb[9].mxu1  ;;  %s7646_s30 = smov 24  }
 0x7f5   : > { %v2151_v49 = vpop.f32.mrb[10].mxu1  ;;  %v4331_v48 = vld [vmem:[%s7779_s18] ss:$0 sm:$0xff] }
 0x7f6   : > { %v4497_v50 = vpop.f32.mrb[11].mxu1 }
 0x7fb   : > { %v2265_v51 = vpop.f32.mrb[12].mxu1 }
 0x7fc   : > { %2272 = vrot.lane.b32.xlu1 %v2265_v51, %s7647_s0  ;;  %v4508_v52 = vpop.f32.mrb[13].mxu1  ;;  %s7776_s0 = scalar_lea.vmem [#allocation22], %s7079_s9 }
 0x7fd   : > { %v2268_v53 = vpop.f32.mrb[14].mxu1  ;;  %v4929_v17 = vld [vmem:[%s7776_s0] sm:$0xff]   ;;  %s7777_s14 = smov %s7776_s0  ;;  %s7788_s0 = scalar_lea.vmem [#allocation34], %s7079_s9 }
 0x7fe   : > { %v4509_v54 = vpop.f32.mrb[15].mxu1  ;;  %4531 = vmatpush3.bf16.msra.mxu1 %v4929_v17  ;;  %v4930_v18 = vld [vmem:[%s7777_s14 + $0x8] sm:$0xff]   ;;  %s7789_s17 = smov %s7788_s0 }
 0x7ff   : > { %4532 = vmatprep.subr.bf16.mxu1 %v6072_v3 }
 0x802   : > { %4533 = vmatpush3.bf16.msra.mxu1 %v4930_v18 }
 0x803   : > { %4546 = vmatprep.subr.bf16.mxu1 %v6072_v3 }
 0x827   : > { %v2382_v57 = vpop.f32.mrb[16].mxu1 }
 0x828   : > { %2389 = vrot.lane.b32.xlu0 %v2382_v57, %s7646_s30  ;;  %v4520_v58 = vpop.f32.mrb[17].mxu1  ;;  %s7775_s30 = scalar_lea.vmem [#allocation10], %s7052_s27  ;;  %s7778_s27 = scalar_lea.vmem [#allocation26], %s7076_s26 }
 0x829   : > { %v2385_v59 = vpop.f32.mrb[18].mxu1  ;;  %v4335_v40 = vld [vmem:[%s7778_s27] ss:$0 sm:$0xff]  ;;  %s7794_s27 = sld [smem:[#allocation99_spill]] }
 0x82a   : > { %v4521_v60 = vpop.f32.mrb[19].mxu1 }
 0x866   : > { %v2156_v61 = vpop.permute.xlu0 %2155 }
 0x867   : > { %2159 = vst.msk [vmem:[#allocation4] sm:$0xff] %vm2158_vm6, %v2156_v61 }
 0x86e   : > { %v2273_v62 = vpop.permute.xlu1 %2272 }
 0x86f   : > { %2276 = vst.msk [vmem:[#allocation4] sm:$0xff] %vm2275_vm7, %v2273_v62 }
 0x89a   : > { %v2390_v63 = vpop.permute.xlu0 %2389 }
 0x89b   : > { %2393 = vst.msk [vmem:[#allocation4] sm:$0xff] %vm2392_vm8, %v2390_v63 }
 0x8a2   : > { %v2394_v0 = vld [vmem:[#allocation4] sm:$0xff] }
 0x8a3   : > { %v2395_v1 = vpack.c.bf16 %v2394_v0, %v2394_v0 }
 0x8a5   : > { %4527 = vmatmul.mubr.msk.bf16.vlgmr.msra.gmra.mrb[20].mxu0 %vm1819_vm3, %v2395_v1 }
 0x8a6   : > { %4542 = vmatprep.mubr.msk.bf16.mxu0 %vm6073_vm2, %v6072_v3  ;;  %4539 = vmatpush3.bf16.msra.mxu0 %v4926_v15 }
 0x8a7   : > { %4540 = vmatprep.subr.bf16.mxu0 %v6072_v3 }
 0x8aa   : > { %4541 = vmatpush3.bf16.msra.mxu0 %v4927_v16 }
 0x8ab   : > { %4552 = vmatprep.subr.bf16.mxu0 %v6072_v3 }
 0x978   : > { %v2456_v4 = vpop.f32.mrb[20].mxu0 }
 0x979   : > { %v2457_v7 = vadd.f32 %v4327_v2, %v2456_v4  ;;  %v4528_v8 = vpop.f32.mrb[21].mxu0 }
 0x97a   : > { %v2459_v9 = vpop.f32.mrb[22].mxu0 }
 0x97b   : > { %v2462_v10 = vadd.f32 %v2457_v7, %v7190_v5  ;;  %v4529_v11 = vpop.f32.mrb[23].mxu0  ;;  %v4928_v5 = vld [vmem:[%s7775_s30] sm:$0xff]   ;;  %s7787_s30 = scalar_lea.vmem [#allocation29], %s7076_s26 }
 0x97c   : > { %4543 = vmatmul.mubr.msk.bf16.vlgmr.msra.gmra.mrb[24].mxu0 %vm1819_vm3, %v4928_v5 }
 0x97d   : > { %v2463_v12 = vsel %vm1819_vm3, %v2462_v10, 0.0  ;;  %v2468_v13 = vmul.f32 %v2462_v10, %v2462_v10  ;;  %4554 = vmatprep.mubr.msk.bf16.mxu0 %vm6073_vm2, %v6072_v3 }
 0x97e   : > { %2464 = vadd.xlane.f32.xlu1 %v2463_v12 }
 0x97f   : > { %v2469_v14 = vsel %vm1819_vm3, %v2468_v13, 0.0 }
 0x980   : > { %2470 = vadd.xlane.f32.xlu0 %v2469_v14 }
 0xa0b   : > { %v2465_v19 = vpop.xlane.xlu1 %2464 }
 0xa0c   : > { %v2467_v20 = vmul.f32 0.03125, %v2465_v19 }
 0xa0d   : > { %v2471_v21 = vpop.xlane.xlu0 %2470 }
 0xa0e   : > { %v2473_v22 = vmul.f32 %v2467_v20, %v2467_v20  ;;  %v2472_v23 = vmul.f32 0.03125, %v2471_v21  ;;  %v2475_v31 = vsub.f32 %v2462_v10, %v2467_v20 }
 0xa10   : > { %v2474_v24 = vsub.f32 %v2472_v23, %v2473_v22 }
 0xa12   : > { %v2476_v26 = vadd.f32 1e-05, %v2474_v24 }
 0xa14   : > { %4961 = vrsqrt.f32 %v2476_v26 }
 0xa1e   : > { %v4962_v33 = vpop.eup %4961 }
 0xa1f   : > { %v2478_v34 = vmul.f32 %v4962_v33, %v2475_v31 }
 0xa21   : > { %v2483_v36 = vmul.f32 %v2482_v32, %v2478_v34 }
 0xa23   : > { %v7327_v37 = vadd.f32 %v2487_v35, %v2483_v36 }
 0xa25   : > { %v2489_v38 = vadd.f32 %v7327_v37, %v7194_v6 }
 0xa27   : > { %v2490_v39 = vpack.c.bf16 %v2489_v38, %v2489_v38 }
 0xa29   : > { %4535 = vmatmul.mubr.msk.bf16.vlgmr.msra.gmra.mrb[20].mxu1 %vm1819_vm3, %v2490_v39 }
 0xa2a   : > { %4548 = vmatprep.mubr.msk.bf16.mxu1 %vm6073_vm2, %v6072_v3 }
 0xa4f   : > { %v2622_v41 = vpop.f32.mrb[24].mxu0 }
 0xa50   : > { %v2623_v42 = vadd.f32 %v4335_v40, %v2622_v41  ;;  %v4544_v43 = vpop.f32.mrb[25].mxu0 }
 0xa51   : > { %v2625_v44 = vpop.f32.mrb[26].mxu0 }
 0xa52   : > { %v2626_v45 = vadd.f32 %v4335_v40, %v2625_v44  ;;  %v4545_v46 = vpop.f32.mrb[27].mxu0 }
 0xa54   : > { %v7336_v47 = vpack.c.bf16 %v2626_v45, %v2623_v42 }
 0xa56   : > { %2742 = vrot.lane.b32.xlu0 %v7336_v47, %s6074_s10  ;;  %v2635_v6 = vsel %vm1934_vm4, %v7336_v47, 0 }
 0xa57   : > { %4547 = vmatpush3.bf16.xpose.msra.mxu1 %v2635_v6 }
 0xa58   : > { %4558 = vmatprep.subr.bf16.mxu1 %v6072_v3 }
 0xac8   : > { %v2743_v52 = vpop.permute.xlu0 %2742 }
 0xac9   : > { %v2748_v56 = vsel %vm1934_vm4, %v2743_v52, 0 }
 0xafc   : > { %v2551_v49 = vpop.f32.mrb[20].mxu1 }
 0xafd   : > { %v2552_v50 = vadd.f32 %v4331_v48, %v2551_v49  ;;  %v4536_v51 = vpop.f32.mrb[21].mxu1 }
 0xafe   : > { %v2554_v53 = vpop.f32.mrb[22].mxu1 }
 0xaff   : > { %v2629_v54 = vpack.c.bf16 %v2552_v50, %v2552_v50  ;;  %v4537_v55 = vpop.f32.mrb[23].mxu1 }
 0xb01   : > { %2854 = vrot.lane.b32.xlu0 %v2629_v54, %s6079_s21  ;;  %2740 = vrot.lane.b32.xlu1 %v2629_v54, %s6074_s10  ;;  %s7781_s10 = smov 80  }
 0xb02   : > { %4549 = vmatmul.mubr.msk.bf16.vlgmr.msra.gmra.mrb[24].mxu1 %vm1934_vm4, %v2629_v54 }
 0xb03   : > { %4559 = vmatpush3.bf16.xpose.msra.mxu1 %v2748_v56  ;;  %4560 = vmatprep.mubr.msk.bf16.mxu1 %vm6073_vm2, %v6072_v3 }
 0xb04   : > { %4570 = vmatprep.subr.bf16.mxu1 %v6072_v3 }
 0xb05   : > { %2968 = vrot.lane.b32.xlu0 %v2629_v54, %s6080_s13  ;;  %2856 = vrot.lane.b32.xlu1 %v7336_v47, %s6079_s21  ;;  %s7785_s21 = smov 16  }
 0xb09   : > { %2970 = vrot.lane.b32.xlu1 %v7336_v47, %s6080_s13  ;;  %s7786_s13 = smov 24  }
 0xb73   : > { %v2741_v57 = vpop.permute.xlu1 %2740  ;;  %v2855_v61 = vpop.permute.xlu0 %2854 }
 0xb74   : > { %4561 = vmatmul.mubr.msk.bf16.vlgmr.msra.gmra.mrb[28].mxu1 %vm1934_vm4, %v2741_v57 }
 0xb75   : > { %4572 = vmatprep.mubr.msk.bf16.mxu1 %vm6073_vm2, %v6072_v3 }
 0xb77   : > { %v2857_v58 = vpop.permute.xlu1 %2856  ;;  %v2969_v63 = vpop.permute.xlu0 %2968 }
 0xb78   : > { %v2862_v59 = vsel %vm1934_vm4, %v2857_v58, 0 }
 0xb79   : > { %4571 = vmatpush3.bf16.xpose.msra.mxu1 %v2862_v59 }
 0xb7a   : > { %4582 = vmatprep.subr.bf16.mxu1 %v6072_v3 }
 0xb7b   : > { %v2971_v60 = vpop.permute.xlu1 %2970 }
 0xb7c   : > { %v2976_v62 = vsel %vm1934_vm4, %v2971_v60, 0 }
 0xb80   : > { %4573 = vmatmul.mubr.msk.bf16.vlgmr.msra.gmra.mrb[32].mxu1 %vm1934_vm4, %v2855_v61 }
 0xb81   : > { %4583 = vmatpush3.bf16.xpose.msra.mxu1 %v2976_v62  ;;  %4584 = vmatprep.mubr.msk.bf16.mxu1 %vm6073_vm2, %v6072_v3 }
 0xb82   : > { %4594 = vmatprep.subr.bf16.mxu1 %v6072_v3 }
 0xb88   : > { %4585 = vmatmul.mubr.msk.bf16.vlgmr.msra.gmra.mrb[36].mxu1 %vm1934_vm4, %v2969_v63 }
 0xb89   : > { %4598 = vmatprep.mubr.msk.bf16.mxu1 %vm6073_vm2, %v6072_v3 }
 0xbd5   : > { %v2671_v0 = vpop.f32.mrb[24].mxu1 }
 0xbd6   : > { %v2677_v1 = vmul.f32 0.35355338, %v2671_v0  ;;  %v4550_v2 = vpop.f32.mrb[25].mxu1 }
 0xbd7   : > { %v2674_v4 = vpop.f32.mrb[26].mxu1 }
 0xbd8   : > { %v4551_v7 = vpop.f32.mrb[27].mxu1  ;;  %v2679_v8 = vsel %vm2678_vm9, %v2677_v1, -inf }
 0xbd9   : > { %2680 = vmax.xlane.f32.xlu1 %v2679_v8 }
 0xc47   : > { %v2784_v9 = vpop.f32.mrb[28].mxu1 }
 0xc48   : > { %v2790_v10 = vmul.f32 0.35355338, %v2784_v9  ;;  %v4562_v11 = vpop.f32.mrb[29].mxu1 }
 0xc49   : > { %v2787_v12 = vpop.f32.mrb[30].mxu1 }
 0xc4a   : > { %v4563_v13 = vpop.f32.mrb[31].mxu1  ;;  %v2791_v14 = vsel %vm2678_vm9, %v2790_v10, -inf }
 0xc4b   : > { %2792 = vmax.xlane.f32.xlu0 %v2791_v14 }
 0xc53   : > { %v2898_v15 = vpop.f32.mrb[32].mxu1 }
 0xc54   : > { %v2904_v16 = vmul.f32 0.35355338, %v2898_v15  ;;  %v4574_v5 = vpop.f32.mrb[33].mxu1 }
 0xc55   : > { %v2901_v17 = vpop.f32.mrb[34].mxu1 }
 0xc56   : > { %v4575_v18 = vpop.f32.mrb[35].mxu1  ;;  %v2905_v19 = vsel %vm2678_vm9, %v2904_v16, -inf }
 0xc57   : > { %2906 = vmax.xlane.f32.xlu0 %v2905_v19 }
 0xc5b   : > { %v3012_v20 = vpop.f32.mrb[36].mxu1 }
 0xc5c   : > { %v3018_v21 = vmul.f32 0.35355338, %v3012_v20  ;;  %v4586_v22 = vpop.f32.mrb[37].mxu1 }
 0xc5d   : > { %v3015_v23 = vpop.f32.mrb[38].mxu1 }
 0xc5e   : > { %v4587_v24 = vpop.f32.mrb[39].mxu1  ;;  %v3019_v25 = vsel %vm2678_vm9, %v3018_v21, -inf }
 0xc5f   : > { %3020 = vmax.xlane.f32.xlu1 %v3019_v25 }
 0xc66   : > { %v2681_v26 = vpop.xlane.xlu1 %2680 }
 0xc67   : > { %v2682_v28 = vsub.f32 %v2677_v1, %v2681_v26 }
 0xc69   : > { %v2683_v31 = vmul.f32 1.442695, %v2682_v28 }
 0xc6b   : > { %4963 = vpow2.f32 %v2683_v31 }
 0xc75   : > { %v4964_v32 = vpop.eup %4963 }
 0xc76   : > { %v2685_v33 = vsel %vm2678_vm9, %v4964_v32, 0.0 }
 0xc77   : > { %2686 = vadd.xlane.f32.xlu0 %v2685_v33  ;;  %v4348_v33 = vld [vmem:[%s7787_s30] ss:$0 sm:$0xff] }
 0xcd8   : > { %v2793_v34 = vpop.xlane.xlu0 %2792 }
 0xcd9   : > { %v2794_v35 = vsub.f32 %v2790_v10, %v2793_v34 }
 0xcdb   : > { %v2795_v36 = vmul.f32 1.442695, %v2794_v35 }
 0xcdd   : > { %4965 = vpow2.f32 %v2795_v36 }
 0xce4   : > { %v2907_v38 = vpop.xlane.xlu0 %2906 }
 0xce5   : > { %v2908_v39 = vsub.f32 %v2904_v16, %v2907_v38 }
 0xce7   : > { %v4966_v40 = vpop.eup %4965  ;;  %v2909_v41 = vmul.f32 1.442695, %v2908_v39 }
 0xce8   : > { %v2797_v42 = vsel %vm2678_vm9, %v4966_v40, 0.0 }
 0xce9   : > { %4967 = vpow2.f32 %v2909_v41  ;;  %2798 = vadd.xlane.f32.xlu1 %v2797_v42 }
 0xcec   : > { %v3021_v45 = vpop.xlane.xlu1 %3020 }
 0xced   : > { %v3022_v46 = vsub.f32 %v3018_v21, %v3021_v45  ;;  %v4934_v45 = vld [vmem:[%s7789_s17 + $0x8] sm:$0xff]  }
 0xcef   : > { %v3023_v6 = vmul.f32 1.442695, %v3022_v46  ;;  %v4935_v46 = vld [vmem:[%s7145_s22] sm:$0xff]  }
 0xcf1   : > { %4969 = vpow2.f32 %v3023_v6 }
 0xcf3   : > { %v4968_v43 = vpop.eup %4967 }
 0xcf4   : > { %v2911_v44 = vsel %vm2678_vm9, %v4968_v43, 0.0 }
 0xcf5   : > { %2912 = vadd.xlane.f32.xlu0 %v2911_v44  ;;  %v4933_v44 = vld [vmem:[%s7788_s0] sm:$0xff]  }
 0xcfa   : > { %2803 = vrot.lane.b32.xlu1 %v7336_v47, %s6077_s11  ;;  %s7783_s11 = scalar_lea.vmem [#allocation28], %s7079_s9  ;;  %s7790_s9 = scalar_lea.vmem [#allocation35], %s7076_s26 }
 0xcfb   : > { %v4970_v48 = vpop.eup %4969  ;;  %v4931_v16 = vld [vmem:[%s7783_s11] sm:$0xff]   ;;  %s7784_s14 = smov %s7783_s11  ;;  %s7792_s26 = sld [smem:[#allocation104_spill]] }
 0xcfc   : > { %v3025_v49 = vsel %vm2678_vm9, %v4970_v48, 0.0  ;;  %4595 = vmatpush3.bf16.msra.mxu1 %v4931_v16  ;;  %v4932_v5 = vld [vmem:[%s7784_s14 + $0x8] sm:$0xff]   ;;  %s3565_s14 = scalar_lea.sflag [#allocation7], %s7170_s24 }
 0xcfd   : > { %4596 = vmatprep.subr.bf16.mxu1 %v6072_v3 }
 0xd00   : > { %4597 = vmatpush3.bf16.msra.mxu1 %v4932_v5 }
 0xd01   : > { %4610 = vmatprep.subr.bf16.mxu1 %v6072_v3  ;;  %s4376_s18 = sshll.u32 %s7792_s26, 1 }
 0xd04   : > { %v2687_v50 = vpop.xlane.xlu0 %2686 }
 0xd05   : > { %4971 = vrcp.f32 %v2687_v50 }
 0xd0b   : > { %2692 = vrot.lane.b32.xlu0 %v7336_v47, %s6075_s19  ;;  %s7782_s19 = smov 8  }
 0xd0f   : > { %3031 = vrot.lane.b32.xlu0 %v7336_v47, %s7780_s28  ;;  %v4972_v52 = vpop.eup %4971 }
 0xd10   : > { %v2689_v54 = vmul.f32 %v4972_v52, %v4964_v32 }
 0xd12   : > { %v2690_v56 = vpack.c.bf16 %v2689_v54, %v2689_v54  ;;  %v3168_v54 = vsub.s32 1, %v7316_v27 }
 0xd1e   : > { %3026 = vadd.xlane.f32.xlu1 %v3025_v49 }
 0xd2f   : > { %2917 = vrot.lane.b32.xlu1 %v7336_v47, %s7781_s10  ;;  %s3585_s10 = sshll.u32 %s7173_s8, 4  ;;  %s7472_s10 = int_to_ptr.vmem [resolvable:$true] %s3585_s10 }
 0xd76   : > { %v2799_v51 = vpop.xlane.xlu1 %2798 }
 0xd77   : > { %4973 = vrcp.f32 %v2799_v51 }
 0xd7a   : > { %v2804_v58 = vpop.permute.xlu1 %2803 }
 0xd81   : > { %v4974_v57 = vpop.eup %4973 }
 0xd82   : > { %v2913_v53 = vpop.xlane.xlu0 %2912  ;;  %v2801_v47 = vmul.f32 %v4974_v57, %v4966_v40 }
 0xd83   : > { %4975 = vrcp.f32 %v2913_v53 }
 0xd84   : > { %v2802_v59 = vpack.c.bf16 %v2801_v47, %v2801_v47  ;;  %v3174_v47 = vrot.slane %v7323_v30, %v3168_v54 }
 0xd86   : > { %v2693_v55 = vpop.permute.xlu0 %2692 }
 0xd87   : > { %4553 = vmatpush3.bf16.msra.mxu0 %v2693_v55 }
 0xd88   : > { %4564 = vmatprep.subr.bf16.mxu0 %v6072_v3 }
 0xd8a   : > { %4555 = vmatmul.mubr.msk.bf16.vlgmr.msra.gmra.mrb[28].mxu0 %vm2678_vm9, %v2690_v56  ;;  %v3032_v1 = vpop.permute.xlu0 %3031  ;;  %v3169_v56 = vrot.slane %v7320_v29, %v3168_v54 }
 0xd8b   : > { %4565 = vmatpush3.bf16.msra.mxu0 %v2804_v58  ;;  %4566 = vmatprep.mubr.msk.bf16.mxu0 %vm6073_vm2, %v6072_v3 }
 0xd8c   : > { %4576 = vmatprep.subr.bf16.mxu0 %v6072_v3 }
 0xd8d   : > { %v4976_v60 = vpop.eup %4975 }
 0xd8e   : > { %v2915_v62 = vmul.f32 %v4976_v60, %v4968_v43 }
 0xd90   : > { %v2916_v0 = vpack.c.bf16 %v2915_v62, %v2915_v62  ;;  %v4937_v62 = vld [vmem:[%s7145_s22 + $0x10] sm:$0xff]  }
 0xd92   : > { %4567 = vmatmul.mubr.msk.bf16.vlgmr.msra.gmra.mrb[32].mxu0 %vm2678_vm9, %v2802_v59 }
 0xd93   : > { %4578 = vmatprep.mubr.msk.bf16.mxu0 %vm6073_vm2, %v6072_v3 }
 0xdab   : > { %v3027_v61 = vpop.xlane.xlu1 %3026 }
 0xdac   : > { %4977 = vrcp.f32 %v3027_v61 }
 0xdaf   : > { %v2918_v63 = vpop.permute.xlu1 %2917 }
 0xdb0   : > { %4577 = vmatpush3.bf16.msra.mxu0 %v2918_v63  ;;  %v4938_v63 = vld [vmem:[%s7145_s22 + $0x18] sm:$0xff]  }
 0xdb1   : > { %4588 = vmatprep.subr.bf16.mxu0 %v6072_v3 }
 0xdb3   : > { %4579 = vmatmul.mubr.msk.bf16.vlgmr.msra.gmra.mrb[36].mxu0 %vm2678_vm9, %v2916_v0  ;;  %v4352_v0 = vld [vmem:[%s7790_s9] ss:$0 sm:$0xff] }
 0xdb4   : > { %4589 = vmatpush3.bf16.msra.mxu0 %v3032_v1  ;;  %4590 = vmatprep.mubr.msk.bf16.mxu0 %vm6073_vm2, %v6072_v3 }
 0xdb5   : > { %4602 = vmatprep.subr.bf16.mxu0 %v6072_v3 }
 0xdb6   : > { %v4978_v2 = vpop.eup %4977 }
 0xdb7   : > { %v3029_v4 = vmul.f32 %v4978_v2, %v4970_v48 }
 0xdb9   : > { %v3030_v7 = vpack.c.bf16 %v3029_v4, %v3029_v4 }
 0xdbb   : > { %4591 = vmatmul.mubr.msk.bf16.vlgmr.msra.gmra.mrb[40].mxu0 %vm2678_vm9, %v3030_v7 }
 0xdbc   : > { %4606 = vmatprep.mubr.msk.bf16.mxu0 %vm6073_vm2, %v6072_v3  ;;  %4603 = vmatpush3.bf16.msra.mxu0 %v4933_v44 }
 0xdbd   : > { %4604 = vmatprep.subr.bf16.mxu0 %v6072_v3 }
 0xdc0   : > { %4605 = vmatpush3.bf16.msra.mxu0 %v4934_v45 }
 0xdc1   : > { %4622 = vmatprep.subr.bf16.mxu0 %v6072_v3 }
 0xe5d   : > { %v2732_v8 = vpop.f32.mrb[28].mxu0 }
 0xe5e   : > { %2738 = vst.msk [vmem:[#allocation4] sm:$0xff] %vm1934_vm4, %v2732_v8  ;;  %v4556_v9 = vpop.f32.mrb[29].mxu0 }
 0xe5f   : > { %v2735_v10 = vpop.f32.mrb[30].mxu0 }
 0xe60   : > { %v4557_v11 = vpop.f32.mrb[31].mxu0 }
 0xe61   : > { %v4356_v11 = vld [vmem:[%s7791_s20] ss:$0 sm:$0xff] }
 0xe65   : > { %v2843_v12 = vpop.f32.mrb[32].mxu0 }
 0xe66   : > { %2850 = vrot.lane.b32.xlu1 %v2843_v12, %s7782_s19  ;;  %v4568_v13 = vpop.f32.mrb[33].mxu0 }
 0xe67   : > { %v2846_v14 = vpop.f32.mrb[34].mxu0 }
 0xe68   : > { %v4569_v15 = vpop.f32.mrb[35].mxu0 }
 0xe86   : > { %v2957_v17 = vpop.f32.mrb[36].mxu0 }
 0xe87   : > { %2964 = vrot.lane.b32.xlu0 %v2957_v17, %s7785_s21  ;;  %v4580_v18 = vpop.f32.mrb[37].mxu0  ;;  %s5767_s21 = scalar_lea.vmem %s7472_s10, 128 }
 0xe88   : > { %v2960_v19 = vpop.f32.mrb[38].mxu0  ;;  %p5768_p1 = scmp.ne.s32.totalorder %s7472_s10, %s5767_s21 }
 0xe89   : > { %v4581_v20 = vpop.f32.mrb[39].mxu0 }
 0xe8a   : > { %v4939_v20 = vld [vmem:[#allocation40] sm:$0xff]   ;;  %p5769_p5 = pnand %p5768_p1, %p7795_p3 }
 0xe8c   : > { %p5770_p4 = pneg %p5769_p5 }
 0xe8e   : > { %v3071_v21 = vpop.f32.mrb[40].mxu0 }
 0xe8f   : > { %3078 = vrot.lane.b32.xlu1 %v3071_v21, %s7786_s13  ;;  %v4592_v22 = vpop.f32.mrb[41].mxu0  ;;  %v4940_v21 = vld [vmem:[#allocation40 + $0x8] sm:$0xff]   ;;  %s6084_s13 = smov [#allocation49]  }
 0xe90   : > { %v3074_v23 = vpop.f32.mrb[42].mxu0  ;;  %s5771_s30 = sshll.u32 %s6084_s13, 4  ;;  %s5772_s30 = int_to_ptr.vmem [resolvable:$false] %s5771_s30 }
 0xe91   : > { %v4593_v24 = vpop.f32.mrb[43].mxu0  ;;  %s5773_s0 = scalar_lea.vmem %s5772_s30, 256  ;;  %p5774_p13 = scmp.lt.s32.totalorder %s7472_s10, %s5772_s30 }
 0xe92   : > { %p5775_p11 = scmp.lt.s32.totalorder %s5773_s0, %s5767_s21 }
 0xe94   : > { %p5776_p6 = por %p5775_p11, %p5774_p13 }
 0xe96   : > { %p5777_p9 = pnand %p5776_p6, %p5770_p4 }
 0xed8   : > { %v2851_v25 = vpop.permute.xlu1 %2850 }
 0xed9   : > { %2853 = vst.msk [vmem:[#allocation4] sm:$0xff] %vm2158_vm6, %v2851_v25 }
 0xef9   : > { %v2965_v26 = vpop.permute.xlu0 %2964 }
 0xefa   : > { %2967 = vst.msk [vmem:[#allocation4] sm:$0xff] %vm2275_vm7, %v2965_v26 }
 0xf01   : > { %v3079_v28 = vpop.permute.xlu1 %3078 }
 0xf02   : > { %3081 = vst.msk [vmem:[#allocation4] sm:$0xff] %vm2392_vm8, %v3079_v28 }
 0xf09   : > { %v3082_v31 = vld [vmem:[#allocation4] sm:$0xff] }
 0xf0a   : > { %v3083_v32 = vpack.c.bf16 %v3082_v31, %v3082_v31 }
 0xf0c   : > { %4599 = vmatmul.mubr.msk.bf16.vlgmr.msra.gmra.mrb[40].mxu1 %vm1819_vm3, %v3083_v32  ;;  %v3346_v32 = vsub.s32 2, %v7316_v27  ;;  %v4941_v27 = vld [vmem:[#allocation43] sm:$0xff]  }
 0xf0d   : > { %4618 = vmatprep.mubr.msk.bf16.mxu1 %vm6073_vm2, %v6072_v3  ;;  %4611 = vmatpush3.bf16.msra.mxu1 %v4935_v46 }
 0xf0e   : > { %4612 = vmatprep.subr.bf16.mxu1 %v6072_v3 }
 0xfdf   : > { %v3144_v34 = vpop.f32.mrb[40].mxu1 }
 0xfe0   : > { %v3145_v35 = vadd.f32 %v4348_v33, %v3144_v34  ;;  %v4600_v36 = vpop.f32.mrb[41].mxu1  ;;  %v3347_v34 = vrot.slane %v7320_v29, %v3346_v32  ;;  %v4942_v29 = vld [vmem:[#allocation43 + $0x8] sm:$0xff]  }
 0xfe1   : > { %v3147_v38 = vpop.f32.mrb[42].mxu1 }
 0xfe2   : > { %v3150_v39 = vadd.f32 %v3145_v35, %v7327_v37  ;;  %v4601_v40 = vpop.f32.mrb[43].mxu1  ;;  %v4936_v37 = vld [vmem:[%s7145_s22 + $0x8] sm:$0xff]   ;;  %v3352_v38 = vrot.slane %v7323_v30, %v3346_v32  ;;  %s7793_s22 = sld [smem:[#allocation105_spill]] }
 0xfe3   : > { %4613 = vmatpush3.bf16.msra.mxu1 %v4936_v37 }
 0xfe4   : > { %v3151_v41 = vsel %vm1819_vm3, %v3150_v39, 0.0  ;;  %v3155_v42 = vmul.f32 %v3150_v39, %v3150_v39  ;;  %4614 = vmatprep.subr.bf16.mxu1 %v6072_v3 }
 0xfe5   : > { %3152 = vadd.xlane.f32.xlu0 %v3151_v41 }
 0xfe6   : > { %v3156_v43 = vsel %vm1819_vm3, %v3155_v42, 0.0  ;;  %v4362_v42 = vld [vmem:[#allocation41] ss:$0 sm:$0xff] }
 0xfe7   : > { %3157 = vadd.xlane.f32.xlu1 %v3156_v43  ;;  %4615 = vmatpush3.bf16.msra.mxu1 %v4937_v62 }
 0xfe8   : > { %4616 = vmatprep.subr.bf16.mxu1 %v6072_v3  ;;  %s7468_s28 = sadd.s32 %s7793_s22, %s4376_s18 }
 0xfe9   : > { %s4377_s19 = sshll.u32 %s7468_s28, 7 }
 0xfea   : > { %s3583_s11 = scalar_lea.hbm %s7794_s27, %s4377_s19 }
 0xfeb   : > { %4617 = vmatpush3.bf16.msra.mxu1 %v4938_v63 }
 0xfec   : > { %4638 = vmatprep.subr.bf16.mxu1 %v6072_v3 }
0x1072   : > { %v3153_v6 = vpop.xlane.xlu0 %3152 }
0x1073   : > { %v3154_v48 = vmul.f32 0.03125, %v3153_v6 }
0x1074   : > { %v3158_v49 = vpop.xlane.xlu1 %3157 }
0x1075   : > { %v3160_v50 = vmul.f32 %v3154_v48, %v3154_v48  ;;  %v3159_v51 = vmul.f32 0.03125, %v3158_v49  ;;  %v3162_v55 = vsub.f32 %v3150_v39, %v3154_v48  ;;  %v4943_v48 = vld [vmem:[#allocation46] sm:$0xff]   ;;  %v4944_v49 = vld [vmem:[#allocation46 + $0x8] sm:$0xff]  }
0x1077   : > { %v3161_v52 = vsub.f32 %v3159_v51, %v3160_v50  ;;  %v4366_v50 = vld [vmem:[#allocation44] ss:$0 sm:$0xff] }
0x1079   : > { %v3163_v53 = vadd.f32 1e-05, %v3161_v52 }
0x107b   : > { %4979 = vrsqrt.f32 %v3163_v53 }
0x1085   : > { %v4980_v57 = vpop.eup %4979 }
0x1086   : > { %v3165_v58 = vmul.f32 %v4980_v57, %v3162_v55 }
0x1088   : > { %v3170_v59 = vmul.f32 %v3169_v56, %v3165_v58 }
0x108a   : > { %v3175_v60 = vadd.f32 %v3174_v47, %v3170_v59 }
0x108c   : > { %v3176_v61 = vpack.c.bf16 %v3175_v60, %v3175_v60 }
0x108e   : > { %4607 = vmatmul.mubr.msk.bf16.vlgmr.msra.gmra.mrb[44].mxu0 %vm1819_vm3, %v3176_v61 }
0x108f   : > { %4626 = vmatprep.mubr.msk.bf16.mxu0 %vm6073_vm2, %v6072_v3  ;;  %4623 = vmatpush3.bf16.msra.mxu0 %v4939_v20 }
0x1090   : > { %4624 = vmatprep.subr.bf16.mxu0 %v6072_v3 }
0x1093   : > { %4625 = vmatpush3.bf16.msra.mxu0 %v4940_v21 }
0x1094   : > { %4630 = vmatprep.subr.bf16.mxu0 %v6072_v3 }
0x1161   : > { %v3237_v1 = vpop.f32.mrb[44].mxu0 }
0x1162   : > { %v3238_v2 = vadd.f32 %v4352_v0, %v3237_v1  ;;  %v4608_v4 = vpop.f32.mrb[45].mxu0 }
0x1163   : > { %v3240_v7 = vpop.f32.mrb[46].mxu0 }
0x1164   : > { %v3243_v8 = vmax.f32 %v3238_v2, 0.0  ;;  %v4609_v9 = vpop.f32.mrb[47].mxu0 }
0x1166   : > { %v3244_v10 = vpack.c.bf16 %v3243_v8, %v3243_v8 }
0x1168   : > { %4619 = vmatmul.mubr.msk.bf16.vlgmr.msra.gmra.mrb[44].mxu1 %vm3284_vm10, %v3244_v10 }
0x1169   : > { %4642 = vmatprep.mubr.msk.bf16.mxu1 %vm6073_vm2, %v6072_v3  ;;  %4639 = vmatpush3.bf16.msra.mxu1 %v4943_v48 }
0x116a   : > { %4640 = vmatprep.subr.bf16.mxu1 %v6072_v3 }
0x116d   : > { %4641 = vmatpush3.bf16.msra.mxu1 %v4944_v49 }
0x123b   : > { %v3322_v12 = vpop.f32.mrb[44].mxu1 }
0x123c   : > { %v3323_v13 = vadd.f32 %v4356_v11, %v3322_v12  ;;  %v4620_v14 = vpop.f32.mrb[45].mxu1 }
0x123d   : > { %v3325_v15 = vpop.f32.mrb[46].mxu1 }
0x123e   : > { %v3328_v16 = vadd.f32 %v3323_v13, %v3175_v60  ;;  %v4621_v5 = vpop.f32.mrb[47].mxu1 }
0x1240   : > { %v3329_v17 = vsel %vm1819_vm3, %v3328_v16, 0.0  ;;  %v3333_v18 = vmul.f32 %v3328_v16, %v3328_v16 }
0x1241   : > { %3330 = vadd.xlane.f32.xlu0 %v3329_v17 }
0x1242   : > { %v3334_v19 = vsel %vm1819_vm3, %v3333_v18, 0.0 }
0x1245   : > { %3335 = vadd.xlane.f32.xlu0 %v3334_v19 }
0x12ce   : > { %v3331_v22 = vpop.xlane.xlu0 %3330 }
0x12cf   : > { %v3332_v23 = vmul.f32 0.03125, %v3331_v22 }
0x12d1   : > { %v3338_v25 = vmul.f32 %v3332_v23, %v3332_v23  ;;  %v3340_v33 = vsub.f32 %v3328_v16, %v3332_v23 }
0x12d2   : > { %v3336_v24 = vpop.xlane.xlu0 %3335 }
0x12d3   : > { %v3337_v26 = vmul.f32 0.03125, %v3336_v24 }
0x12d5   : > { %v3339_v28 = vsub.f32 %v3337_v26, %v3338_v25 }
0x12d7   : > { %v3341_v31 = vadd.f32 1e-05, %v3339_v28 }
0x12d9   : > { %4981 = vrsqrt.f32 %v3341_v31 }
0x12e3   : > { %v4982_v35 = vpop.eup %4981 }
0x12e4   : > { %v3343_v36 = vmul.f32 %v4982_v35, %v3340_v33 }
0x12e6   : > { %v3348_v39 = vmul.f32 %v3347_v34, %v3343_v36 }
0x12e8   : > { %v3353_v40 = vadd.f32 %v3352_v38, %v3348_v39 }
0x12ea   : > { %3354 = vst.msk [vmem:[#allocation2] sm:$0xff] %vm1819_vm3, %v3353_v40  ;;  %v3357_v41 = vpack.c.bf16 %v3353_v40, %v3353_v40  ;;  %3355 = vst.msk [vmem:[%s7173_s8] sm:$0xff] %vm1819_vm3, %v3353_v40 }
0x12ec   : > { %4627 = vmatmul.mubr.msk.bf16.vlgmr.msra.gmra.mrb[48].mxu0 %vm1819_vm3, %v3357_v41 }
0x12ed   : > { %4634 = vmatprep.mubr.msk.bf16.mxu0 %vm6073_vm2, %v6072_v3  ;;  %4631 = vmatpush3.bf16.msra.mxu0 %v4941_v27 }
0x12ee   : > { %4632 = vmatprep.subr.bf16.mxu0 %v6072_v3 }
0x12f1   : > { %4633 = vmatpush3.bf16.msra.mxu0 %v4942_v29 }
0x13bf   : > { %v3418_v30 = vpop.f32.mrb[48].mxu0 }
0x13c0   : > { %v3419_v43 = vadd.f32 %v4362_v42, %v3418_v30  ;;  %v4628_v44 = vpop.f32.mrb[49].mxu0 }
0x13c1   : > { %v3421_v45 = vpop.f32.mrb[50].mxu0 }
0x13c2   : > { %v3424_v46 = vmax.f32 %v3419_v43, 0.0  ;;  %v4629_v37 = vpop.f32.mrb[51].mxu0 }
0x13c4   : > { %v3425_v6 = vpack.c.bf16 %v3424_v46, %v3424_v46 }
0x13c6   : > { %4635 = vmatmul.mubr.msk.bf16.vlgmr.msra.gmra.mrb[52].mxu0 %vm1819_vm3, %v3425_v6 }
0x1499   : > { %v3486_v51 = vpop.f32.mrb[52].mxu0 }
0x149a   : > { %v3487_v52 = vadd.f32 %v4366_v50, %v3486_v51  ;;  %v4636_v53 = vpop.f32.mrb[53].mxu0 }
0x149b   : > { %v3489_v54 = vpop.f32.mrb[54].mxu0 }
0x149c   : > { %v3492_v55 = vmax.f32 %v3487_v52, 0.0  ;;  %v4637_v56 = vpop.f32.mrb[55].mxu0 }
0x149e   : > { %v3493_v57 = vpack.c.bf16 %v3492_v55, %v3492_v55 }
0x14a0   : > { %4643 = vmatmul.mubr.msk.bf16.vlgmr.msra.gmra.mrb[48].mxu1 %vm1819_vm3, %v3493_v57 }
0x14a1   : > { %5780 = shalt.err (!%p5777_p9)
}
0x14a2   : > { %s5781_s8 = scalar_lea.hbm %s3583_s11, 128  ;;  %s5785_s17 = scalar_lea.hbm %s7794_s27, 768 }
0x14a3   : > { %p5782_p8 = scmp.ne.s32.totalorder %s3583_s11, %s5781_s8  ;;  %p5786_p0 = scmp.lt.u32.totalorder %s3583_s11, %s7794_s27 }
0x14a4   : > { %p5787_p10 = scmp.lt.u32.totalorder %s5785_s17, %s5781_s8  ;;  %p5789_p1 = scmp.lt.u32.totalorder %s5781_s8, %s3583_s11 }
0x14a5   : > { %p5783_p2 = pnand %p5782_p8, %p7795_p3 }
0x14a6   : > { %p5788_p12 = por %p5787_p10, %p5786_p0 }
0x14a7   : > { %p5784_p7 = pneg %p5783_p2 }
0x14a8   : > { %p5790_p5 = por %p5789_p1, %p5788_p12 }
0x14aa   : > { %p5791_p11 = pnand %p5790_p5, %p5784_p7 }
0x14ac   : > { %5794 = shalt.err (!%p5791_p11)
}
0x14ad   : > { %s7796_s9 = sld [smem:[#allocation100_spill]]  ;;  %v4370_v3 = vld [vmem:[#allocation47] ss:$0 sm:$0xff]  ;;  %s3600_s20 = sshll.u32 %s7175_s6, 4  ;;  %vm3561_vm11 = vcmask 56320   ;;  %s7496_s20 = int_to_ptr.vmem [resolvable:$true] %s3600_s20 }
0x14ae   : > { %4714 = dma.vmem_to_hbm [thread:$0]  (%p7795_p3), %s7472_s10, 128, %s3583_s11, %s3565_s14   ;;  %v3356_v58 = vld [vmem:[#allocation3] sm:$0xff] }
0x14af   : > { %s3570_s22 = scalar_lea.sflag [#allocation51], %s7170_s24  ;;  %s5795_s18 = scalar_lea.vmem %s7496_s20, 128 }
0x14b0   : > { %p5796_p4 = scmp.ne.s32.totalorder %s7496_s20, %s5795_s18  ;;  %s6085_s10 = smov [#allocation50]  }
0x14b1   : > { %s5799_s11 = sshll.u32 %s6085_s10, 4  ;;  %s5800_s11 = int_to_ptr.vmem [resolvable:$false] %s5799_s11 }
0x14b2   : > { %p5797_p13 = pnand %p5796_p4, %p7795_p3  ;;  %s5801_s14 = scalar_lea.vmem %s5800_s11, 256 }
0x14b3   : > { %s7494_s26 = scalar_lea.hbm %s7796_s9, %s4377_s19  ;;  %p5802_p9 = scmp.lt.s32.totalorder %s7496_s20, %s5800_s11 }
0x14b4   : > { %p5798_p6 = pneg %p5797_p13  ;;  %p5803_p8 = scmp.lt.s32.totalorder %s5801_s14, %s5795_s18 }
0x14b6   : > { %p5804_p2 = por %p5803_p8, %p5802_p9 }
0x14b8   : > { %p5805_p7 = pnand %p5804_p2, %p5798_p6 }
0x1573   : > { %v3554_v47 = vpop.f32.mrb[48].mxu1 }
0x1574   : > { %v3555_v59 = vadd.f32 %v4370_v3, %v3554_v47  ;;  %v4644_v60 = vpop.f32.mrb[49].mxu1 }
0x1575   : > { %v3557_v61 = vpop.f32.mrb[50].mxu1 }
0x1576   : > { %v3560_v62 = vadd.f32 %v3555_v59, %v3356_v58  ;;  %v4645_v63 = vpop.f32.mrb[51].mxu1 }
0x1578   : > { %3562 = vst.msk [vmem:[#allocation3] sm:$0xff] %vm3561_vm11, %v3560_v62  ;;  %3563 = vst.msk [vmem:[%s7175_s6] sm:$0xff] %vm3561_vm11, %v3560_v62 }
0x1579   : > { %5808 = shalt.err (!%p5805_p7)
}
0x157a   : > { %s5809_s24 = scalar_lea.hbm %s7494_s26, 128  ;;  %s5813_s6 = scalar_lea.hbm %s7796_s9, 768 }
0x157b   : > { %p5810_p0 = scmp.ne.s32.totalorder %s7494_s26, %s5809_s24  ;;  %p5814_p1 = scmp.lt.u32.totalorder %s7494_s26, %s7796_s9 }
0x157c   : > { %p5815_p5 = scmp.lt.u32.totalorder %s5813_s6, %s5809_s24  ;;  %p5817_p4 = scmp.lt.u32.totalorder %s5809_s24, %s7494_s26 }
0x157d   : > { %p5811_p10 = pnand %p5810_p0, %p7795_p3 }
0x157e   : > { %p5816_p11 = por %p5815_p5, %p5814_p1 }
0x157f   : > { %p5812_p12 = pneg %p5811_p10 }
0x1580   : > { %p5818_p13 = por %p5817_p4, %p5816_p11 }
0x1582   : > { %p5819_p6 = pnand %p5818_p13, %p5812_p12 }
0x1584   : > { %5822 = shalt.err (!%p5819_p6)
}
0x1585   : > { %4715 = dma.vmem_to_hbm [thread:$0]  (%p7795_p3), %s7496_s20, 128, %s7494_s26, %s3570_s22  }
0x1586 PF: > { %s7797_s28 = sld [smem:[#allocation101_spill]]  ;;  %s7798_s19 = sld [smem:[#allocation112_spill]] }
0x1587   : > { %p4756_p9 = scmp.ge.s32.totalorder %s6009_s5, 2 }
0x158c   : > { %s3612_s21 = sand.u32 1, %s7797_s28   ;;  %p7799_p8 = scmp.ne.s32.totalorder %s7798_s19, 0 }
0x158d   : > { %s3613_s13 = scalar_lea.sflag [#allocation7], %s3612_s21 }
0x158e   : > { %p4738_p2 = pnand %p4756_p9, %p7799_p8 }
0x1590   : > { %5948 = dma.done.wait (!%p4738_p2), %s3613_s13, 128  }
0x1591   : > { %5950 = vsyncadd (!%p4738_p2), %s3613_s13, 4294967168  ;;  %s3622_s30 = scalar_lea.sflag [#allocation51], %s3612_s21 }
0x1592   : > { %5952 = dma.done.wait (!%p4738_p2), %s3622_s30, 128  }
0x1593   : > { %5954 = vsyncadd (!%p4738_p2), %s3622_s30, 4294967168  ;;  %s115_s5 = sadd.s32 1, %s6009_s5   ;;  %s7801_s8 = sld [smem:[#allocation102_spill]] }
0x1594   : > { %p7522_p7 = scmp.ge.s32.totalorder %s115_s5, 8   ;;  %s7802_s10 = sld [smem:[#allocation111_spill]] }
0x1595   : > { %s7803_s17 = sld [smem:[#allocation109_spill]]  ;;  %s7804_s18 = sld [smem:[#allocation103_spill]] }
0x1596   : > { %s7805_s20 = sld [smem:[#allocation110_spill]]  ;;  %s7806_s14 = sld [smem:[#allocation106_spill]] }
0x1597   : > { %s7807_s24 = sld [smem:[#allocation107_spill]]  ;;  %s7808_s0 = smov %s5961_s7 }
0x1598   : > { %s7810_s11 = smov %s5973_s15  ;;  %s7811_s15 = smov %s5977_s16 }
0x1599   : > { %s7809_s7 = smov %s7801_s8  ;;  %s7813_s22 = smov %s5989_s23 }
0x159a   : > { %s7815_s26 = smov %s6001_s1  ;;  %s7816_s28 = smov %s6005_s2 }
0x159b   : > { %s7812_s16 = smov %s7803_s17  ;;  %114 = sbr.rel (!%p7522_p7) target bundleno = 102 (0x66), region = 504 }
0x159c   : > { %s7814_s23 = smov %s7805_s20  ;;  %s7817_s1 = smov %s7806_s14 }
0x159d   : > { %s7818_s2 = smov %s7807_s24 }
0x15a2   :  { %3627 = vsyncpa [#allocation6], 1 }
0x15a3   :  { %3629 = vsyncpa [#allocation6 + $0x1], 1 }
0x15a4   :  { %3630 = vsyncpa [#allocation9], 1 }
0x15a5   :  { %3632 = vsyncpa [#allocation9 + $0x1], 1 }
0x15a6   :  { %3633 = vsyncpa [#allocation12], 1 }
0x15a7   :  { %3635 = vsyncpa [#allocation12 + $0x1], 1 }
0x15a8   :  { %3636 = vsyncpa [#allocation15], 1 }
0x15a9   :  { %3638 = vsyncpa [#allocation15 + $0x1], 1 }
0x15aa   :  { %3639 = vsyncpa [#allocation18], 1 }
0x15ab   :  { %3641 = vsyncpa [#allocation18 + $0x1], 1 }
0x15ac   :  { %3642 = vsyncpa [#allocation21], 1 }
0x15ad   :  { %3644 = vsyncpa [#allocation21 + $0x1], 1 }
0x15ae   :  { %3645 = vsyncpa [#allocation24], 1 }
0x15af   :  { %3647 = vsyncpa [#allocation24 + $0x1], 1 }
0x15b0   :  { %3648 = vsyncpa [#allocation27], 1 }
0x15b1   :  { %3650 = vsyncpa [#allocation27 + $0x1], 1 }
0x15b2   :  { %3651 = vsyncpa [#allocation30], 1 }
0x15b3   :  { %3653 = vsyncpa [#allocation30 + $0x1], 1 }
0x15b4   :  { %3654 = vsyncpa [#allocation33], 1 }
0x15b5   :  { %3656 = vsyncpa [#allocation33 + $0x1], 1 }
0x15b6   :  { %3657 = vsyncpa [#allocation36], 1 }
0x15b7   :  { %3659 = vsyncpa [#allocation36 + $0x1], 1 }
0x15b8   :  { %3660 = vsyncpa [#allocation39], 1 }
0x15b9   :  { %3662 = vsyncpa [#allocation39 + $0x1], 1 }
0x15ba   :  { %3663 = vsyncpa [#allocation42], 1 }
0x15bb   :  { %3664 = vsyncpa [#allocation45], 1 }
0x15bc   :  { %3665 = vsyncpa [#allocation48], 1 }
0x15bd   :  { %3666 = vsyncpa [#allocation7], 1 }
0x15be   :  { %3668 = vsyncpa [#allocation7 + $0x1], 1 }
0x15bf   :  { %3669 = vsyncpa [#allocation51], 1 }
0x15c0   :  { %3671 = vsyncpa [#allocation51 + $0x1], 1 }

</bundles_post_ra>
